<compile_context>
chip_gen: v7x
topology: tpu7x:2x2x1
jax: 0.10.0
libtpu: 0.0.40
codegen_flags: <defaults>
</compile_context>

<pallas_src>
import jax
import jax.numpy as jnp
from jax import lax
from jax.experimental import pallas as pl
from jax.experimental.pallas import tpu as pltpu


# ----------------------------- helpers -------------------------------------

def _round_up(x, m):
    return (x + m - 1) // m * m


def _row_tiling(m):
    """Pick an M tile (multiple of 8, <=256) and the padded M."""
    tm = min(256, _round_up(m, 8))
    return tm, _round_up(m, tm)


_TN = 128          # output-channel tile (lane dense on all generations)
_TK = 256          # reduction tile
_VMEM_LIMIT = 32 * 1024 * 1024


# ----------------------------- Pallas kernels ------------------------------

def _conv_bn_relu_kernel(p_ref, w_ref, b_ref, o_ref, acc_ref):
    """Tiled matmul with f32 accumulator; epilogue = bias + ReLU."""
    @pl.when(pl.program_id(2) == 0)
    def _():
        acc_ref[...] = jnp.zeros_like(acc_ref)

    acc_ref[...] += jnp.dot(p_ref[...], w_ref[...],
                            preferred_element_type=jnp.float32)

    @pl.when(pl.program_id(2) == pl.num_programs(2) - 1)
    def _():
        o_ref[...] = jnp.maximum(acc_ref[...] + b_ref[...],
                                 0.0).astype(o_ref.dtype)


def _conv_bn_relu_into_kernel(p_ref, w_ref, b_ref, buf_ref, o_ref, acc_ref):
    """Same as above; buf_ref is the aliased final buffer (untouched here)."""
    del buf_ref
    _conv_bn_relu_kernel(p_ref, w_ref, b_ref, o_ref, acc_ref)


def _max3_into_kernel(t0_ref, t1_ref, t2_ref, buf_ref, o_ref):
    """Final 3-way VPU max of the pooling partials, written into the concat."""
    del buf_ref
    o_ref[...] = jnp.maximum(jnp.maximum(t0_ref[...], t1_ref[...]),
                             t2_ref[...])


# ------------------------------ conv wrapper --------------------------------

def _im2col_bf16(x_nhwc, kh, kw, stride, pad):
    """im2col in bf16: (N*Ho*Wo, kh*kw*C), K ordered (kh, kw, Cin)."""
    x = x_nhwc.astype(jnp.bfloat16)
    n, h, w, c = x.shape
    if pad:
        x = jnp.pad(x, ((0, 0), (pad, pad), (pad, pad), (0, 0)))
        h, w = h + 2 * pad, w + 2 * pad
    ho = (h - kh) // stride + 1
    wo = (w - kw) // stride + 1
    cols = []
    for i in range(kh):
        for j in range(kw):
            cols.append(
                x[:, i:i + stride * ho:stride, j:j + stride * wo:stride, :])
    patches = jnp.concatenate(cols, axis=-1)        # (N, Ho, Wo, kh*kw*C)
    return patches.reshape(n * ho * wo, kh * kw * c), (n, ho, wo)


def conv_bn_relu(x_nhwc, p, stride, pad, *, out_buf=None, ch_offset=0):
    """Fused Conv2d(bias=False)+BatchNorm(eval)+ReLU as a tiled Pallas matmul.

    If `out_buf` is given, results are written directly into channel columns
    [ch_offset, ch_offset+Cout) of that (M_pad, C_total) buffer (fused concat)
    and the updated buffer is returned.  Otherwise an (N, Ho, Wo, Cout) array
    is returned.
    """
    w_oihw, scale, bias = p["w"], p["scale"], p["bias"]
    cout, cin, kh, kw = w_oihw.shape

    patches, (n, ho, wo) = _im2col_bf16(x_nhwc, kh, kw, stride, pad)
    m, k = patches.shape
    tm, m_pad = _row_tiling(m)
    cout_p = _round_up(cout, _TN)
    k_p = _round_up(k, _TK)

    # Fold BN scale into the weight matrix (f32), pad, cast to bf16.
    w_mat = jnp.transpose(w_oihw, (2, 3, 1, 0)).reshape(k, cout) * scale[None, :]
    w_mat = jnp.pad(w_mat, ((0, k_p - k), (0, cout_p - cout))).astype(jnp.bfloat16)
    b_row = jnp.pad(bias, (0, cout_p - cout)).reshape(1, cout_p).astype(jnp.float32)
    patches = jnp.pad(patches, ((0, m_pad - m), (0, k_p - k)))

    grid = (m_pad // tm, cout_p // _TN, k_p // _TK)
    in_specs = [
        pl.BlockSpec((tm, _TK), lambda mi, ni, ki: (mi, ki)),
        pl.BlockSpec((_TK, _TN), lambda mi, ni, ki: (ki, ni)),
        pl.BlockSpec((1, _TN), lambda mi, ni, ki: (0, ni)),
    ]
    cparams = pltpu.CompilerParams(
        dimension_semantics=("parallel", "parallel", "arbitrary"),
        vmem_limit_bytes=_VMEM_LIMIT)
    scratch = [pltpu.VMEM((tm, _TN), jnp.float32)]

    if out_buf is None:
        out = pl.pallas_call(
            _conv_bn_relu_kernel,
            out_shape=jax.ShapeDtypeStruct((m_pad, cout_p), jnp.float32),
            grid=grid,
            in_specs=in_specs,
            out_specs=pl.BlockSpec((tm, _TN), lambda mi, ni, ki: (mi, ni)),
            scratch_shapes=scratch,
            compiler_params=cparams,
        )(patches, w_mat, b_row)
        # Drop row/channel padding before the next layer.
        return out[:m, :cout].reshape(n, ho, wo, cout)

    # Fused concat write-back path.
    assert cout % _TN == 0 and ch_offset % _TN == 0
    assert out_buf.shape[0] == m_pad and out_buf.shape[1] % _TN == 0
    nb_off = ch_offset // _TN
    return pl.pallas_call(
        _conv_bn_relu_into_kernel,
        out_shape=jax.ShapeDtypeStruct(out_buf.shape, out_buf.dtype),
        grid=grid,
        in_specs=in_specs + [pl.BlockSpec(memory_space=pl.ANY)],
        out_specs=pl.BlockSpec((tm, _TN),
                               lambda mi, ni, ki: (mi, ni + nb_off)),
        scratch_shapes=scratch,
        input_output_aliases={3: 0},
        compiler_params=cparams,
    )(patches, w_mat, b_row, out_buf)


# ------------------------------ max-pool wrapper ----------------------------

def maxpool3x3s2_into(x_nhwc, out_buf, ch_offset):
    """MaxPool2d(3, stride=2): 3 XLA-fused partial maxima + Pallas 3-way max,
    written directly into the fused concat buffer."""
    n, h, w, c = x_nhwc.shape
    ho, wo = (h - 3) // 2 + 1, (w - 3) // 2 + 1
    m = n * ho * wo
    tm, m_pad = _row_tiling(m)
    assert c % _TN == 0 and ch_offset % _TN == 0
    assert out_buf.shape[0] == m_pad

    parts = []
    for i in range(3):
        t = None
        for j in range(3):
            s = x_nhwc[:, i:i + 2 * ho - 1:2, j:j + 2 * wo - 1:2, :]
            t = s if t is None else jnp.maximum(t, s)
        t = t.reshape(m, c)
        if m_pad != m:
            t = jnp.pad(t, ((0, m_pad - m), (0, 0)))
        parts.append(t)

    nb_off = ch_offset // _TN
    spec = pl.BlockSpec((tm, _TN), lambda mi, ni: (mi, ni))
    return pl.pallas_call(
        _max3_into_kernel,
        out_shape=jax.ShapeDtypeStruct(out_buf.shape, out_buf.dtype),
        grid=(m_pad // tm, c // _TN),
        in_specs=[spec, spec, spec, pl.BlockSpec(memory_space=pl.ANY)],
        out_specs=pl.BlockSpec((tm, _TN), lambda mi, ni: (mi, ni + nb_off)),
        input_output_aliases={3: 0},
        compiler_params=pltpu.CompilerParams(
            dimension_semantics=("parallel", "parallel"),
            vmem_limit_bytes=_VMEM_LIMIT),
    )(parts[0], parts[1], parts[2], out_buf)


# ------------------------- parameter construction ---------------------------

def init_basic_conv(key, cin, cout, k):
    """Deterministic synthetic params for BasicConv2d (conv + BN folded)."""
    k1, k2, k3, k4, k5 = jax.random.split(key, 5)
    w = jax.random.normal(k1, (cout, cin, k, k), jnp.float32) * 0.05
    gamma = jax.random.uniform(k2, (cout,), jnp.float32, 0.5, 1.5)
    beta = jax.random.normal(k3, (cout,), jnp.float32) * 0.1
    mean = jax.random.normal(k4, (cout,), jnp.float32) * 0.1
    var = jax.random.uniform(k5, (cout,), jnp.float32, 0.5, 1.5)
    eps = 1e-3  # matches nn.BatchNorm2d(eps=0.001)
    scale = gamma / jnp.sqrt(var + eps)
    bias = beta - mean * scale
    return dict(w=w, scale=scale, bias=bias)


def init_mixed_6a(key):
    ks = jax.random.split(key, 4)
    return dict(
        b0=init_basic_conv(ks[0], 256, 384, 3),
        b1_0=init_basic_conv(ks[1], 256, 192, 1),
        b1_1=init_basic_conv(ks[2], 192, 192, 3),
        b1_2=init_basic_conv(ks[3], 192, 256, 3),
    )


# ------------------------------ forward pass --------------------------------

def mixed_6a_forward(params, x_nchw):
    x = jnp.transpose(x_nchw, (0, 2, 3, 1))          # NCHW -> NHWC
    n, h, w, _ = x.shape
    ho, wo = (h - 3) // 2 + 1, (w - 3) // 2 + 1
    m_out = n * ho * wo
    _, m_pad = _row_tiling(m_out)
    c_total = 384 + 256 + 256

    # Fused-concat activation buffer; branches write disjoint channel slices.
    buf = jnp.zeros((m_pad, c_total), jnp.float32)

    # branch0: 3x3 s2 conv -> channels [0, 384)
    buf = conv_bn_relu(x, params["b0"], stride=2, pad=0,
                       out_buf=buf, ch_offset=0)

    # branch1: 1x1 s1 -> 3x3 s1 p1 -> 3x3 s2 -> channels [384, 640)
    b1 = conv_bn_relu(x, params["b1_0"], stride=1, pad=0)
    b1 = conv_bn_relu(b1, params["b1_1"], stride=1, pad=1)
    buf = conv_bn_relu(b1, params["b1_2"], stride=2, pad=0,
                       out_buf=buf, ch_offset=384)

    # branch2: max-pool 3x3 s2 -> channels [640, 896)
    buf = maxpool3x3s2_into(x, buf, ch_offset=640)

    out = buf[:m_out].reshape(n, ho, wo, c_total)
    return jnp.transpose(out, (0, 3, 1, 2))          # NHWC -> NCHW


# ------------------------------ pure-JAX ref ---------------------------------

def _ref_conv_bn_relu(x_nhwc, p, stride, pad):
    # Same math at the same precision: BN scale folded into f32 weights,
    # bf16 operands, f32 accumulation, bias + ReLU in f32.
    w_hwio = jnp.transpose(p["w"], (2, 3, 1, 0)) * p["scale"]
    y = lax.conv_general_dilated(
        x_nhwc.astype(jnp.bfloat16), w_hwio.astype(jnp.bfloat16),
        (stride, stride), ((pad, pad), (pad, pad)),
        dimension_numbers=("NHWC", "HWIO", "NHWC"),
        preferred_element_type=jnp.float32)
    return jnp.maximum(y + p["bias"], 0.0)


def mixed_6a_reference(params, x_nchw):
    x = jnp.transpose(x_nchw, (0, 2, 3, 1))
    b0 = _ref_conv_bn_relu(x, params["b0"], 2, 0)
    b1 = _ref_conv_bn_relu(x, params["b1_0"], 1, 0)
    b1 = _ref_conv_bn_relu(b1, params["b1_1"], 1, 1)
    b1 = _ref_conv_bn_relu(b1, params["b1_2"], 2, 0)
    b2 = lax.reduce_window(x, -jnp.inf, lax.max,
                           (1, 3, 3, 1), (1, 2, 2, 1), "VALID")
    out = jnp.concatenate([b0, b1, b2], axis=-1)
    return jnp.transpose(out, (0, 3, 1, 2))


# ---------------------------------- main -------------------------------------

if __name__ == "__main__":
    key = jax.random.PRNGKey(0)
    pkey, xkey = jax.random.split(key)
    params = init_mixed_6a(pkey)

    # Channel count (256 in) is fixed by the module; keep spatial small.
    x = jax.random.normal(xkey, (2, 256, 9, 9), jnp.float32)

    out = jax.block_until_ready(jax.jit(mixed_6a_forward)(params, x))
    assert out.shape == (2, 896, 4, 4), out.shape

    ref = jax.block_until_ready(jax.jit(mixed_6a_reference)(params, x))
    # bf16 MXU operands (f32 accumulation) -> relaxed tolerance vs the
    # bf16-consistent reference.
    assert jnp.allclose(out, ref, rtol=2e-2, atol=2e-2), (
        float(jnp.max(jnp.abs(out - ref))))

    print("KERNEL_OK")
</pallas_src>

<mosaic_0001>
module attributes {stable_mosaic.version = 11 : i64} {
  func.func @_conv_bn_relu_kernel(%arg0: i32, %arg1: i32, %arg2: i32, %arg3: memref<168x256xbf16, #tpu.memory_space<vmem>>, %arg4: memref<256x128xbf16, #tpu.memory_space<vmem>>, %arg5: memref<1x128xf32, #tpu.memory_space<vmem>>, %arg6: memref<168x128xf32, #tpu.memory_space<vmem>>, %arg7: memref<168x128xf32, #tpu.memory_space<vmem>>) attributes {dimension_semantics = [#tpu.dimension_semantics<parallel>, #tpu.dimension_semantics<parallel>, #tpu.dimension_semantics<arbitrary>], iteration_bounds = array<i64: 1, 2, 1>, scalar_prefetch = 0 : i64, scratch_operands = 1 : i64, tpu.core_type = #tpu.core_type<tc>, window_params = [{transform_indices = @transform_0, window_bounds = array<i64: 168, 256>}, {transform_indices = @transform_1, window_bounds = array<i64: 256, 128>}, {transform_indices = @transform_2, window_bounds = array<i64: 1, 128>}, {transform_indices = @transform_3, window_bounds = array<i64: 168, 128>}]} {
    %c0_i32 = arith.constant 0 : i32
    %0 = arith.cmpi eq, %arg2, %c0_i32 : i32
    %1 = arith.extui %0 : i1 to i32
    %c0_i32_0 = arith.constant 0 : i32
    %2 = arith.cmpi ne, %1, %c0_i32_0 : i32
    scf.if %2 {
      %cst_10 = arith.constant 0.000000e+00 : f32
      %12 = vector.broadcast %cst_10 : f32 to vector<168x128xf32>
      %c0_11 = arith.constant 0 : index
      %c0_12 = arith.constant 0 : index
      %13 = vector.load %arg7[%c0_11, %c0_12] : memref<168x128xf32, #tpu.memory_space<vmem>>, vector<168x128xf32>
      tpu.vector_store %arg7[%c0_11, %c0_12], %12 {strides = array<i32>} : memref<168x128xf32, #tpu.memory_space<vmem>>, vector<168x128xf32>,
    } else {
    }
    %c0 = arith.constant 0 : index
    %c0_1 = arith.constant 0 : index
    %3 = vector.load %arg7[%c0, %c0_1] : memref<168x128xf32, #tpu.memory_space<vmem>>, vector<168x128xf32>
    %c0_2 = arith.constant 0 : index
    %c0_3 = arith.constant 0 : index
    %4 = vector.load %arg3[%c0_2, %c0_3] : memref<168x256xbf16, #tpu.memory_space<vmem>>, vector<168x256xbf16>
    %c0_4 = arith.constant 0 : index
    %c0_5 = arith.constant 0 : index
    %5 = vector.load %arg4[%c0_4, %c0_5] : memref<256x128xbf16, #tpu.memory_space<vmem>>, vector<256x128xbf16>
    %cst = arith.constant dense<0.000000e+00> : vector<168x128xf32>
    %6 = tpu.matmul %4, %5, %cst {dimension_numbers = #tpu.dot_dimension_numbers<[1], [0], [0], [1], [0, 0, 1, 1], [], []>} : vector<168x256xbf16>, vector<256x128xbf16>, vector<168x128xf32> -> vector<168x128xf32>
    %7 = arith.addf %3, %6 : vector<168x128xf32>
    %c0_6 = arith.constant 0 : index
    %c0_7 = arith.constant 0 : index
    %8 = vector.load %arg7[%c0_6, %c0_7] : memref<168x128xf32, #tpu.memory_space<vmem>>, vector<168x128xf32>
    tpu.vector_store %arg7[%c0_6, %c0_7], %7 {strides = array<i32>} : memref<168x128xf32, #tpu.memory_space<vmem>>, vector<168x128xf32>,
    %c0_i32_8 = arith.constant 0 : i32
    %9 = arith.cmpi eq, %arg2, %c0_i32_8 : i32
    %10 = arith.extui %9 : i1 to i32
    %c0_i32_9 = arith.constant 0 : i32
    %11 = arith.cmpi ne, %10, %c0_i32_9 : i32
    scf.if %11 {
      %c0_10 = arith.constant 0 : index
      %c0_11 = arith.constant 0 : index
      %12 = vector.load %arg7[%c0_10, %c0_11] : memref<168x128xf32, #tpu.memory_space<vmem>>, vector<168x128xf32>
      %c0_12 = arith.constant 0 : index
      %c0_13 = arith.constant 0 : index
      %13 = vector.load %arg5[%c0_12, %c0_13] : memref<1x128xf32, #tpu.memory_space<vmem>>, vector<1x128xf32>
      %14 = vector.broadcast %13 : vector<1x128xf32> to vector<168x128xf32>
      %15 = arith.addf %12, %14 : vector<168x128xf32>
      %cst_14 = arith.constant 0.000000e+00 : f32
      %16 = vector.broadcast %cst_14 : f32 to vector<168x128xf32>
      %17 = arith.maximumf %15, %16 : vector<168x128xf32>
      %c0_15 = arith.constant 0 : index
      %c0_16 = arith.constant 0 : index
      %18 = vector.load %arg6[%c0_15, %c0_16] : memref<168x128xf32, #tpu.memory_space<vmem>>, vector<168x128xf32>
      tpu.vector_store %arg6[%c0_15, %c0_16], %17 {strides = array<i32>} : memref<168x128xf32, #tpu.memory_space<vmem>>, vector<168x128xf32>,
    } else {
    }
    return
  }
  func.func @transform_0(%arg0: i32, %arg1: i32, %arg2: i32) -> (i32, i32) {
    %c0_i32 = arith.constant 0 : i32
    return %arg0, %arg2 : i32, i32
  }
  func.func @transform_1(%arg0: i32, %arg1: i32, %arg2: i32) -> (i32, i32) {
    %c0_i32 = arith.constant 0 : i32
    return %arg2, %arg1 : i32, i32
  }
  func.func @transform_2(%arg0: i32, %arg1: i32, %arg2: i32) -> (i32, i32) {
    %c0_i32 = arith.constant 0 : i32
    %c0_i32_0 = arith.constant 0 : i32
    return %c0_i32, %arg1 : i32, i32
  }
  func.func @transform_3(%arg0: i32, %arg1: i32, %arg2: i32) -> (i32, i32) {
    %c0_i32 = arith.constant 0 : i32
    return %arg0, %arg1 : i32, i32
  }
}

module attributes {stable_mosaic.version = 11 : i64} {
  func.func @_conv_bn_relu_kernel(%arg0: i32, %arg1: i32, %arg2: i32, %arg3: memref<168x256xbf16, #tpu.memory_space<vmem>>, %arg4: memref<256x128xbf16, #tpu.memory_space<vmem>>, %arg5: memref<1x128xf32, #tpu.memory_space<vmem>>, %arg6: memref<168x128xf32, #tpu.memory_space<vmem>>, %arg7: memref<168x128xf32, #tpu.memory_space<vmem>>) attributes {dimension_semantics = [#tpu.dimension_semantics<parallel>, #tpu.dimension_semantics<parallel>, #tpu.dimension_semantics<arbitrary>], iteration_bounds = array<i64: 1, 2, 7>, scalar_prefetch = 0 : i64, scratch_operands = 1 : i64, tpu.core_type = #tpu.core_type<tc>, window_params = [{transform_indices = @transform_0, window_bounds = array<i64: 168, 256>}, {transform_indices = @transform_1, window_bounds = array<i64: 256, 128>}, {transform_indices = @transform_2, window_bounds = array<i64: 1, 128>}, {transform_indices = @transform_3, window_bounds = array<i64: 168, 128>}]} {
    %c0_i32 = arith.constant 0 : i32
    %0 = arith.cmpi eq, %arg2, %c0_i32 : i32
    %1 = arith.extui %0 : i1 to i32
    %c0_i32_0 = arith.constant 0 : i32
    %2 = arith.cmpi ne, %1, %c0_i32_0 : i32
    scf.if %2 {
      %cst_9 = arith.constant 0.000000e+00 : f32
      %12 = vector.broadcast %cst_9 : f32 to vector<168x128xf32>
      %c0_10 = arith.constant 0 : index
      %c0_11 = arith.constant 0 : index
      %13 = vector.load %arg7[%c0_10, %c0_11] : memref<168x128xf32, #tpu.memory_space<vmem>>, vector<168x128xf32>
      tpu.vector_store %arg7[%c0_10, %c0_11], %12 {strides = array<i32>} : memref<168x128xf32, #tpu.memory_space<vmem>>, vector<168x128xf32>,
    } else {
    }
    %c0 = arith.constant 0 : index
    %c0_1 = arith.constant 0 : index
    %3 = vector.load %arg7[%c0, %c0_1] : memref<168x128xf32, #tpu.memory_space<vmem>>, vector<168x128xf32>
    %c0_2 = arith.constant 0 : index
    %c0_3 = arith.constant 0 : index
    %4 = vector.load %arg3[%c0_2, %c0_3] : memref<168x256xbf16, #tpu.memory_space<vmem>>, vector<168x256xbf16>
    %c0_4 = arith.constant 0 : index
    %c0_5 = arith.constant 0 : index
    %5 = vector.load %arg4[%c0_4, %c0_5] : memref<256x128xbf16, #tpu.memory_space<vmem>>, vector<256x128xbf16>
    %cst = arith.constant dense<0.000000e+00> : vector<168x128xf32>
    %6 = tpu.matmul %4, %5, %cst {dimension_numbers = #tpu.dot_dimension_numbers<[1], [0], [0], [1], [0, 0, 1, 1], [], []>} : vector<168x256xbf16>, vector<256x128xbf16>, vector<168x128xf32> -> vector<168x128xf32>
    %7 = arith.addf %3, %6 : vector<168x128xf32>
    %c0_6 = arith.constant 0 : index
    %c0_7 = arith.constant 0 : index
    %8 = vector.load %arg7[%c0_6, %c0_7] : memref<168x128xf32, #tpu.memory_space<vmem>>, vector<168x128xf32>
    tpu.vector_store %arg7[%c0_6, %c0_7], %7 {strides = array<i32>} : memref<168x128xf32, #tpu.memory_space<vmem>>, vector<168x128xf32>,
    %c6_i32 = arith.constant 6 : i32
    %9 = arith.cmpi eq, %arg2, %c6_i32 : i32
    %10 = arith.extui %9 : i1 to i32
    %c0_i32_8 = arith.constant 0 : i32
    %11 = arith.cmpi ne, %10, %c0_i32_8 : i32
    scf.if %11 {
      %c0_9 = arith.constant 0 : index
      %c0_10 = arith.constant 0 : index
      %12 = vector.load %arg7[%c0_9, %c0_10] : memref<168x128xf32, #tpu.memory_space<vmem>>, vector<168x128xf32>
      %c0_11 = arith.constant 0 : index
      %c0_12 = arith.constant 0 : index
      %13 = vector.load %arg5[%c0_11, %c0_12] : memref<1x128xf32, #tpu.memory_space<vmem>>, vector<1x128xf32>
      %14 = vector.broadcast %13 : vector<1x128xf32> to vector<168x128xf32>
      %15 = arith.addf %12, %14 : vector<168x128xf32>
      %cst_13 = arith.constant 0.000000e+00 : f32
      %16 = vector.broadcast %cst_13 : f32 to vector<168x128xf32>
      %17 = arith.maximumf %15, %16 : vector<168x128xf32>
      %c0_14 = arith.constant 0 : index
      %c0_15 = arith.constant 0 : index
      %18 = vector.load %arg6[%c0_14, %c0_15] : memref<168x128xf32, #tpu.memory_space<vmem>>, vector<168x128xf32>
      tpu.vector_store %arg6[%c0_14, %c0_15], %17 {strides = array<i32>} : memref<168x128xf32, #tpu.memory_space<vmem>>, vector<168x128xf32>,
    } else {
    }
    return
  }
  func.func @transform_0(%arg0: i32, %arg1: i32, %arg2: i32) -> (i32, i32) {
    %c0_i32 = arith.constant 0 : i32
    return %arg0, %arg2 : i32, i32
  }
  func.func @transform_1(%arg0: i32, %arg1: i32, %arg2: i32) -> (i32, i32) {
    %c0_i32 = arith.constant 0 : i32
    return %arg2, %arg1 : i32, i32
  }
  func.func @transform_2(%arg0: i32, %arg1: i32, %arg2: i32) -> (i32, i32) {
    %c0_i32 = arith.constant 0 : i32
    %c0_i32_0 = arith.constant 0 : i32
    return %c0_i32, %arg1 : i32, i32
  }
  func.func @transform_3(%arg0: i32, %arg1: i32, %arg2: i32) -> (i32, i32) {
    %c0_i32 = arith.constant 0 : i32
    return %arg0, %arg1 : i32, i32
  }
}

module attributes {stable_mosaic.version = 11 : i64} {
  func.func @_conv_bn_relu_into_kernel(%arg0: i32, %arg1: i32, %arg2: i32, %arg3: memref<32x256xbf16, #tpu.memory_space<vmem>>, %arg4: memref<256x128xbf16, #tpu.memory_space<vmem>>, %arg5: memref<1x128xf32, #tpu.memory_space<vmem>>, %arg6: memref<32x896xf32, #tpu.memory_space<any>>, %arg7: memref<32x128xf32, #tpu.memory_space<vmem>>, %arg8: memref<32x128xf32, #tpu.memory_space<vmem>>) attributes {dimension_semantics = [#tpu.dimension_semantics<parallel>, #tpu.dimension_semantics<parallel>, #tpu.dimension_semantics<arbitrary>], iteration_bounds = array<i64: 1, 3, 9>, scalar_prefetch = 0 : i64, scratch_operands = 1 : i64, tpu.core_type = #tpu.core_type<tc>, window_params = [{transform_indices = @transform_0, window_bounds = array<i64: 32, 256>}, {transform_indices = @transform_1, window_bounds = array<i64: 256, 128>}, {transform_indices = @transform_2, window_bounds = array<i64: 1, 128>}, {}, {transform_indices = @transform_4, window_bounds = array<i64: 32, 128>}]} {
    %c0_i32 = arith.constant 0 : i32
    %0 = arith.cmpi eq, %arg2, %c0_i32 : i32
    %1 = arith.extui %0 : i1 to i32
    %c0_i32_0 = arith.constant 0 : i32
    %2 = arith.cmpi ne, %1, %c0_i32_0 : i32
    scf.if %2 {
      %cst_9 = arith.constant 0.000000e+00 : f32
      %12 = vector.broadcast %cst_9 : f32 to vector<32x128xf32>
      %c0_10 = arith.constant 0 : index
      %c0_11 = arith.constant 0 : index
      %13 = vector.load %arg8[%c0_10, %c0_11] : memref<32x128xf32, #tpu.memory_space<vmem>>, vector<32x128xf32>
      tpu.vector_store %arg8[%c0_10, %c0_11], %12 {strides = array<i32>} : memref<32x128xf32, #tpu.memory_space<vmem>>, vector<32x128xf32>,
    } else {
    }
    %c0 = arith.constant 0 : index
    %c0_1 = arith.constant 0 : index
    %3 = vector.load %arg8[%c0, %c0_1] : memref<32x128xf32, #tpu.memory_space<vmem>>, vector<32x128xf32>
    %c0_2 = arith.constant 0 : index
    %c0_3 = arith.constant 0 : index
    %4 = vector.load %arg3[%c0_2, %c0_3] : memref<32x256xbf16, #tpu.memory_space<vmem>>, vector<32x256xbf16>
    %c0_4 = arith.constant 0 : index
    %c0_5 = arith.constant 0 : index
    %5 = vector.load %arg4[%c0_4, %c0_5] : memref<256x128xbf16, #tpu.memory_space<vmem>>, vector<256x128xbf16>
    %cst = arith.constant dense<0.000000e+00> : vector<32x128xf32>
    %6 = tpu.matmul %4, %5, %cst {dimension_numbers = #tpu.dot_dimension_numbers<[1], [0], [0], [1], [0, 0, 1, 1], [], []>} : vector<32x256xbf16>, vector<256x128xbf16>, vector<32x128xf32> -> vector<32x128xf32>
    %7 = arith.addf %3, %6 : vector<32x128xf32>
    %c0_6 = arith.constant 0 : index
    %c0_7 = arith.constant 0 : index
    %8 = vector.load %arg8[%c0_6, %c0_7] : memref<32x128xf32, #tpu.memory_space<vmem>>, vector<32x128xf32>
    tpu.vector_store %arg8[%c0_6, %c0_7], %7 {strides = array<i32>} : memref<32x128xf32, #tpu.memory_space<vmem>>, vector<32x128xf32>,
    %c8_i32 = arith.constant 8 : i32
    %9 = arith.cmpi eq, %arg2, %c8_i32 : i32
    %10 = arith.extui %9 : i1 to i32
    %c0_i32_8 = arith.constant 0 : i32
    %11 = arith.cmpi ne, %10, %c0_i32_8 : i32
    scf.if %11 {
      %c0_9 = arith.constant 0 : index
      %c0_10 = arith.constant 0 : index
      %12 = vector.load %arg8[%c0_9, %c0_10] : memref<32x128xf32, #tpu.memory_space<vmem>>, vector<32x128xf32>
      %c0_11 = arith.constant 0 : index
      %c0_12 = arith.constant 0 : index
      %13 = vector.load %arg5[%c0_11, %c0_12] : memref<1x128xf32, #tpu.memory_space<vmem>>, vector<1x128xf32>
      %14 = vector.broadcast %13 : vector<1x128xf32> to vector<32x128xf32>
      %15 = arith.addf %12, %14 : vector<32x128xf32>
      %cst_13 = arith.constant 0.000000e+00 : f32
      %16 = vector.broadcast %cst_13 : f32 to vector<32x128xf32>
      %17 = arith.maximumf %15, %16 : vector<32x128xf32>
      %c0_14 = arith.constant 0 : index
      %c0_15 = arith.constant 0 : index
      %18 = vector.load %arg7[%c0_14, %c0_15] : memref<32x128xf32, #tpu.memory_space<vmem>>, vector<32x128xf32>
      tpu.vector_store %arg7[%c0_14, %c0_15], %17 {strides = array<i32>} : memref<32x128xf32, #tpu.memory_space<vmem>>, vector<32x128xf32>,
    } else {
    }
    return
  }
  func.func @transform_0(%arg0: i32, %arg1: i32, %arg2: i32) -> (i32, i32) {
    %c0_i32 = arith.constant 0 : i32
    return %arg0, %arg2 : i32, i32
  }
  func.func @transform_1(%arg0: i32, %arg1: i32, %arg2: i32) -> (i32, i32) {
    %c0_i32 = arith.constant 0 : i32
    return %arg2, %arg1 : i32, i32
  }
  func.func @transform_2(%arg0: i32, %arg1: i32, %arg2: i32) -> (i32, i32) {
    %c0_i32 = arith.constant 0 : i32
    %c0_i32_0 = arith.constant 0 : i32
    return %c0_i32, %arg1 : i32, i32
  }
  func.func @transform_4(%arg0: i32, %arg1: i32, %arg2: i32) -> (i32, i32) {
    %c0_i32 = arith.constant 0 : i32
    %0 = arith.addi %arg1, %c0_i32 : i32
    %c0_i32_0 = arith.constant 0 : i32
    return %arg0, %0 : i32, i32
  }
}

module attributes {stable_mosaic.version = 11 : i64} {
  func.func @_conv_bn_relu_into_kernel(%arg0: i32, %arg1: i32, %arg2: i32, %arg3: memref<32x256xbf16, #tpu.memory_space<vmem>>, %arg4: memref<256x128xbf16, #tpu.memory_space<vmem>>, %arg5: memref<1x128xf32, #tpu.memory_space<vmem>>, %arg6: memref<32x896xf32, #tpu.memory_space<any>>, %arg7: memref<32x128xf32, #tpu.memory_space<vmem>>, %arg8: memref<32x128xf32, #tpu.memory_space<vmem>>) attributes {dimension_semantics = [#tpu.dimension_semantics<parallel>, #tpu.dimension_semantics<parallel>, #tpu.dimension_semantics<arbitrary>], iteration_bounds = array<i64: 1, 2, 7>, scalar_prefetch = 0 : i64, scratch_operands = 1 : i64, tpu.core_type = #tpu.core_type<tc>, window_params = [{transform_indices = @transform_0, window_bounds = array<i64: 32, 256>}, {transform_indices = @transform_1, window_bounds = array<i64: 256, 128>}, {transform_indices = @transform_2, window_bounds = array<i64: 1, 128>}, {}, {transform_indices = @transform_4, window_bounds = array<i64: 32, 128>}]} {
    %c0_i32 = arith.constant 0 : i32
    %0 = arith.cmpi eq, %arg2, %c0_i32 : i32
    %1 = arith.extui %0 : i1 to i32
    %c0_i32_0 = arith.constant 0 : i32
    %2 = arith.cmpi ne, %1, %c0_i32_0 : i32
    scf.if %2 {
      %cst_9 = arith.constant 0.000000e+00 : f32
      %12 = vector.broadcast %cst_9 : f32 to vector<32x128xf32>
      %c0_10 = arith.constant 0 : index
      %c0_11 = arith.constant 0 : index
      %13 = vector.load %arg8[%c0_10, %c0_11] : memref<32x128xf32, #tpu.memory_space<vmem>>, vector<32x128xf32>
      tpu.vector_store %arg8[%c0_10, %c0_11], %12 {strides = array<i32>} : memref<32x128xf32, #tpu.memory_space<vmem>>, vector<32x128xf32>,
    } else {
    }
    %c0 = arith.constant 0 : index
    %c0_1 = arith.constant 0 : index
    %3 = vector.load %arg8[%c0, %c0_1] : memref<32x128xf32, #tpu.memory_space<vmem>>, vector<32x128xf32>
    %c0_2 = arith.constant 0 : index
    %c0_3 = arith.constant 0 : index
    %4 = vector.load %arg3[%c0_2, %c0_3] : memref<32x256xbf16, #tpu.memory_space<vmem>>, vector<32x256xbf16>
    %c0_4 = arith.constant 0 : index
    %c0_5 = arith.constant 0 : index
    %5 = vector.load %arg4[%c0_4, %c0_5] : memref<256x128xbf16, #tpu.memory_space<vmem>>, vector<256x128xbf16>
    %cst = arith.constant dense<0.000000e+00> : vector<32x128xf32>
    %6 = tpu.matmul %4, %5, %cst {dimension_numbers = #tpu.dot_dimension_numbers<[1], [0], [0], [1], [0, 0, 1, 1], [], []>} : vector<32x256xbf16>, vector<256x128xbf16>, vector<32x128xf32> -> vector<32x128xf32>
    %7 = arith.addf %3, %6 : vector<32x128xf32>
    %c0_6 = arith.constant 0 : index
    %c0_7 = arith.constant 0 : index
    %8 = vector.load %arg8[%c0_6, %c0_7] : memref<32x128xf32, #tpu.memory_space<vmem>>, vector<32x128xf32>
    tpu.vector_store %arg8[%c0_6, %c0_7], %7 {strides = array<i32>} : memref<32x128xf32, #tpu.memory_space<vmem>>, vector<32x128xf32>,
    %c6_i32 = arith.constant 6 : i32
    %9 = arith.cmpi eq, %arg2, %c6_i32 : i32
    %10 = arith.extui %9 : i1 to i32
    %c0_i32_8 = arith.constant 0 : i32
    %11 = arith.cmpi ne, %10, %c0_i32_8 : i32
    scf.if %11 {
      %c0_9 = arith.constant 0 : index
      %c0_10 = arith.constant 0 : index
      %12 = vector.load %arg8[%c0_9, %c0_10] : memref<32x128xf32, #tpu.memory_space<vmem>>, vector<32x128xf32>
      %c0_11 = arith.constant 0 : index
      %c0_12 = arith.constant 0 : index
      %13 = vector.load %arg5[%c0_11, %c0_12] : memref<1x128xf32, #tpu.memory_space<vmem>>, vector<1x128xf32>
      %14 = vector.broadcast %13 : vector<1x128xf32> to vector<32x128xf32>
      %15 = arith.addf %12, %14 : vector<32x128xf32>
      %cst_13 = arith.constant 0.000000e+00 : f32
      %16 = vector.broadcast %cst_13 : f32 to vector<32x128xf32>
      %17 = arith.maximumf %15, %16 : vector<32x128xf32>
      %c0_14 = arith.constant 0 : index
      %c0_15 = arith.constant 0 : index
      %18 = vector.load %arg7[%c0_14, %c0_15] : memref<32x128xf32, #tpu.memory_space<vmem>>, vector<32x128xf32>
      tpu.vector_store %arg7[%c0_14, %c0_15], %17 {strides = array<i32>} : memref<32x128xf32, #tpu.memory_space<vmem>>, vector<32x128xf32>,
    } else {
    }
    return
  }
  func.func @transform_0(%arg0: i32, %arg1: i32, %arg2: i32) -> (i32, i32) {
    %c0_i32 = arith.constant 0 : i32
    return %arg0, %arg2 : i32, i32
  }
  func.func @transform_1(%arg0: i32, %arg1: i32, %arg2: i32) -> (i32, i32) {
    %c0_i32 = arith.constant 0 : i32
    return %arg2, %arg1 : i32, i32
  }
  func.func @transform_2(%arg0: i32, %arg1: i32, %arg2: i32) -> (i32, i32) {
    %c0_i32 = arith.constant 0 : i32
    %c0_i32_0 = arith.constant 0 : i32
    return %c0_i32, %arg1 : i32, i32
  }
  func.func @transform_4(%arg0: i32, %arg1: i32, %arg2: i32) -> (i32, i32) {
    %c3_i32 = arith.constant 3 : i32
    %0 = arith.addi %arg1, %c3_i32 : i32
    %c0_i32 = arith.constant 0 : i32
    return %arg0, %0 : i32, i32
  }
}

module attributes {stable_mosaic.version = 11 : i64} {
  func.func @_max3_into_kernel(%arg0: i32, %arg1: i32, %arg2: memref<32x128xf32, #tpu.memory_space<vmem>>, %arg3: memref<32x128xf32, #tpu.memory_space<vmem>>, %arg4: memref<32x128xf32, #tpu.memory_space<vmem>>, %arg5: memref<32x896xf32, #tpu.memory_space<any>>, %arg6: memref<32x128xf32, #tpu.memory_space<vmem>>) attributes {dimension_semantics = [#tpu.dimension_semantics<parallel>, #tpu.dimension_semantics<parallel>], iteration_bounds = array<i64: 1, 2>, scalar_prefetch = 0 : i64, scratch_operands = 0 : i64, tpu.core_type = #tpu.core_type<tc>, window_params = [{transform_indices = @transform_0, window_bounds = array<i64: 32, 128>}, {transform_indices = @transform_1, window_bounds = array<i64: 32, 128>}, {transform_indices = @transform_2, window_bounds = array<i64: 32, 128>}, {}, {transform_indices = @transform_4, window_bounds = array<i64: 32, 128>}]} {
    %c0 = arith.constant 0 : index
    %c0_0 = arith.constant 0 : index
    %0 = vector.load %arg2[%c0, %c0_0] : memref<32x128xf32, #tpu.memory_space<vmem>>, vector<32x128xf32>
    %c0_1 = arith.constant 0 : index
    %c0_2 = arith.constant 0 : index
    %1 = vector.load %arg3[%c0_1, %c0_2] : memref<32x128xf32, #tpu.memory_space<vmem>>, vector<32x128xf32>
    %2 = arith.maximumf %0, %1 : vector<32x128xf32>
    %c0_3 = arith.constant 0 : index
    %c0_4 = arith.constant 0 : index
    %3 = vector.load %arg4[%c0_3, %c0_4] : memref<32x128xf32, #tpu.memory_space<vmem>>, vector<32x128xf32>
    %4 = arith.maximumf %2, %3 : vector<32x128xf32>
    %c0_5 = arith.constant 0 : index
    %c0_6 = arith.constant 0 : index
    %5 = vector.load %arg6[%c0_5, %c0_6] : memref<32x128xf32, #tpu.memory_space<vmem>>, vector<32x128xf32>
    tpu.vector_store %arg6[%c0_5, %c0_6], %4 {strides = array<i32>} : memref<32x128xf32, #tpu.memory_space<vmem>>, vector<32x128xf32>,
    return
  }
  func.func @transform_0(%arg0: i32, %arg1: i32) -> (i32, i32) {
    %c0_i32 = arith.constant 0 : i32
    return %arg0, %arg1 : i32, i32
  }
  func.func @transform_1(%arg0: i32, %arg1: i32) -> (i32, i32) {
    %c0_i32 = arith.constant 0 : i32
    return %arg0, %arg1 : i32, i32
  }
  func.func @transform_2(%arg0: i32, %arg1: i32) -> (i32, i32) {
    %c0_i32 = arith.constant 0 : i32
    return %arg0, %arg1 : i32, i32
  }
  func.func @transform_4(%arg0: i32, %arg1: i32) -> (i32, i32) {
    %c5_i32 = arith.constant 5 : i32
    %0 = arith.addi %arg1, %c5_i32 : i32
    %c0_i32 = arith.constant 0 : i32
    return %arg0, %0 : i32, i32
  }
}

</mosaic_0001>

<bundles_post_ra>
// kernel: mixed_6a_forward.6
= control target key start
LH: loop header
LB: loop body
LE: loop exit
PB: predicated region body
PF: predicated region fallthrough
CT: control target
= control target key end

     0   :  { %s1496_s12 = smov 0   ;;  %s1498_s13 = smov 0   ;;  %s1816_s0 = inlined_call_operand.vmem [shape: bf16[168,256], index: 0, kind: input, shape index: {}]   ;;  %s1817_s1 = inlined_call_operand.vmem [shape: bf16[256,256], index: 1, kind: input, shape index: {}]   ;;  %s1818_s2 = inlined_call_operand.vmem [shape: f32[1,256], index: 2, kind: input, shape index: {}]   ;;  %s1819_s3 = inlined_call_operand.vmem [shape: f32[168,256], index: 3, kind: output, shape index: {}]  }
   0x1   :  { %s1500_s14 = smov 0   ;;  %s1502_s15 = smov 0  }
   0x2   :  { %s1504_s16 = smov 0  }
   0x3 LB: > { %s28_s17 = sadd.s32 1, %s1470_s15  ;;  %s1198_s18 = sadd.s32 4294967295, %s1474_s16   ;;  %s1474_s16 = sphi %s1504_s16, %s13_s16   ;;  %s1470_s15 = sphi %s1502_s15, %s1824_s15   ;;  %s1466_s14 = sphi %s1500_s14, %s1823_s14   ;;  %s1462_s13 = sphi %s1498_s13, %s1822_s13   ;;  %s1458_s12 = sphi %s1496_s12, %s1821_s12  }
   0x4   : > { %p30_p0 = scmp.ge.s32.totalorder %s28_s17, 2  ;;  %p76_p1 = scmp.ne.s32.totalorder %s1462_s13, %s1458_s12 }
   0x5   : > { %p77_p2 = scmp.eq.s32.totalorder %s1474_s16, 0  ;;  %p134_p4 = scmp.eq.s32.totalorder %s1198_s18, 1 }
   0x6   : > { %s1826_s17 = smov (%p30_p0, %s28_s17), 0  ;;  %s69_s20 = sadd.s32 1, %s1462_s13 }
   0x7   : > { %p78_p3 = por %p77_p2, %p76_p1  ;;  %s65_s19 = ssub.s32 %s1470_s15, %s1826_s17 }
   0x8   : > { %p67_p5 = scmp.eq.s32.totalorder %s65_s19, 0  ;;  %p1531_p6 = por %p134_p4, %p76_p1 }
   0x9   : > { %p1202_p7 = scmp.ge.s32.totalorder %s1474_s16, 2 }
   0xa   : > { %s1536_s22 = scalar_select %p67_p5, %s1462_s13, %s69_s20  }
   0xb   : > { %171 = sbr.rel (%p1202_p7) target bundleno = 43 (0x2b), region = 20 }
  0x12   : > { %174 = sbr.rel (!%p78_p3) target bundleno = 43 (0x2b), region = 24  ;;  %s176_s23 = sand.u32 (%p78_p3), 1, %s1462_s13  }
  0x13   : > { %s1204_s24 = sshll.u32 (%p78_p3), %s1470_s15, 2  ;;  %s1203_s25 = sshll.u32 (%p78_p3), %s176_s23, 7 }
  0x14   : > { %s1544_s28 = scalar_lea.vmem (%p78_p3), %s1817_s1, %s1204_s24  ;;  %s1548_s29 = scalar_lea.vmem (%p78_p3), [#allocation3], %s1203_s25 }
  0x15   : > { %v199_v0 = vld [vmem:[%s1544_s28] sm:$0xf] (%p78_p3)  ;;  %v201_v1 = vld [vmem:[%s1544_s28 + $0x8] sm:$0xf] (%p78_p3)  ;;  %v203_v2 = vld [vmem:[%s1544_s28 + $0x10] sm:$0xf] (%p78_p3) }
  0x16   : > { %200 = vst [vmem:[%s1548_s29] sm:$0xf] (%p78_p3), %v199_v0  ;;  %202 = vst [vmem:[%s1548_s29 + $0x4] sm:$0xf] (%p78_p3), %v201_v1  ;;  %v205_v3 = vld [vmem:[%s1544_s28 + $0x18] sm:$0xf] (%p78_p3) }
  0x17   : > { %v207_v4 = vld [vmem:[%s1544_s28 + $0x20] sm:$0xf] (%p78_p3)  ;;  %204 = vst [vmem:[%s1548_s29 + $0x8] sm:$0xf] (%p78_p3), %v203_v2  ;;  %206 = vst [vmem:[%s1548_s29 + $0xc] sm:$0xf] (%p78_p3), %v205_v3 }
  0x18   : > { %208 = vst [vmem:[%s1548_s29 + $0x10] sm:$0xf] (%p78_p3), %v207_v4  ;;  %v209_v5 = vld [vmem:[%s1544_s28 + $0x28] sm:$0xf] (%p78_p3)  ;;  %v211_v6 = vld [vmem:[%s1544_s28 + $0x30] sm:$0xf] (%p78_p3) }
  0x19   : > { %v213_v7 = vld [vmem:[%s1544_s28 + $0x38] sm:$0xf]  ;;  %210 = vst [vmem:[%s1548_s29 + $0x14] sm:$0xf] %v209_v5  ;;  %212 = vst [vmem:[%s1548_s29 + $0x18] sm:$0xf] %v211_v6 }
  0x1a   : > { %214 = vst [vmem:[%s1548_s29 + $0x1c] sm:$0xf] %v213_v7  ;;  %v215_v8 = vld [vmem:[%s1544_s28 + $0x40] sm:$0xf]  ;;  %v217_v9 = vld [vmem:[%s1544_s28 + $0x48] sm:$0xf] }
  0x1b   : > { %v219_v10 = vld [vmem:[%s1544_s28 + $0x50] sm:$0xf]  ;;  %216 = vst [vmem:[%s1548_s29 + $0x20] sm:$0xf] %v215_v8  ;;  %218 = vst [vmem:[%s1548_s29 + $0x24] sm:$0xf] %v217_v9 }
  0x1c   : > { %220 = vst [vmem:[%s1548_s29 + $0x28] sm:$0xf] %v219_v10  ;;  %v221_v11 = vld [vmem:[%s1544_s28 + $0x58] sm:$0xf]  ;;  %v223_v12 = vld [vmem:[%s1544_s28 + $0x60] sm:$0xf] }
  0x1d   : > { %v225_v13 = vld [vmem:[%s1544_s28 + $0x68] sm:$0xf]  ;;  %222 = vst [vmem:[%s1548_s29 + $0x2c] sm:$0xf] %v221_v11  ;;  %224 = vst [vmem:[%s1548_s29 + $0x30] sm:$0xf] %v223_v12 }
  0x1e   : > { %226 = vst [vmem:[%s1548_s29 + $0x34] sm:$0xf] %v225_v13  ;;  %v227_v14 = vld [vmem:[%s1544_s28 + $0x70] sm:$0xf]  ;;  %v229_v15 = vld [vmem:[%s1544_s28 + $0x78] sm:$0xf] }
  0x1f   : > { %v231_v16 = vld [vmem:[%s1544_s28 + $0x80] sm:$0xf]  ;;  %228 = vst [vmem:[%s1548_s29 + $0x38] sm:$0xf] %v227_v14  ;;  %230 = vst [vmem:[%s1548_s29 + $0x3c] sm:$0xf] %v229_v15 }
  0x20   : > { %232 = vst [vmem:[%s1548_s29 + $0x40] sm:$0xf] %v231_v16  ;;  %v233_v17 = vld [vmem:[%s1544_s28 + $0x88] sm:$0xf]  ;;  %v235_v18 = vld [vmem:[%s1544_s28 + $0x90] sm:$0xf] }
  0x21   : > { %v237_v19 = vld [vmem:[%s1544_s28 + $0x98] sm:$0xf]  ;;  %234 = vst [vmem:[%s1548_s29 + $0x44] sm:$0xf] %v233_v17  ;;  %236 = vst [vmem:[%s1548_s29 + $0x48] sm:$0xf] %v235_v18 }
  0x22   : > { %238 = vst [vmem:[%s1548_s29 + $0x4c] sm:$0xf] %v237_v19  ;;  %v239_v20 = vld [vmem:[%s1544_s28 + $0xa0] sm:$0xf]  ;;  %v241_v21 = vld [vmem:[%s1544_s28 + $0xa8] sm:$0xf] }
  0x23   : > { %v243_v22 = vld [vmem:[%s1544_s28 + $0xb0] sm:$0xf]  ;;  %240 = vst [vmem:[%s1548_s29 + $0x50] sm:$0xf] %v239_v20  ;;  %242 = vst [vmem:[%s1548_s29 + $0x54] sm:$0xf] %v241_v21 }
  0x24   : > { %244 = vst [vmem:[%s1548_s29 + $0x58] sm:$0xf] %v243_v22  ;;  %v245_v23 = vld [vmem:[%s1544_s28 + $0xb8] sm:$0xf]  ;;  %v247_v24 = vld [vmem:[%s1544_s28 + $0xc0] sm:$0xf] }
  0x25   : > { %v249_v25 = vld [vmem:[%s1544_s28 + $0xc8] sm:$0xf]  ;;  %246 = vst [vmem:[%s1548_s29 + $0x5c] sm:$0xf] %v245_v23  ;;  %248 = vst [vmem:[%s1548_s29 + $0x60] sm:$0xf] %v247_v24 }
  0x26   : > { %250 = vst [vmem:[%s1548_s29 + $0x64] sm:$0xf] %v249_v25  ;;  %v251_v26 = vld [vmem:[%s1544_s28 + $0xd0] sm:$0xf]  ;;  %v253_v27 = vld [vmem:[%s1544_s28 + $0xd8] sm:$0xf] }
  0x27   : > { %v255_v28 = vld [vmem:[%s1544_s28 + $0xe0] sm:$0xf]  ;;  %252 = vst [vmem:[%s1548_s29 + $0x68] sm:$0xf] %v251_v26  ;;  %254 = vst [vmem:[%s1548_s29 + $0x6c] sm:$0xf] %v253_v27 }
  0x28   : > { %256 = vst [vmem:[%s1548_s29 + $0x70] sm:$0xf] %v255_v28  ;;  %v257_v29 = vld [vmem:[%s1544_s28 + $0xe8] sm:$0xf]  ;;  %v259_v30 = vld [vmem:[%s1544_s28 + $0xf0] sm:$0xf] }
  0x29   : > { %v261_v31 = vld [vmem:[%s1544_s28 + $0xf8] sm:$0xf]  ;;  %258 = vst [vmem:[%s1548_s29 + $0x74] sm:$0xf] %v257_v29  ;;  %260 = vst [vmem:[%s1548_s29 + $0x78] sm:$0xf] %v259_v30 }
  0x2a   : > { %262 = vst [vmem:[%s1548_s29 + $0x7c] sm:$0xf] %v261_v31 }
  0x2b PF: > { %p1205_p8 = scmp.ge.s32.totalorder %s1474_s16, 1  ;;  %p354_p9 = scmp.lt.s32.totalorder %s1474_s16, 3 }
  0x2d   : > { %p355_p10 = pnand %p1205_p8, %p354_p9 }
  0x2e   : > { %s361_s30 = sand.u32 (!%p355_p10), 1, %s1458_s12   ;;  %v1406_v32 = vld [vmem:[%s1816_s0 + $0x4] ss:$8 sps:$4 sm:$0xff] (!%p355_p10)   ;;  %v1404_v50 = vld [vmem:[%s1816_s0] ss:$8 sps:$4 sm:$0xff] (!%p355_p10)   ;;  %p409_p11 = scmp.lt.s32.totalorder (!%p355_p10), %s1466_s14, 1 }
  0x2f   : > { %358 = sbr.rel (%p355_p10) target bundleno = 352 (0x160), region = 69  ;;  %s1206_s4 = sshll.u32 (!%p355_p10), %s361_s30, 7  ;;  %v1409_v33 = vld [vmem:[%s1816_s0 + $0x64] ss:$8 sps:$4 sm:$0xff] (!%p355_p10)   ;;  %748 = vmatprep.mubr.bf16.mxu0 (!%p355_p10), %v1406_v32  ;;  %v1407_v51 = vld [vmem:[%s1816_s0 + $0x60] ss:$8 sps:$4 sm:$0xff] (!%p355_p10)  }
  0x30   : > { %s1623_s9 = scalar_lea.vmem (!%p355_p10), [#allocation3], %s1206_s4  ;;  %796 = vmatprep.mubr.bf16.mxu1 (!%p355_p10), %v1409_v33  ;;  %v1410_v52 = vld [vmem:[%s1816_s0 + $0x14] ss:$8 sps:$4 sm:$0xff] (!%p355_p10)   ;;  %v1412_v54 = vld [vmem:[%s1816_s0 + $0x10] ss:$8 sps:$4 sm:$0xff] (!%p355_p10)   ;;  %v480_v62 = vld [vmem:[%s1816_s0 + $0xa0] sm:$0xff] (!%p355_p10) }
  0x31   : > { %v1388_v34 = vld [vmem:[%s1623_s9 + $0x40] sm:$0xff] (!%p355_p10)   ;;  %v1390_v36 = vld [vmem:[%s1623_s9 + $0x48] sm:$0xff] (!%p355_p10)   ;;  %v1392_v38 = vld [vmem:[%s1623_s9 + $0x50] sm:$0xff] (!%p355_p10)   ;;  %v1228_v2 = vcombine.high (!%p355_p10), %v480_v62, %v480_v62  ;;  %v1227_v4 = vcombine.low (!%p355_p10), %v480_v62, %v480_v62  ;;  %s1347_s24 = smul.u32 (!%p355_p10), 168, %s361_s30 }
  0x32   : > { %v1389_v35 = vld [vmem:[%s1623_s9] sm:$0xff] (!%p355_p10)   ;;  %1249 = vmatprep.subr.bf16.mxu0 (!%p355_p10), %v1388_v34  ;;  %1331 = vmatprep.subr.bf16.mxu1 (!%p355_p10), %v1388_v34  ;;  %v1391_v37 = vld [vmem:[%s1623_s9 + $0x8] sm:$0xff] (!%p355_p10)   ;;  %v1393_v39 = vld [vmem:[%s1623_s9 + $0x10] sm:$0xff] (!%p355_p10)  }
  0x33   : > { %1250 = vmatpush3.bf16.msra.mxu0 (!%p355_p10), %v1389_v35  ;;  %1339 = vmatpush3.bf16.msra.mxu1 (!%p355_p10), %v1389_v35  ;;  %v1394_v40 = vld [vmem:[%s1623_s9 + $0x58] sm:$0xff] (!%p355_p10)   ;;  %v1396_v42 = vld [vmem:[%s1623_s9 + $0x60] sm:$0xff] (!%p355_p10)   ;;  %v1398_v44 = vld [vmem:[%s1623_s9 + $0x68] sm:$0xff] (!%p355_p10)   ;;  %s1711_s12 = scalar_lea.vmem (!%p355_p10), [#allocation4], %s1347_s24 }
  0x34   : > { %1251 = vmatprep.subr.bf16.mxu0 (!%p355_p10), %v1390_v36  ;;  %1332 = vmatprep.subr.bf16.mxu1 (!%p355_p10), %v1390_v36  ;;  %v1395_v41 = vld [vmem:[%s1623_s9 + $0x18] sm:$0xff] (!%p355_p10)   ;;  %v1397_v43 = vld [vmem:[%s1623_s9 + $0x20] sm:$0xff] (!%p355_p10)   ;;  %v1399_v45 = vld [vmem:[%s1623_s9 + $0x28] sm:$0xff] (!%p355_p10)  }
  0x35   : > { %v1400_v46 = vld [vmem:[%s1623_s9 + $0x70] sm:$0xff] (!%p355_p10)   ;;  %v1402_v48 = vld [vmem:[%s1623_s9 + $0x78] sm:$0xff] (!%p355_p10)   ;;  %v1415_v56 = vld [vmem:[%s1816_s0 + $0x24] ss:$8 sps:$4 sm:$0xff] (!%p355_p10)  }
  0x36   : > { %v1401_v47 = vld [vmem:[%s1623_s9 + $0x30] sm:$0xff]   ;;  %v1403_v49 = vld [vmem:[%s1623_s9 + $0x38] sm:$0xff]   ;;  %v1419_v57 = vld [vmem:[%s1816_s0 + $0x84] ss:$8 sps:$4 sm:$0xff]   ;;  %s410_s18 = scalar_select %p409_p11, %s1466_s14, 1 }
  0x37   : > { %1252 = vmatpush3.bf16.msra.mxu0 %v1391_v37  ;;  %1340 = vmatpush3.bf16.msra.mxu1 %v1391_v37  ;;  %v1413_v53 = vld [vmem:[%s1816_s0 + $0x74] ss:$8 sps:$4 sm:$0xff]   ;;  %v1417_v55 = vld [vmem:[%s1816_s0 + $0x70] ss:$8 sps:$4 sm:$0xff]   ;;  %v1418_v58 = vld [vmem:[%s1816_s0 + $0x20] ss:$8 sps:$4 sm:$0xff]  }
  0x38   : > { %1253 = vmatprep.subr.bf16.mxu0 %v1392_v38  ;;  %1333 = vmatprep.subr.bf16.mxu1 %v1392_v38  ;;  %v1423_v59 = vld [vmem:[%s1816_s0 + $0x80] ss:$8 sps:$4 sm:$0xff]   ;;  %v1421_v60 = vld [vmem:[%s1816_s0 + $0x34] ss:$8 sps:$4 sm:$0xff]   ;;  %v1424_v63 = vld [vmem:[%s1816_s0 + $0x30] ss:$8 sps:$4 sm:$0xff]   ;;  %s411_s23 = scalar_lea.vmem %s1818_s2, %s410_s18 }
  0x39   : > { %v1425_v61 = vld [vmem:[%s1816_s0 + $0x94] ss:$8 sps:$4 sm:$0xff]   ;;  %v1429_v0 = vld [vmem:[%s1816_s0 + $0x90] ss:$8 sps:$4 sm:$0xff]   ;;  %v1427_v1 = vld [vmem:[%s1816_s0 + $0x44] ss:$8 sps:$4 sm:$0xff]  }
  0x3a   : > { %v1430_v3 = vld [vmem:[%s1816_s0 + $0x40] ss:$8 sps:$4 sm:$0xff]   ;;  %v1432_v5 = vld [vmem:[%s1816_s0 + $0x54] ss:$8 sps:$4 sm:$0xff]   ;;  %v1435_v6 = vld [vmem:[%s1816_s0 + $0x50] ss:$8 sps:$4 sm:$0xff]  }
  0x3b   : > { %1254 = vmatpush3.bf16.msra.mxu0 %v1393_v39  ;;  %1341 = vmatpush3.bf16.msra.mxu1 %v1393_v39  ;;  %v1705_v10 = vld [vmem:[%s411_s23] ss:$0 sm:$0xff]  ;;  %s1246_s30 = sshll.u32 (%p1531_p6), %s1466_s14, 3 }
  0x3c   : > { %1255 = vmatprep.subr.bf16.mxu0 %v1394_v40  ;;  %1334 = vmatprep.subr.bf16.mxu1 %v1394_v40  ;;  %s1760_s27 = scalar_lea.vmem (%p1531_p6), %s1819_s3, %s1246_s30 }
  0x3f   : > { %1256 = vmatpush3.bf16.msra.mxu0 %v1395_v41  ;;  %1342 = vmatpush3.bf16.msra.mxu1 %v1395_v41 }
  0x40   : > { %1257 = vmatprep.subr.bf16.mxu0 %v1396_v42  ;;  %1335 = vmatprep.subr.bf16.mxu1 %v1396_v42 }
  0x43   : > { %1258 = vmatpush3.bf16.msra.mxu0 %v1397_v43  ;;  %1343 = vmatpush3.bf16.msra.mxu1 %v1397_v43 }
  0x44   : > { %1259 = vmatprep.subr.bf16.mxu0 %v1398_v44  ;;  %1336 = vmatprep.subr.bf16.mxu1 %v1398_v44 }
  0x47   : > { %1260 = vmatpush3.bf16.msra.mxu0 %v1399_v45  ;;  %1344 = vmatpush3.bf16.msra.mxu1 %v1399_v45 }
  0x48   : > { %1261 = vmatprep.subr.bf16.mxu0 %v1400_v46  ;;  %1337 = vmatprep.subr.bf16.mxu1 %v1400_v46 }
  0x4b   : > { %1262 = vmatpush3.bf16.msra.mxu0 %v1401_v47  ;;  %1345 = vmatpush3.bf16.msra.mxu1 %v1401_v47 }
  0x4c   : > { %1263 = vmatprep.subr.bf16.mxu0 %v1402_v48  ;;  %1338 = vmatprep.subr.bf16.mxu1 %v1402_v48 }
  0x4f   : > { %1264 = vmatpush3.bf16.msra.mxu0 %v1403_v49  ;;  %1346 = vmatpush3.bf16.msra.mxu1 %v1403_v49 }
  0x52   : > { %749 = vmatmul.mubr.bf16.vlgmr.msra.gmra.mrb[0].mxu0 %v1404_v50  ;;  %797 = vmatmul.mubr.bf16.vlgmr.msra.gmra.mrb[0].mxu1 %v1407_v51 }
  0x53   : > { %756 = vmatprep.mubr.bf16.mxu0 %v1410_v52  ;;  %804 = vmatprep.mubr.bf16.mxu1 %v1413_v53 }
  0x5a   : > { %757 = vmatmul.mubr.bf16.gmra.mrb[4].mxu0 %v1412_v54  ;;  %805 = vmatmul.mubr.bf16.gmra.mrb[4].mxu1 %v1417_v55 }
  0x5b   : > { %764 = vmatprep.mubr.bf16.mxu0 %v1415_v56  ;;  %812 = vmatprep.mubr.bf16.mxu1 %v1419_v57 }
  0x62   : > { %765 = vmatmul.mubr.bf16.gmra.mrb[8].mxu0 %v1418_v58  ;;  %813 = vmatmul.mubr.bf16.gmra.mrb[8].mxu1 %v1423_v59 }
  0x63   : > { %772 = vmatprep.mubr.bf16.mxu0 %v1421_v60  ;;  %820 = vmatprep.mubr.bf16.mxu1 %v1425_v61 }
  0x6a   : > { %773 = vmatmul.mubr.bf16.gmra.mrb[12].mxu0 %v1424_v63  ;;  %821 = vmatmul.mubr.bf16.gmra.mrb[12].mxu1 %v1429_v0 }
  0x6b   : > { %780 = vmatprep.mubr.bf16.mxu0 %v1427_v1  ;;  %828 = vmatprep.mubr.bf16.mxu1 %v1228_v2 }
  0x72   : > { %781 = vmatmul.mubr.bf16.gmra.mrb[16].mxu0 %v1430_v3  ;;  %829 = vmatmul.mubr.bf16.gmra.mrb[16].mxu1 %v1227_v4 }
  0x73   : > { %788 = vmatprep.mubr.bf16.mxu0 %v1432_v5 }
  0x7a   : > { %789 = vmatmul.mubr.bf16.gmra.mrb[20].mxu0 %v1435_v6 }
 0x125   : > { %v1265_v7 = vpop.f32.mrb[0].mxu0  ;;  %v1301_v8 = vpop.f32.mrb[0].mxu1 }
 0x126   : > { %v1266_v9 = vpop.f32.mrb[1].mxu0  ;;  %v1302_v11 = vpop.f32.mrb[1].mxu1 }
 0x127   : > { %v1267_v12 = vadd.f32 %v1266_v9, %v1265_v7  ;;  %v1268_v13 = vpop.f32.mrb[2].mxu0  ;;  %v1303_v14 = vadd.f32 %v1302_v11, %v1301_v8  ;;  %v1304_v15 = vpop.f32.mrb[2].mxu1 }
 0x128   : > { %v1269_v16 = vpop.f32.mrb[3].mxu0  ;;  %v1305_v17 = vpop.f32.mrb[3].mxu1 }
 0x129   : > { %v909_v18 = vadd.f32 %v1267_v12, %v1705_v10  ;;  %v1270_v19 = vadd.f32 %v1269_v16, %v1268_v13  ;;  %v921_v20 = vadd.f32 %v1303_v14, %v1705_v10  ;;  %v1306_v21 = vadd.f32 %v1305_v17, %v1304_v15 }
 0x12b   : > { %v930_v22 = vmax.f32 %v909_v18, 0.0  ;;  %v910_v23 = vadd.f32 %v1270_v19, %v1705_v10  ;;  %v942_v24 = vmax.f32 %v921_v20, 0.0  ;;  %v922_v25 = vadd.f32 %v1306_v21, %v1705_v10 }
 0x12d   : > { %951 = vst [vmem:[%s1711_s12] sm:$0xff] %v930_v22  ;;  %v931_v26 = vmax.f32 %v910_v23, 0.0  ;;  %v1271_v27 = vpop.f32.mrb[4].mxu0  ;;  %963 = vst [vmem:[%s1711_s12 + $0x60] sm:$0xff] %v942_v24  ;;  %v943_v28 = vmax.f32 %v922_v25, 0.0  ;;  %v1307_v29 = vpop.f32.mrb[4].mxu1 }
 0x12e   : > { %v1272_v30 = vpop.f32.mrb[5].mxu0  ;;  %v1308_v31 = vpop.f32.mrb[5].mxu1 }
 0x12f   : > { %952 = vst [vmem:[%s1711_s12 + $0x8] sm:$0xff] %v931_v26  ;;  %v1273_v32 = vadd.f32 %v1272_v30, %v1271_v27  ;;  %v1274_v33 = vpop.f32.mrb[6].mxu0  ;;  %964 = vst [vmem:[%s1711_s12 + $0x68] sm:$0xff] %v943_v28  ;;  %v1309_v34 = vadd.f32 %v1308_v31, %v1307_v29  ;;  %v1310_v35 = vpop.f32.mrb[6].mxu1 }
 0x130   : > { %v1275_v36 = vpop.f32.mrb[7].mxu0  ;;  %v1311_v37 = vpop.f32.mrb[7].mxu1 }
 0x131   : > { %v911_v38 = vadd.f32 %v1273_v32, %v1705_v10  ;;  %v1276_v39 = vadd.f32 %v1275_v36, %v1274_v33  ;;  %v923_v40 = vadd.f32 %v1309_v34, %v1705_v10  ;;  %v1312_v41 = vadd.f32 %v1311_v37, %v1310_v35 }
 0x133   : > { %v932_v42 = vmax.f32 %v911_v38, 0.0  ;;  %v912_v43 = vadd.f32 %v1276_v39, %v1705_v10  ;;  %v944_v44 = vmax.f32 %v923_v40, 0.0  ;;  %v924_v45 = vadd.f32 %v1312_v41, %v1705_v10 }
 0x135   : > { %953 = vst [vmem:[%s1711_s12 + $0x10] sm:$0xff] %v932_v42  ;;  %v933_v46 = vmax.f32 %v912_v43, 0.0  ;;  %v1277_v47 = vpop.f32.mrb[8].mxu0  ;;  %965 = vst [vmem:[%s1711_s12 + $0x70] sm:$0xff] %v944_v44  ;;  %v945_v48 = vmax.f32 %v924_v45, 0.0  ;;  %v1313_v49 = vpop.f32.mrb[8].mxu1 }
 0x136   : > { %v1278_v50 = vpop.f32.mrb[9].mxu0  ;;  %v1314_v51 = vpop.f32.mrb[9].mxu1 }
 0x137   : > { %954 = vst [vmem:[%s1711_s12 + $0x18] sm:$0xff] %v933_v46  ;;  %v1279_v52 = vadd.f32 %v1278_v50, %v1277_v47  ;;  %v1280_v53 = vpop.f32.mrb[10].mxu0  ;;  %966 = vst [vmem:[%s1711_s12 + $0x78] sm:$0xff] %v945_v48  ;;  %v1315_v54 = vadd.f32 %v1314_v51, %v1313_v49  ;;  %v1316_v55 = vpop.f32.mrb[10].mxu1 }
 0x138   : > { %v1281_v56 = vpop.f32.mrb[11].mxu0  ;;  %v1317_v57 = vpop.f32.mrb[11].mxu1 }
 0x139   : > { %v913_v58 = vadd.f32 %v1279_v52, %v1705_v10  ;;  %v1282_v59 = vadd.f32 %v1281_v56, %v1280_v53  ;;  %v925_v60 = vadd.f32 %v1315_v54, %v1705_v10  ;;  %v1318_v61 = vadd.f32 %v1317_v57, %v1316_v55  ;;  %v1051_v52 = vld [vmem:[%s1711_s12] sm:$0xff] (%p1531_p6)  ;;  %v1053_v53 = vld [vmem:[%s1711_s12 + $0x8] sm:$0xff] (%p1531_p6) }
 0x13a   : > { %1052 = vst [vmem:[%s1760_s27] sm:$0xff] (%p1531_p6), %v1051_v52  ;;  %1054 = vst [vmem:[%s1760_s27 + $0x10] sm:$0xff] (%p1531_p6), %v1053_v53 }
 0x13b   : > { %v934_v62 = vmax.f32 %v913_v58, 0.0  ;;  %v914_v63 = vadd.f32 %v1282_v59, %v1705_v10  ;;  %v946_v0 = vmax.f32 %v925_v60, 0.0  ;;  %v926_v1 = vadd.f32 %v1318_v61, %v1705_v10 }
 0x13d   : > { %955 = vst [vmem:[%s1711_s12 + $0x20] sm:$0xff] %v934_v62  ;;  %v935_v2 = vmax.f32 %v914_v63, 0.0  ;;  %v1283_v3 = vpop.f32.mrb[12].mxu0  ;;  %967 = vst [vmem:[%s1711_s12 + $0x80] sm:$0xff] %v946_v0  ;;  %v947_v4 = vmax.f32 %v926_v1, 0.0  ;;  %v1319_v5 = vpop.f32.mrb[12].mxu1 }
 0x13e   : > { %v1284_v6 = vpop.f32.mrb[13].mxu0  ;;  %v1320_v7 = vpop.f32.mrb[13].mxu1  ;;  %v1057_v54 = vld [vmem:[%s1711_s12 + $0x18] sm:$0xff] (%p1531_p6)  ;;  %v1075_v63 = vld [vmem:[%s1711_s12 + $0x60] sm:$0xff] (%p1531_p6)  ;;  %v1077_v0 = vld [vmem:[%s1711_s12 + $0x68] sm:$0xff] (%p1531_p6) }
 0x13f   : > { %956 = vst [vmem:[%s1711_s12 + $0x28] sm:$0xff] %v935_v2  ;;  %v1285_v8 = vadd.f32 %v1284_v6, %v1283_v3  ;;  %v1286_v9 = vpop.f32.mrb[14].mxu0  ;;  %968 = vst [vmem:[%s1711_s12 + $0x88] sm:$0xff] %v947_v4  ;;  %v1321_v11 = vadd.f32 %v1320_v7, %v1319_v5  ;;  %v1322_v12 = vpop.f32.mrb[14].mxu1  ;;  %v1079_v1 = vld [vmem:[%s1711_s12 + $0x70] sm:$0xff] (%p1531_p6)  ;;  %v1081_v2 = vld [vmem:[%s1711_s12 + $0x78] sm:$0xff] (%p1531_p6) }
 0x140   : > { %v1287_v13 = vpop.f32.mrb[15].mxu0  ;;  %v1323_v14 = vpop.f32.mrb[15].mxu1  ;;  %1058 = vst [vmem:[%s1760_s27 + $0x30] sm:$0xff] (%p1531_p6), %v1057_v54  ;;  %1076 = vst [vmem:[%s1760_s27 + $0xc0] sm:$0xff] (%p1531_p6), %v1075_v63 }
 0x141   : > { %v915_v15 = vadd.f32 %v1285_v8, %v1705_v10  ;;  %v1288_v16 = vadd.f32 %v1287_v13, %v1286_v9  ;;  %v927_v17 = vadd.f32 %v1321_v11, %v1705_v10  ;;  %v1324_v18 = vadd.f32 %v1323_v14, %v1322_v12  ;;  %1078 = vst [vmem:[%s1760_s27 + $0xd0] sm:$0xff] (%p1531_p6), %v1077_v0 }
 0x142   : > { %1080 = vst [vmem:[%s1760_s27 + $0xe0] sm:$0xff] (%p1531_p6), %v1079_v1  ;;  %1082 = vst [vmem:[%s1760_s27 + $0xf0] sm:$0xff] (%p1531_p6), %v1081_v2 }
 0x143   : > { %v936_v19 = vmax.f32 %v915_v15, 0.0  ;;  %v916_v20 = vadd.f32 %v1288_v16, %v1705_v10  ;;  %v948_v21 = vmax.f32 %v927_v17, 0.0  ;;  %v928_v22 = vadd.f32 %v1324_v18, %v1705_v10 }
 0x144   : > { %v1059_v55 = vld [vmem:[%s1711_s12 + $0x20] sm:$0xff] (%p1531_p6) }
 0x145   : > { %957 = vst [vmem:[%s1711_s12 + $0x30] sm:$0xff] %v936_v19  ;;  %v937_v23 = vmax.f32 %v916_v20, 0.0  ;;  %v1289_v24 = vpop.f32.mrb[16].mxu0  ;;  %969 = vst [vmem:[%s1711_s12 + $0x90] sm:$0xff] %v948_v21  ;;  %v949_v25 = vmax.f32 %v928_v22, 0.0  ;;  %v1325_v26 = vpop.f32.mrb[16].mxu1 }
 0x146   : > { %v1290_v27 = vpop.f32.mrb[17].mxu0  ;;  %v1326_v28 = vpop.f32.mrb[17].mxu1  ;;  %v1061_v56 = vld [vmem:[%s1711_s12 + $0x28] sm:$0xff] (%p1531_p6)  ;;  %1060 = vst [vmem:[%s1760_s27 + $0x40] sm:$0xff] (%p1531_p6), %v1059_v55  ;;  %v1083_v3 = vld [vmem:[%s1711_s12 + $0x80] sm:$0xff] (%p1531_p6) }
 0x147   : > { %958 = vst [vmem:[%s1711_s12 + $0x38] sm:$0xff] %v937_v23  ;;  %v1291_v29 = vadd.f32 %v1290_v27, %v1289_v24  ;;  %v1292_v30 = vpop.f32.mrb[18].mxu0  ;;  %970 = vst [vmem:[%s1711_s12 + $0x98] sm:$0xff] %v949_v25  ;;  %v1327_v31 = vadd.f32 %v1326_v28, %v1325_v26  ;;  %v1328_v32 = vpop.f32.mrb[18].mxu1  ;;  %v1085_v4 = vld [vmem:[%s1711_s12 + $0x88] sm:$0xff] (%p1531_p6) }
 0x148   : > { %v1293_v33 = vpop.f32.mrb[19].mxu0  ;;  %v1329_v34 = vpop.f32.mrb[19].mxu1  ;;  %1062 = vst [vmem:[%s1760_s27 + $0x50] sm:$0xff] (%p1531_p6), %v1061_v56  ;;  %1084 = vst [vmem:[%s1760_s27 + $0x100] sm:$0xff] (%p1531_p6), %v1083_v3 }
 0x149   : > { %v917_v35 = vadd.f32 %v1291_v29, %v1705_v10  ;;  %v1294_v36 = vadd.f32 %v1293_v33, %v1292_v30  ;;  %v929_v37 = vadd.f32 %v1327_v31, %v1705_v10  ;;  %1086 = vst [vmem:[%s1760_s27 + $0x110] sm:$0xff] (%p1531_p6), %v1085_v4 }
 0x14b   : > { %v938_v38 = vmax.f32 %v917_v35, 0.0  ;;  %v918_v39 = vadd.f32 %v1294_v36, %v1705_v10  ;;  %v950_v40 = vmax.f32 %v929_v37, 0.0 }
 0x14c   : > { %v1063_v57 = vld [vmem:[%s1711_s12 + $0x30] sm:$0xff] (%p1531_p6) }
 0x14d   : > { %959 = vst [vmem:[%s1711_s12 + $0x40] sm:$0xff] %v938_v38  ;;  %v939_v41 = vmax.f32 %v918_v39, 0.0  ;;  %v1295_v42 = vpop.f32.mrb[20].mxu0  ;;  %971 = vst [vmem:[%s1711_s12 + $0xa0] sm:$0xff] %v950_v40  ;;  %v1087_v5 = vld [vmem:[%s1711_s12 + $0x90] sm:$0xff] (%p1531_p6) }
 0x14e   : > { %v1296_v43 = vpop.f32.mrb[21].mxu0  ;;  %v1065_v58 = vld [vmem:[%s1711_s12 + $0x38] sm:$0xff] (%p1531_p6)  ;;  %1064 = vst [vmem:[%s1760_s27 + $0x60] sm:$0xff] (%p1531_p6), %v1063_v57  ;;  %1088 = vst [vmem:[%s1760_s27 + $0x120] sm:$0xff] (%p1531_p6), %v1087_v5 }
 0x14f   : > { %960 = vst [vmem:[%s1711_s12 + $0x48] sm:$0xff] %v939_v41  ;;  %v1297_v44 = vadd.f32 %v1296_v43, %v1295_v42  ;;  %v1298_v45 = vpop.f32.mrb[22].mxu0  ;;  %1066 = vst [vmem:[%s1760_s27 + $0x70] sm:$0xff] (%p1531_p6), %v1065_v58  ;;  %v1089_v6 = vld [vmem:[%s1711_s12 + $0x98] sm:$0xff] (%p1531_p6) }
 0x150   : > { %v1299_v46 = vpop.f32.mrb[23].mxu0  ;;  %1090 = vst [vmem:[%s1760_s27 + $0x130] sm:$0xff] (%p1531_p6), %v1089_v6 }
 0x151   : > { %v919_v47 = vadd.f32 %v1297_v44, %v1705_v10  ;;  %v1300_v48 = vadd.f32 %v1299_v46, %v1298_v45  ;;  %978 = sbr.rel (!%p1531_p6) target bundleno = 352 (0x160), region = 85 }
 0x153   : > { %v940_v49 = vmax.f32 %v919_v47, 0.0  ;;  %v920_v50 = vadd.f32 %v1300_v48, %v1705_v10  ;;  %v1055_v10 = vld [vmem:[%s1711_s12 + $0x10] sm:$0xff] (%p1531_p6) }
 0x154   : > { %1056 = vst [vmem:[%s1760_s27 + $0x20] sm:$0xff] (%p1531_p6), %v1055_v10  ;;  %v1067_v59 = vld [vmem:[%s1711_s12 + $0x40] sm:$0xff] (%p1531_p6) }
 0x155   : > { %961 = vst [vmem:[%s1711_s12 + $0x50] sm:$0xff] %v940_v49  ;;  %v941_v51 = vmax.f32 %v920_v50, 0.0  ;;  %1068 = vst [vmem:[%s1760_s27 + $0x80] sm:$0xff] (%p1531_p6), %v1067_v59  ;;  %v1091_v7 = vld [vmem:[%s1711_s12 + $0xa0] sm:$0xff] (%p1531_p6) }
 0x156   : > { %v1069_v60 = vld [vmem:[%s1711_s12 + $0x48] sm:$0xff] (%p1531_p6)  ;;  %1092 = vst [vmem:[%s1760_s27 + $0x140] sm:$0xff] (%p1531_p6), %v1091_v7 }
 0x157   : > { %962 = vst [vmem:[%s1711_s12 + $0x58] sm:$0xff] %v941_v51  ;;  %1070 = vst [vmem:[%s1760_s27 + $0x90] sm:$0xff] (%p1531_p6), %v1069_v60 }
 0x15c   : > { %v1071_v61 = vld [vmem:[%s1711_s12 + $0x50] sm:$0xff] }
 0x15d   : > { %1072 = vst [vmem:[%s1760_s27 + $0xa0] sm:$0xff] %v1071_v61 }
 0x15e   : > { %v1073_v62 = vld [vmem:[%s1711_s12 + $0x58] sm:$0xff] }
 0x15f   : > { %1074 = vst [vmem:[%s1760_s27 + $0xb0] sm:$0xff] %v1073_v62 }
 0x160 PF: > { %s13_s16 = sadd.s32 1, %s1474_s16   ;;  %s1821_s12 = smov %s1462_s13 }
 0x161   : > { %p10_p12 = scmp.ge.s32.totalorder %s13_s16, 4   ;;  %s1822_s13 = smov %s1536_s22 }
 0x162   : > { %s1823_s14 = smov %s1470_s15  ;;  %s1824_s15 = smov %s1826_s17 }
 0x163   :  { %12 = sbr.rel (!%p10_p12) target bundleno = 3 (0x3), region = 160 }

// kernel: mixed_6a_forward.7
= control target key start
LH: loop header
LB: loop body
LE: loop exit
PB: predicated region body
PF: predicated region fallthrough
CT: control target
= control target key end

     0   :  { %s2126_s0 = inlined_call_operand.vmem [shape: bf16[168,1792], index: 0, kind: input, shape index: {}]   ;;  %s2127_s1 = inlined_call_operand.vmem [shape: bf16[1792,256], index: 1, kind: input, shape index: {}]   ;;  %s2128_s2 = inlined_call_operand.vmem [shape: f32[1,256], index: 2, kind: input, shape index: {}]   ;;  %s2129_s3 = inlined_call_operand.vmem [shape: f32[168,256], index: 3, kind: output, shape index: {}]  }
   0x1   :  { %2131 = sst [smem:[#allocation7_spill]] %s2126_s0 }
   0x2   :  { %2132 = sst [smem:[#allocation8_spill]] %s2127_s1 }
   0x3   :  { %s1708_s12 = smov 0   ;;  %s1710_s13 = smov 0  }
   0x4   :  { %s1712_s14 = smov 0   ;;  %s1714_s15 = smov 0  }
   0x5   :  { %s1716_s16 = smov 0   ;;  %s1718_s17 = smov 0  }
   0x6   :  { %s1720_s18 = smov 0   ;;  %s1722_s19 = smov 0  }
   0x7   :  { %s1724_s20 = smov 0   ;;  %s1726_s21 = smov 0  }
   0x8   :  { %s1728_s22 = smov 0  }
   0x9 LB: > { %s1303_s23 = sadd.s32 4294967295, %s1685_s22   ;;  %s25_s24 = sadd.s32 1, %s1677_s20  ;;  %s1685_s22 = sphi %s1728_s22, %s13_s22   ;;  %s1681_s21 = sphi %s1726_s21, %s2149_s21   ;;  %s1677_s20 = sphi %s1724_s20, %s2148_s20   ;;  %s1673_s19 = sphi %s1722_s19, %s2147_s19   ;;  %s1669_s18 = sphi %s1720_s18, %s2146_s18   ;;  %s1665_s17 = sphi %s1718_s17, %s2145_s17   ;;  %s1661_s16 = sphi %s1716_s16, %s2144_s16   ;;  %s1657_s15 = sphi %s1714_s15, %s2143_s15   ;;  %s1653_s14 = sphi %s1712_s14, %s2142_s14   ;;  %s1649_s13 = sphi %s1710_s13, %s2141_s13   ;;  %s1645_s12 = sphi %s1708_s12, %s2140_s12  }
   0xa   : > { %p26_p0 = scmp.ge.s32.totalorder %s25_s24, 7  ;;  %s28_s25 = sadd.s32 1, %s1681_s21 }
   0xb   : > { %s41_s26 = sadd.s32 1, %s1665_s17  ;;  %p48_p1 = scmp.ne.s32.totalorder %s1665_s17, %s1661_s16 }
   0xc   : > { %s2151_s24 = smov (%p26_p0, %s25_s24), 0  ;;  %s2153_s25 = smov (!%p26_p0, %s28_s25), %s1681_s21 }
   0xd   : > { %s37_s27 = ssub.s32 %s1677_s20, %s2151_s24  ;;  %p49_p2 = scmp.eq.s32.totalorder %s1685_s22, 0 }
   0xe   : > { %p30_p3 = scmp.ge.s32.totalorder %s2153_s25, 2  ;;  %p39_p4 = scmp.eq.s32.totalorder %s37_s27, 0 }
   0xf   : > { %p1775_p5 = por %p49_p2, %p48_p1  ;;  %s69_s29 = sadd.s32 1, %s1657_s15 }
  0x10   : > { %s2155_s25 = smov (%p30_p3, %s2153_s25), 0  ;;  %p76_p6 = scmp.ne.s32.totalorder %s1657_s15, %s1653_s14 }
  0x11   : > { %2134 = sst [smem:[#allocation6_spill]] %s2155_s25  ;;  %s65_s4 = ssub.s32 %s1681_s21, %s2155_s25 }
  0x12   : > { %s1783_s30 = scalar_select %p39_p4, %s1665_s17, %s41_s26  }
  0x13   : > { %s66_s5 = sor.u32 %s65_s4, %s37_s27  ;;  %p121_p7 = scmp.eq.s32.totalorder %s65_s4, 0 }
  0x14   : > { %p67_p8 = scmp.eq.s32.totalorder %s66_s5, 0  ;;  %p1789_p9 = por %p76_p6, %p49_p2 }
  0x15   : > { %s123_s7 = sadd.s32 1, %s1649_s13  ;;  %p133_p10 = scmp.ne.s32.totalorder %s1649_s13, %s1645_s12 }
  0x16   : > { %s1797_s8 = scalar_select %p67_p8, %s1657_s15, %s69_s29  }
  0x17   : > { %s1800_s9 = scalar_select %p121_p7, %s1649_s13, %s123_s7  }
  0x18   : > { %p134_p11 = scmp.eq.s32.totalorder %s1303_s23, 13  ;;  %p1306_p13 = scmp.ge.s32.totalorder %s1685_s22, 14 }
  0x1a   : > { %p1802_p12 = por %p134_p11, %p133_p10  ;;  %156 = sbr.rel (%p1306_p13) target bundleno = 85 (0x55), region = 16 }
  0x21   : > { %159 = sbr.rel (!%p1775_p5) target bundleno = 54 (0x36), region = 20  ;;  %s161_s11 = sand.u32 (%p1775_p5), 1, %s1665_s17  }
  0x22   : > { %s1359_s26 = sshll.u32 (%p1775_p5), %s1677_s20, 3  ;;  %s1459_s27 = smul.u32 (%p1775_p5), 168, %s161_s11 }
  0x23   : > { %s2137_s0 = sld [smem:[#allocation7_spill]] (%p1775_p5) }
  0x24   : > { %s1822_s23 = scalar_lea.vmem (%p1775_p5), [#allocation3], %s1459_s27 }
  0x29   : > { %s1814_s5 = scalar_lea.vmem %s2137_s0, %s1359_s26 }
  0x2a   : > { %v237_v0 = vld [vmem:[%s1814_s5] sm:$0xff]  ;;  %v239_v1 = vld [vmem:[%s1814_s5 + $0x38] sm:$0xff]  ;;  %v241_v2 = vld [vmem:[%s1814_s5 + $0x70] sm:$0xff] }
  0x2b   : > { %v243_v3 = vld [vmem:[%s1814_s5 + $0xa8] sm:$0xff]  ;;  %v245_v4 = vld [vmem:[%s1814_s5 + $0xe0] sm:$0xff]  ;;  %v247_v5 = vld [vmem:[%s1814_s5 + $0x118] sm:$0xff]  ;;  %238 = vst [vmem:[%s1822_s23] sm:$0xff] %v237_v0 }
  0x2c   : > { %240 = vst [vmem:[%s1822_s23 + $0x8] sm:$0xff] %v239_v1  ;;  %242 = vst [vmem:[%s1822_s23 + $0x10] sm:$0xff] %v241_v2  ;;  %v249_v6 = vld [vmem:[%s1814_s5 + $0x150] sm:$0xff]  ;;  %v251_v7 = vld [vmem:[%s1814_s5 + $0x188] sm:$0xff] }
  0x2d   : > { %244 = vst [vmem:[%s1822_s23 + $0x18] sm:$0xff] %v243_v3  ;;  %246 = vst [vmem:[%s1822_s23 + $0x20] sm:$0xff] %v245_v4  ;;  %v253_v8 = vld [vmem:[%s1814_s5 + $0x1c0] sm:$0xff]  ;;  %v255_v9 = vld [vmem:[%s1814_s5 + $0x1f8] sm:$0xff] }
  0x2e   : > { %248 = vst [vmem:[%s1822_s23 + $0x28] sm:$0xff] %v247_v5  ;;  %250 = vst [vmem:[%s1822_s23 + $0x30] sm:$0xff] %v249_v6  ;;  %v257_v10 = vld [vmem:[%s1814_s5 + $0x230] sm:$0xff]  ;;  %v259_v11 = vld [vmem:[%s1814_s5 + $0x268] sm:$0xff] }
  0x2f   : > { %252 = vst [vmem:[%s1822_s23 + $0x38] sm:$0xff] %v251_v7  ;;  %254 = vst [vmem:[%s1822_s23 + $0x40] sm:$0xff] %v253_v8  ;;  %v261_v12 = vld [vmem:[%s1814_s5 + $0x2a0] sm:$0xff]  ;;  %v263_v13 = vld [vmem:[%s1814_s5 + $0x2d8] sm:$0xff] }
  0x30   : > { %256 = vst [vmem:[%s1822_s23 + $0x48] sm:$0xff] %v255_v9  ;;  %258 = vst [vmem:[%s1822_s23 + $0x50] sm:$0xff] %v257_v10  ;;  %v265_v14 = vld [vmem:[%s1814_s5 + $0x310] sm:$0xff]  ;;  %v267_v15 = vld [vmem:[%s1814_s5 + $0x348] sm:$0xff] }
  0x31   : > { %260 = vst [vmem:[%s1822_s23 + $0x58] sm:$0xff] %v259_v11  ;;  %262 = vst [vmem:[%s1822_s23 + $0x60] sm:$0xff] %v261_v12  ;;  %v269_v16 = vld [vmem:[%s1814_s5 + $0x380] sm:$0xff]  ;;  %v271_v17 = vld [vmem:[%s1814_s5 + $0x3b8] sm:$0xff] }
  0x32   : > { %264 = vst [vmem:[%s1822_s23 + $0x68] sm:$0xff] %v263_v13  ;;  %266 = vst [vmem:[%s1822_s23 + $0x70] sm:$0xff] %v265_v14  ;;  %v273_v18 = vld [vmem:[%s1814_s5 + $0x3f0] sm:$0xff]  ;;  %v275_v19 = vld [vmem:[%s1814_s5 + $0x428] sm:$0xff] }
  0x33   : > { %268 = vst [vmem:[%s1822_s23 + $0x78] sm:$0xff] %v267_v15  ;;  %270 = vst [vmem:[%s1822_s23 + $0x80] sm:$0xff] %v269_v16  ;;  %v277_v20 = vld [vmem:[%s1814_s5 + $0x460] sm:$0xff] }
  0x34   : > { %272 = vst [vmem:[%s1822_s23 + $0x88] sm:$0xff] %v271_v17  ;;  %274 = vst [vmem:[%s1822_s23 + $0x90] sm:$0xff] %v273_v18 }
  0x35   : > { %276 = vst [vmem:[%s1822_s23 + $0x98] sm:$0xff] %v275_v19  ;;  %278 = vst [vmem:[%s1822_s23 + $0xa0] sm:$0xff] %v277_v20 }
  0x36 PF: > { %284 = sbr.rel (!%p1789_p9) target bundleno = 85 (0x55), region = 58  ;;  %s286_s28 = sand.u32 (%p1789_p9), 1, %s1657_s15  }
  0x37   : > { %s1360_s7 = sshll.u32 (%p1789_p9), %s1677_s20, 6  ;;  %s1309_s11 = sshll.u32 (%p1789_p9), %s286_s28, 7 }
  0x38   : > { %s291_s26 = sadd.s32 (%p1789_p9), %s1681_s21, %s1360_s7  ;;  %s2138_s1 = sld [smem:[#allocation8_spill]] (%p1789_p9) }
  0x39   : > { %s1312_s27 = sshll.u32 (%p1789_p9), %s291_s26, 2  ;;  %s1873_s6 = scalar_lea.vmem (%p1789_p9), [#allocation4], %s1309_s11 }
  0x3e   : > { %s1868_s0 = scalar_lea.vmem %s2138_s1, %s1312_s27 }
  0x3f   : > { %v309_v21 = vld [vmem:[%s1868_s0] sm:$0xf]  ;;  %v311_v22 = vld [vmem:[%s1868_s0 + $0x8] sm:$0xf]  ;;  %v313_v23 = vld [vmem:[%s1868_s0 + $0x10] sm:$0xf] }
  0x40   : > { %310 = vst [vmem:[%s1873_s6] sm:$0xf] %v309_v21  ;;  %312 = vst [vmem:[%s1873_s6 + $0x4] sm:$0xf] %v311_v22  ;;  %v315_v24 = vld [vmem:[%s1868_s0 + $0x18] sm:$0xf] }
  0x41   : > { %314 = vst [vmem:[%s1873_s6 + $0x8] sm:$0xf] %v313_v23  ;;  %v317_v25 = vld [vmem:[%s1868_s0 + $0x20] sm:$0xf]  ;;  %v319_v26 = vld [vmem:[%s1868_s0 + $0x28] sm:$0xf] }
  0x42   : > { %316 = vst [vmem:[%s1873_s6 + $0xc] sm:$0xf] %v315_v24  ;;  %318 = vst [vmem:[%s1873_s6 + $0x10] sm:$0xf] %v317_v25  ;;  %v321_v27 = vld [vmem:[%s1868_s0 + $0x30] sm:$0xf] }
  0x43   : > { %320 = vst [vmem:[%s1873_s6 + $0x14] sm:$0xf] %v319_v26  ;;  %v323_v28 = vld [vmem:[%s1868_s0 + $0x38] sm:$0xf]  ;;  %v325_v29 = vld [vmem:[%s1868_s0 + $0x40] sm:$0xf] }
  0x44   : > { %322 = vst [vmem:[%s1873_s6 + $0x18] sm:$0xf] %v321_v27  ;;  %324 = vst [vmem:[%s1873_s6 + $0x1c] sm:$0xf] %v323_v28  ;;  %v327_v30 = vld [vmem:[%s1868_s0 + $0x48] sm:$0xf] }
  0x45   : > { %326 = vst [vmem:[%s1873_s6 + $0x20] sm:$0xf] %v325_v29  ;;  %v329_v31 = vld [vmem:[%s1868_s0 + $0x50] sm:$0xf]  ;;  %v331_v32 = vld [vmem:[%s1868_s0 + $0x58] sm:$0xf] }
  0x46   : > { %328 = vst [vmem:[%s1873_s6 + $0x24] sm:$0xf] %v327_v30  ;;  %330 = vst [vmem:[%s1873_s6 + $0x28] sm:$0xf] %v329_v31  ;;  %v333_v33 = vld [vmem:[%s1868_s0 + $0x60] sm:$0xf] }
  0x47   : > { %332 = vst [vmem:[%s1873_s6 + $0x2c] sm:$0xf] %v331_v32  ;;  %v335_v34 = vld [vmem:[%s1868_s0 + $0x68] sm:$0xf]  ;;  %v337_v35 = vld [vmem:[%s1868_s0 + $0x70] sm:$0xf] }
  0x48   : > { %334 = vst [vmem:[%s1873_s6 + $0x30] sm:$0xf] %v333_v33  ;;  %336 = vst [vmem:[%s1873_s6 + $0x34] sm:$0xf] %v335_v34  ;;  %v339_v36 = vld [vmem:[%s1868_s0 + $0x78] sm:$0xf] }
  0x49   : > { %338 = vst [vmem:[%s1873_s6 + $0x38] sm:$0xf] %v337_v35  ;;  %v341_v37 = vld [vmem:[%s1868_s0 + $0x80] sm:$0xf]  ;;  %v343_v38 = vld [vmem:[%s1868_s0 + $0x88] sm:$0xf] }
  0x4a   : > { %340 = vst [vmem:[%s1873_s6 + $0x3c] sm:$0xf] %v339_v36  ;;  %342 = vst [vmem:[%s1873_s6 + $0x40] sm:$0xf] %v341_v37  ;;  %v345_v39 = vld [vmem:[%s1868_s0 + $0x90] sm:$0xf] }
  0x4b   : > { %344 = vst [vmem:[%s1873_s6 + $0x44] sm:$0xf] %v343_v38  ;;  %v347_v40 = vld [vmem:[%s1868_s0 + $0x98] sm:$0xf]  ;;  %v349_v41 = vld [vmem:[%s1868_s0 + $0xa0] sm:$0xf] }
  0x4c   : > { %346 = vst [vmem:[%s1873_s6 + $0x48] sm:$0xf] %v345_v39  ;;  %348 = vst [vmem:[%s1873_s6 + $0x4c] sm:$0xf] %v347_v40  ;;  %v351_v42 = vld [vmem:[%s1868_s0 + $0xa8] sm:$0xf] }
  0x4d   : > { %350 = vst [vmem:[%s1873_s6 + $0x50] sm:$0xf] %v349_v41  ;;  %v353_v43 = vld [vmem:[%s1868_s0 + $0xb0] sm:$0xf]  ;;  %v355_v44 = vld [vmem:[%s1868_s0 + $0xb8] sm:$0xf] }
  0x4e   : > { %352 = vst [vmem:[%s1873_s6 + $0x54] sm:$0xf] %v351_v42  ;;  %354 = vst [vmem:[%s1873_s6 + $0x58] sm:$0xf] %v353_v43  ;;  %v357_v45 = vld [vmem:[%s1868_s0 + $0xc0] sm:$0xf] }
  0x4f   : > { %356 = vst [vmem:[%s1873_s6 + $0x5c] sm:$0xf] %v355_v44  ;;  %v359_v46 = vld [vmem:[%s1868_s0 + $0xc8] sm:$0xf]  ;;  %v361_v47 = vld [vmem:[%s1868_s0 + $0xd0] sm:$0xf] }
  0x50   : > { %358 = vst [vmem:[%s1873_s6 + $0x60] sm:$0xf] %v357_v45  ;;  %360 = vst [vmem:[%s1873_s6 + $0x64] sm:$0xf] %v359_v46  ;;  %v363_v48 = vld [vmem:[%s1868_s0 + $0xd8] sm:$0xf] }
  0x51   : > { %362 = vst [vmem:[%s1873_s6 + $0x68] sm:$0xf] %v361_v47  ;;  %v365_v49 = vld [vmem:[%s1868_s0 + $0xe0] sm:$0xf]  ;;  %v367_v50 = vld [vmem:[%s1868_s0 + $0xe8] sm:$0xf] }
  0x52   : > { %364 = vst [vmem:[%s1873_s6 + $0x6c] sm:$0xf] %v363_v48  ;;  %366 = vst [vmem:[%s1873_s6 + $0x70] sm:$0xf] %v365_v49  ;;  %v369_v51 = vld [vmem:[%s1868_s0 + $0xf0] sm:$0xf] }
  0x53   : > { %368 = vst [vmem:[%s1873_s6 + $0x74] sm:$0xf] %v367_v50  ;;  %v371_v52 = vld [vmem:[%s1868_s0 + $0xf8] sm:$0xf]  ;;  %370 = vst [vmem:[%s1873_s6 + $0x78] sm:$0xf] %v369_v51 }
  0x54   : > { %372 = vst [vmem:[%s1873_s6 + $0x7c] sm:$0xf] %v371_v52 }
  0x55 PF: > { %p1313_p0 = scmp.ge.s32.totalorder %s1685_s22, 1  ;;  %p464_p1 = scmp.lt.s32.totalorder %s1685_s22, 15 }
  0x57   : > { %p465_p2 = pnand %p1313_p0, %p464_p1 }
  0x58   : > { %s471_s5 = sand.u32 (!%p465_p2), 1, %s1661_s16   ;;  %s478_s23 = sand.u32 (!%p465_p2), 1, %s1653_s14  }
  0x59   : > { %468 = sbr.rel (%p465_p2) target bundleno = 427 (0x1ab), region = 103  ;;  %s1314_s7 = sshll.u32 (!%p465_p2), %s478_s23, 7 }
  0x5a   : > { %s1460_s28 = smul.u32 (!%p465_p2), 168, %s471_s5  ;;  %s504_s0 = sand.u32 (!%p465_p2), 1, %s1645_s12  }
  0x5b   : > { %s1461_s11 = smul.u32 (!%p465_p2), 168, %s504_s0  ;;  %p510_p3 = scmp.lt.s32.totalorder (!%p465_p2), %s1673_s19, 1 }
  0x5c   : > { %s1949_s6 = scalar_lea.vmem (!%p465_p2), [#allocation3], %s1460_s28  ;;  %s1951_s1 = scalar_lea.vmem (!%p465_p2), [#allocation4], %s1314_s7 }
  0x5d   : > { %s1953_s25 = scalar_lea.vmem (!%p465_p2), [#allocation5], %s1461_s11  ;;  %p1315_p4 = scmp.ne.s32.totalorder (!%p465_p2), %s1669_s18, 0 }
  0x60   : > { %s1943_s26 = scalar_select %p510_p3, %s1673_s19, 1 }
  0x61   : > { %518 = sbr.rel (%p1315_p4) target bundleno = 109 (0x6d), region = 115  ;;  %v1687_v53 = vmov (!%p1315_p4), 0.0  }
  0x62   : > { %s512_s4 = scalar_lea.vmem %s2128_s2, %s1943_s26  ;;  %519 = vst [vmem:[#allocation2] sm:$0xff] (!%p1315_p4), %v1687_v53  ;;  %520 = vst [vmem:[#allocation2 + $0x8] sm:$0xff] (!%p1315_p4), %v1687_v53 }
  0x63   : > { %521 = vst [vmem:[#allocation2 + $0x10] sm:$0xff] (!%p1315_p4), %v1687_v53  ;;  %522 = vst [vmem:[#allocation2 + $0x18] sm:$0xff] (!%p1315_p4), %v1687_v53 }
  0x64   : > { %523 = vst [vmem:[#allocation2 + $0x20] sm:$0xff] (!%p1315_p4), %v1687_v53  ;;  %524 = vst [vmem:[#allocation2 + $0x28] sm:$0xff] (!%p1315_p4), %v1687_v53 }
  0x65   : > { %525 = vst [vmem:[#allocation2 + $0x30] sm:$0xff] (!%p1315_p4), %v1687_v53  ;;  %526 = vst [vmem:[#allocation2 + $0x38] sm:$0xff] (!%p1315_p4), %v1687_v53 }
  0x66   : > { %527 = vst [vmem:[#allocation2 + $0x40] sm:$0xff] (!%p1315_p4), %v1687_v53  ;;  %528 = vst [vmem:[#allocation2 + $0x48] sm:$0xff] (!%p1315_p4), %v1687_v53 }
  0x67   : > { %529 = vst [vmem:[#allocation2 + $0x50] sm:$0xff] (!%p1315_p4), %v1687_v53  ;;  %530 = vst [vmem:[#allocation2 + $0x58] sm:$0xff] (!%p1315_p4), %v1687_v53 }
  0x68   : > { %531 = vst [vmem:[#allocation2 + $0x60] sm:$0xff] %v1687_v53  ;;  %532 = vst [vmem:[#allocation2 + $0x68] sm:$0xff] %v1687_v53 }
  0x69   : > { %533 = vst [vmem:[#allocation2 + $0x70] sm:$0xff] %v1687_v53  ;;  %534 = vst [vmem:[#allocation2 + $0x78] sm:$0xff] %v1687_v53 }
  0x6a   : > { %535 = vst [vmem:[#allocation2 + $0x80] sm:$0xff] %v1687_v53  ;;  %536 = vst [vmem:[#allocation2 + $0x88] sm:$0xff] %v1687_v53 }
  0x6b   : > { %537 = vst [vmem:[#allocation2 + $0x90] sm:$0xff] %v1687_v53  ;;  %538 = vst [vmem:[#allocation2 + $0x98] sm:$0xff] %v1687_v53 }
  0x6c   : > { %539 = vst [vmem:[#allocation2 + $0xa0] sm:$0xff] %v1687_v53 }
  0x6d PF: > { %v1551_v54 = vld [vmem:[%s1951_s1 + $0x40] sm:$0xff]   ;;  %v1553_v56 = vld [vmem:[%s1951_s1 + $0x48] sm:$0xff]   ;;  %v1555_v58 = vld [vmem:[%s1951_s1 + $0x50] sm:$0xff]   ;;  %p1354_p5 = scmp.ne.s32.totalorder %s1669_s18, 6 }
  0x6e   : > { %v1552_v55 = vld [vmem:[%s1951_s1] sm:$0xff]   ;;  %1361 = vmatprep.subr.bf16.mxu0 %v1551_v54  ;;  %1443 = vmatprep.subr.bf16.mxu1 %v1551_v54  ;;  %v1554_v57 = vld [vmem:[%s1951_s1 + $0x8] sm:$0xff]   ;;  %v1556_v59 = vld [vmem:[%s1951_s1 + $0x10] sm:$0xff]  }
  0x6f   : > { %1362 = vmatpush3.bf16.msra.mxu0 %v1552_v55  ;;  %1451 = vmatpush3.bf16.msra.mxu1 %v1552_v55  ;;  %v1557_v60 = vld [vmem:[%s1951_s1 + $0x58] sm:$0xff]   ;;  %v1559_v62 = vld [vmem:[%s1951_s1 + $0x60] sm:$0xff]   ;;  %v1561_v0 = vld [vmem:[%s1951_s1 + $0x68] sm:$0xff]  }
  0x70   : > { %1363 = vmatprep.subr.bf16.mxu0 %v1553_v56  ;;  %1444 = vmatprep.subr.bf16.mxu1 %v1553_v56  ;;  %v1558_v61 = vld [vmem:[%s1951_s1 + $0x18] sm:$0xff]   ;;  %v1560_v63 = vld [vmem:[%s1951_s1 + $0x20] sm:$0xff]   ;;  %v1562_v3 = vld [vmem:[%s1951_s1 + $0x28] sm:$0xff]  }
  0x71   : > { %v1569_v1 = vld [vmem:[%s1949_s6 + $0x4] ss:$8 sps:$4 sm:$0xff]   ;;  %v1567_v8 = vld [vmem:[%s1949_s6] ss:$8 sps:$4 sm:$0xff]   ;;  %v1573_v10 = vld [vmem:[%s1949_s6 + $0x14] ss:$8 sps:$4 sm:$0xff]  }
  0x72   : > { %v1572_v2 = vld [vmem:[%s1949_s6 + $0x64] ss:$8 sps:$4 sm:$0xff]   ;;  %849 = vmatprep.mubr.bf16.mxu0 %v1569_v1  ;;  %v1570_v9 = vld [vmem:[%s1949_s6 + $0x60] ss:$8 sps:$4 sm:$0xff]   ;;  %v1576_v11 = vld [vmem:[%s1949_s6 + $0x74] ss:$8 sps:$4 sm:$0xff]  }
  0x73   : > { %1364 = vmatpush3.bf16.msra.mxu0 %v1554_v57  ;;  %1452 = vmatpush3.bf16.msra.mxu1 %v1554_v57  ;;  %v1563_v4 = vld [vmem:[%s1951_s1 + $0x70] sm:$0xff]   ;;  %v1565_v6 = vld [vmem:[%s1951_s1 + $0x78] sm:$0xff]   ;;  %v540_v31 = vld [vmem:[#allocation2] sm:$0xff] }
  0x74   : > { %1365 = vmatprep.subr.bf16.mxu0 %v1555_v58  ;;  %1445 = vmatprep.subr.bf16.mxu1 %v1555_v58  ;;  %v1564_v5 = vld [vmem:[%s1951_s1 + $0x30] sm:$0xff]   ;;  %v1566_v7 = vld [vmem:[%s1951_s1 + $0x38] sm:$0xff]   ;;  %v552_v33 = vld [vmem:[#allocation2 + $0x60] sm:$0xff] }
  0x75   : > { %897 = vmatprep.mubr.bf16.mxu1 %v1572_v2  ;;  %v1575_v12 = vld [vmem:[%s1949_s6 + $0x10] ss:$8 sps:$4 sm:$0xff]   ;;  %v1578_v14 = vld [vmem:[%s1949_s6 + $0x24] ss:$8 sps:$4 sm:$0xff]   ;;  %v1581_v16 = vld [vmem:[%s1949_s6 + $0x20] ss:$8 sps:$4 sm:$0xff]  }
  0x76   : > { %v1580_v13 = vld [vmem:[%s1949_s6 + $0x70] ss:$8 sps:$4 sm:$0xff]   ;;  %v1582_v15 = vld [vmem:[%s1949_s6 + $0x84] ss:$8 sps:$4 sm:$0xff]   ;;  %v1586_v17 = vld [vmem:[%s1949_s6 + $0x80] ss:$8 sps:$4 sm:$0xff]  }
  0x77   : > { %1366 = vmatpush3.bf16.msra.mxu0 %v1556_v59  ;;  %1453 = vmatpush3.bf16.msra.mxu1 %v1556_v59  ;;  %v1584_v18 = vld [vmem:[%s1949_s6 + $0x34] ss:$8 sps:$4 sm:$0xff]   ;;  %v581_v20 = vld [vmem:[%s1949_s6 + $0xa0] sm:$0xff]  ;;  %v1587_v21 = vld [vmem:[%s1949_s6 + $0x30] ss:$8 sps:$4 sm:$0xff]  }
  0x78   : > { %1367 = vmatprep.subr.bf16.mxu0 %v1557_v60  ;;  %1446 = vmatprep.subr.bf16.mxu1 %v1557_v60  ;;  %v1588_v19 = vld [vmem:[%s1949_s6 + $0x94] ss:$8 sps:$4 sm:$0xff]   ;;  %v1592_v22 = vld [vmem:[%s1949_s6 + $0x90] ss:$8 sps:$4 sm:$0xff]   ;;  %v1590_v23 = vld [vmem:[%s1949_s6 + $0x44] ss:$8 sps:$4 sm:$0xff]   ;;  %v1337_v24 = vcombine.high %v581_v20, %v581_v20  ;;  %v1336_v26 = vcombine.low %v581_v20, %v581_v20 }
  0x79   : > { %v1593_v25 = vld [vmem:[%s1949_s6 + $0x40] ss:$8 sps:$4 sm:$0xff]   ;;  %v1595_v27 = vld [vmem:[%s1949_s6 + $0x54] ss:$8 sps:$4 sm:$0xff]   ;;  %v1598_v28 = vld [vmem:[%s1949_s6 + $0x50] ss:$8 sps:$4 sm:$0xff]  }
  0x7a   : > { %v541_v39 = vld [vmem:[#allocation2 + $0x8] sm:$0xff]  ;;  %v542_v51 = vld [vmem:[#allocation2 + $0x10] sm:$0xff]  ;;  %v543_v59 = vld [vmem:[#allocation2 + $0x18] sm:$0xff] }
  0x7b   : > { %1368 = vmatpush3.bf16.msra.mxu0 %v1558_v61  ;;  %1454 = vmatpush3.bf16.msra.mxu1 %v1558_v61  ;;  %v553_v41 = vld [vmem:[#allocation2 + $0x68] sm:$0xff]  ;;  %v554_v53 = vld [vmem:[#allocation2 + $0x70] sm:$0xff]  ;;  %v555_v61 = vld [vmem:[#allocation2 + $0x78] sm:$0xff] }
  0x7c   : > { %1369 = vmatprep.subr.bf16.mxu0 %v1559_v62  ;;  %1447 = vmatprep.subr.bf16.mxu1 %v1559_v62 }
  0x7f   : > { %1370 = vmatpush3.bf16.msra.mxu0 %v1560_v63  ;;  %1455 = vmatpush3.bf16.msra.mxu1 %v1560_v63 }
  0x80   : > { %1371 = vmatprep.subr.bf16.mxu0 %v1561_v0  ;;  %1448 = vmatprep.subr.bf16.mxu1 %v1561_v0 }
  0x83   : > { %1372 = vmatpush3.bf16.msra.mxu0 %v1562_v3  ;;  %1456 = vmatpush3.bf16.msra.mxu1 %v1562_v3 }
  0x84   : > { %1373 = vmatprep.subr.bf16.mxu0 %v1563_v4  ;;  %1449 = vmatprep.subr.bf16.mxu1 %v1563_v4 }
  0x87   : > { %1374 = vmatpush3.bf16.msra.mxu0 %v1564_v5  ;;  %1457 = vmatpush3.bf16.msra.mxu1 %v1564_v5 }
  0x88   : > { %1375 = vmatprep.subr.bf16.mxu0 %v1565_v6  ;;  %1450 = vmatprep.subr.bf16.mxu1 %v1565_v6 }
  0x8b   : > { %1376 = vmatpush3.bf16.msra.mxu0 %v1566_v7  ;;  %1458 = vmatpush3.bf16.msra.mxu1 %v1566_v7  ;;  %v544_v7 = vld [vmem:[#allocation2 + $0x20] sm:$0xff] }
  0x8e   : > { %850 = vmatmul.mubr.bf16.vlgmr.msra.gmra.mrb[0].mxu0 %v1567_v8  ;;  %898 = vmatmul.mubr.bf16.vlgmr.msra.gmra.mrb[0].mxu1 %v1570_v9  ;;  %v556_v9 = vld [vmem:[#allocation2 + $0x80] sm:$0xff] }
  0x8f   : > { %857 = vmatprep.mubr.bf16.mxu0 %v1573_v10  ;;  %905 = vmatprep.mubr.bf16.mxu1 %v1576_v11 }
  0x96   : > { %858 = vmatmul.mubr.bf16.gmra.mrb[4].mxu0 %v1575_v12  ;;  %906 = vmatmul.mubr.bf16.gmra.mrb[4].mxu1 %v1580_v13 }
  0x97   : > { %865 = vmatprep.mubr.bf16.mxu0 %v1578_v14  ;;  %913 = vmatprep.mubr.bf16.mxu1 %v1582_v15  ;;  %v545_v15 = vld [vmem:[#allocation2 + $0x28] sm:$0xff] }
  0x9e   : > { %866 = vmatmul.mubr.bf16.gmra.mrb[8].mxu0 %v1581_v16  ;;  %914 = vmatmul.mubr.bf16.gmra.mrb[8].mxu1 %v1586_v17  ;;  %v557_v17 = vld [vmem:[#allocation2 + $0x88] sm:$0xff] }
  0x9f   : > { %873 = vmatprep.mubr.bf16.mxu0 %v1584_v18  ;;  %921 = vmatprep.mubr.bf16.mxu1 %v1588_v19 }
  0xa6   : > { %874 = vmatmul.mubr.bf16.gmra.mrb[12].mxu0 %v1587_v21  ;;  %922 = vmatmul.mubr.bf16.gmra.mrb[12].mxu1 %v1592_v22 }
  0xa7   : > { %881 = vmatprep.mubr.bf16.mxu0 %v1590_v23  ;;  %929 = vmatprep.mubr.bf16.mxu1 %v1337_v24 }
  0xae   : > { %882 = vmatmul.mubr.bf16.gmra.mrb[16].mxu0 %v1593_v25  ;;  %930 = vmatmul.mubr.bf16.gmra.mrb[16].mxu1 %v1336_v26 }
  0xaf   : > { %889 = vmatprep.mubr.bf16.mxu0 %v1595_v27  ;;  %v546_v27 = vld [vmem:[#allocation2 + $0x30] sm:$0xff] }
  0xb6   : > { %890 = vmatmul.mubr.bf16.gmra.mrb[20].mxu0 %v1598_v28 }
 0x161   : > { %v1377_v29 = vpop.f32.mrb[0].mxu0  ;;  %v1413_v30 = vpop.f32.mrb[0].mxu1 }
 0x162   : > { %v1378_v32 = vpop.f32.mrb[1].mxu0  ;;  %v1414_v34 = vpop.f32.mrb[1].mxu1 }
 0x163   : > { %v1379_v35 = vadd.f32 %v1378_v32, %v1377_v29  ;;  %v1380_v36 = vpop.f32.mrb[2].mxu0  ;;  %v1415_v37 = vadd.f32 %v1414_v34, %v1413_v30  ;;  %v1416_v38 = vpop.f32.mrb[2].mxu1  ;;  %v558_v29 = vld [vmem:[#allocation2 + $0x90] sm:$0xff] }
 0x164   : > { %v1381_v40 = vpop.f32.mrb[3].mxu0  ;;  %v1417_v42 = vpop.f32.mrb[3].mxu1 }
 0x165   : > { %v937_v43 = vadd.f32 %v1379_v35, %v540_v31  ;;  %v1382_v44 = vadd.f32 %v1381_v40, %v1380_v36  ;;  %v949_v45 = vadd.f32 %v1415_v37, %v552_v33  ;;  %v1418_v46 = vadd.f32 %v1417_v42, %v1416_v38  ;;  %v547_v35 = vld [vmem:[#allocation2 + $0x38] sm:$0xff] }
 0x166   : > { %v559_v37 = vld [vmem:[#allocation2 + $0x98] sm:$0xff] }
 0x167   : > { %958 = vst [vmem:[#allocation2] sm:$0xff] %v937_v43  ;;  %v938_v47 = vadd.f32 %v1382_v44, %v541_v39  ;;  %970 = vst [vmem:[#allocation2 + $0x60] sm:$0xff] %v949_v45  ;;  %v950_v48 = vadd.f32 %v1418_v46, %v553_v41 }
 0x169   : > { %959 = vst [vmem:[#allocation2 + $0x8] sm:$0xff] %v938_v47  ;;  %v1383_v49 = vpop.f32.mrb[4].mxu0  ;;  %971 = vst [vmem:[#allocation2 + $0x68] sm:$0xff] %v950_v48  ;;  %v1419_v50 = vpop.f32.mrb[4].mxu1  ;;  %v548_v47 = vld [vmem:[#allocation2 + $0x40] sm:$0xff] }
 0x16a   : > { %v1384_v52 = vpop.f32.mrb[5].mxu0  ;;  %v1420_v54 = vpop.f32.mrb[5].mxu1 }
 0x16b   : > { %v1385_v55 = vadd.f32 %v1384_v52, %v1383_v49  ;;  %v1386_v56 = vpop.f32.mrb[6].mxu0  ;;  %v1421_v57 = vadd.f32 %v1420_v54, %v1419_v50  ;;  %v1422_v58 = vpop.f32.mrb[6].mxu1  ;;  %v560_v49 = vld [vmem:[#allocation2 + $0xa0] sm:$0xff] }
 0x16c   : > { %v1387_v60 = vpop.f32.mrb[7].mxu0  ;;  %v1423_v62 = vpop.f32.mrb[7].mxu1 }
 0x16d   : > { %v939_v63 = vadd.f32 %v1385_v55, %v542_v51  ;;  %v1388_v0 = vadd.f32 %v1387_v60, %v1386_v56  ;;  %v951_v1 = vadd.f32 %v1421_v57, %v554_v53  ;;  %v1424_v2 = vadd.f32 %v1423_v62, %v1422_v58  ;;  %v549_v55 = vld [vmem:[#allocation2 + $0x48] sm:$0xff] }
 0x16f   : > { %960 = vst [vmem:[#allocation2 + $0x10] sm:$0xff] %v939_v63  ;;  %v940_v3 = vadd.f32 %v1388_v0, %v543_v59  ;;  %972 = vst [vmem:[#allocation2 + $0x70] sm:$0xff] %v951_v1  ;;  %v952_v4 = vadd.f32 %v1424_v2, %v555_v61  ;;  %v550_v63 = vld [vmem:[#allocation2 + $0x50] sm:$0xff] }
 0x171   : > { %961 = vst [vmem:[#allocation2 + $0x18] sm:$0xff] %v940_v3  ;;  %v1389_v5 = vpop.f32.mrb[8].mxu0  ;;  %973 = vst [vmem:[#allocation2 + $0x78] sm:$0xff] %v952_v4  ;;  %v1425_v6 = vpop.f32.mrb[8].mxu1  ;;  %v551_v3 = vld [vmem:[#allocation2 + $0x58] sm:$0xff] }
 0x172   : > { %v1390_v8 = vpop.f32.mrb[9].mxu0  ;;  %v1426_v10 = vpop.f32.mrb[9].mxu1 }
 0x173   : > { %v1391_v11 = vadd.f32 %v1390_v8, %v1389_v5  ;;  %v1392_v12 = vpop.f32.mrb[10].mxu0  ;;  %v1427_v13 = vadd.f32 %v1426_v10, %v1425_v6  ;;  %v1428_v14 = vpop.f32.mrb[10].mxu1  ;;  %v983_v8 = vld [vmem:[#allocation2] sm:$0xff] (!%p1354_p5)  ;;  %v984_v10 = vld [vmem:[#allocation2 + $0x8] sm:$0xff] (!%p1354_p5) }
 0x174   : > { %v1393_v16 = vpop.f32.mrb[11].mxu0  ;;  %v1429_v18 = vpop.f32.mrb[11].mxu1 }
 0x175   : > { %v941_v19 = vadd.f32 %v1391_v11, %v544_v7  ;;  %v1394_v20 = vadd.f32 %v1393_v16, %v1392_v12  ;;  %v953_v21 = vadd.f32 %v1427_v13, %v556_v9  ;;  %v1430_v22 = vadd.f32 %v1429_v18, %v1428_v14  ;;  %v1999_v9 = vld [vmem:[%s512_s4] ss:$0 sm:$0xff] (!%p1354_p5) }
 0x176   : > { %v1011_v11 = vadd.f32 (!%p1354_p5), %v1999_v9, %v983_v8  ;;  %v1012_v12 = vadd.f32 (!%p1354_p5), %v1999_v9, %v984_v10  ;;  %v985_v13 = vld [vmem:[#allocation2 + $0x10] sm:$0xff] (!%p1354_p5) }
 0x177   : > { %962 = vst [vmem:[#allocation2 + $0x20] sm:$0xff] %v941_v19  ;;  %v942_v23 = vadd.f32 %v1394_v20, %v545_v15  ;;  %974 = vst [vmem:[#allocation2 + $0x80] sm:$0xff] %v953_v21  ;;  %v954_v24 = vadd.f32 %v1430_v22, %v557_v17  ;;  %v1013_v16 = vadd.f32 (!%p1354_p5), %v1999_v9, %v985_v13 }
 0x178   : > { %v986_v14 = vld [vmem:[#allocation2 + $0x18] sm:$0xff] (!%p1354_p5)  ;;  %v1032_v22 = vmax.f32 (!%p1354_p5), %v1011_v11, 0.0 }
 0x179   : > { %963 = vst [vmem:[#allocation2 + $0x28] sm:$0xff] %v942_v23  ;;  %v1395_v25 = vpop.f32.mrb[12].mxu0  ;;  %975 = vst [vmem:[#allocation2 + $0x88] sm:$0xff] %v954_v24  ;;  %v1431_v26 = vpop.f32.mrb[12].mxu1  ;;  %v1014_v17 = vadd.f32 (!%p1354_p5), %v1999_v9, %v986_v14  ;;  %v1033_v23 = vmax.f32 (!%p1354_p5), %v1012_v12, 0.0 }
 0x17a   : > { %v1396_v28 = vpop.f32.mrb[13].mxu0  ;;  %v1432_v30 = vpop.f32.mrb[13].mxu1  ;;  %1053 = vst [vmem:[%s1953_s25] sm:$0xff] (!%p1354_p5), %v1032_v22 }
 0x17b   : > { %v1397_v31 = vadd.f32 %v1396_v28, %v1395_v25  ;;  %v1398_v32 = vpop.f32.mrb[14].mxu0  ;;  %v1433_v33 = vadd.f32 %v1432_v30, %v1431_v26  ;;  %v1434_v34 = vpop.f32.mrb[14].mxu1  ;;  %v1035_v30 = vmax.f32 (!%p1354_p5), %v1014_v17, 0.0  ;;  %1054 = vst [vmem:[%s1953_s25 + $0x8] sm:$0xff] (!%p1354_p5), %v1033_v23 }
 0x17c   : > { %v1399_v36 = vpop.f32.mrb[15].mxu0  ;;  %v1435_v38 = vpop.f32.mrb[15].mxu1 }
 0x17d   : > { %v943_v39 = vadd.f32 %v1397_v31, %v546_v27  ;;  %v1400_v40 = vadd.f32 %v1399_v36, %v1398_v32  ;;  %v955_v41 = vadd.f32 %v1433_v33, %v558_v29  ;;  %v1436_v42 = vadd.f32 %v1435_v38, %v1434_v34  ;;  %v995_v34 = vld [vmem:[#allocation2 + $0x60] sm:$0xff] (!%p1354_p5)  ;;  %1056 = vst [vmem:[%s1953_s25 + $0x18] sm:$0xff] (!%p1354_p5), %v1035_v30 }
 0x17e   : > { %v987_v15 = vld [vmem:[#allocation2 + $0x20] sm:$0xff] (!%p1354_p5)  ;;  %v1034_v29 = vmax.f32 (!%p1354_p5), %v1013_v16, 0.0 }
 0x17f   : > { %964 = vst [vmem:[#allocation2 + $0x30] sm:$0xff] %v943_v39  ;;  %v944_v43 = vadd.f32 %v1400_v40, %v547_v35  ;;  %976 = vst [vmem:[#allocation2 + $0x90] sm:$0xff] %v955_v41  ;;  %v956_v44 = vadd.f32 %v1436_v42, %v559_v37  ;;  %v1015_v18 = vadd.f32 (!%p1354_p5), %v1999_v9, %v987_v15  ;;  %v996_v35 = vld [vmem:[#allocation2 + $0x68] sm:$0xff] (!%p1354_p5)  ;;  %v997_v40 = vld [vmem:[#allocation2 + $0x70] sm:$0xff] (!%p1354_p5) }
 0x180   : > { %v988_v19 = vld [vmem:[#allocation2 + $0x28] sm:$0xff] (!%p1354_p5)  ;;  %v998_v41 = vld [vmem:[#allocation2 + $0x78] sm:$0xff] (!%p1354_p5)  ;;  %1055 = vst [vmem:[%s1953_s25 + $0x10] sm:$0xff] (!%p1354_p5), %v1034_v29 }
 0x181   : > { %965 = vst [vmem:[#allocation2 + $0x38] sm:$0xff] %v944_v43  ;;  %v1401_v45 = vpop.f32.mrb[16].mxu0  ;;  %977 = vst [vmem:[#allocation2 + $0x98] sm:$0xff] %v956_v44  ;;  %v1437_v46 = vpop.f32.mrb[16].mxu1  ;;  %v1016_v24 = vadd.f32 (!%p1354_p5), %v1999_v9, %v988_v19  ;;  %v1036_v31 = vmax.f32 (!%p1354_p5), %v1015_v18, 0.0 }
 0x182   : > { %v1402_v48 = vpop.f32.mrb[17].mxu0  ;;  %v1438_v50 = vpop.f32.mrb[17].mxu1 }
 0x183   : > { %v1403_v51 = vadd.f32 %v1402_v48, %v1401_v45  ;;  %v1404_v52 = vpop.f32.mrb[18].mxu0  ;;  %v1439_v53 = vadd.f32 %v1438_v50, %v1437_v46  ;;  %v1440_v54 = vpop.f32.mrb[18].mxu1  ;;  %v1037_v36 = vmax.f32 (!%p1354_p5), %v1016_v24, 0.0  ;;  %1057 = vst [vmem:[%s1953_s25 + $0x20] sm:$0xff] (!%p1354_p5), %v1036_v31  ;;  %v1023_v45 = vadd.f32 (!%p1354_p5), %v1999_v9, %v995_v34  ;;  %v999_v46 = vld [vmem:[#allocation2 + $0x80] sm:$0xff] (!%p1354_p5) }
 0x184   : > { %v1405_v56 = vpop.f32.mrb[19].mxu0  ;;  %v1441_v57 = vpop.f32.mrb[19].mxu1  ;;  %v1024_v50 = vadd.f32 (!%p1354_p5), %v1999_v9, %v996_v35 }
 0x185   : > { %v945_v58 = vadd.f32 %v1403_v51, %v548_v47  ;;  %v1406_v59 = vadd.f32 %v1405_v56, %v1404_v52  ;;  %v957_v60 = vadd.f32 %v1439_v53, %v560_v49  ;;  %v1000_v47 = vld [vmem:[#allocation2 + $0x88] sm:$0xff] (!%p1354_p5)  ;;  %1058 = vst [vmem:[%s1953_s25 + $0x28] sm:$0xff] (!%p1354_p5), %v1037_v36  ;;  %v1025_v51 = vadd.f32 (!%p1354_p5), %v1999_v9, %v997_v40 }
 0x186   : > { %v989_v20 = vld [vmem:[#allocation2 + $0x30] sm:$0xff] (!%p1354_p5)  ;;  %v1044_v57 = vmax.f32 (!%p1354_p5), %v1023_v45, 0.0 }
 0x187   : > { %966 = vst [vmem:[#allocation2 + $0x40] sm:$0xff] %v945_v58  ;;  %v946_v61 = vadd.f32 %v1406_v59, %v549_v55  ;;  %978 = vst [vmem:[#allocation2 + $0xa0] sm:$0xff] %v957_v60  ;;  %v1017_v25 = vadd.f32 (!%p1354_p5), %v1999_v9, %v989_v20  ;;  %v1001_v52 = vld [vmem:[#allocation2 + $0x90] sm:$0xff] (!%p1354_p5)  ;;  %v1026_v58 = vadd.f32 (!%p1354_p5), %v1999_v9, %v998_v41  ;;  %v1045_v59 = vmax.f32 (!%p1354_p5), %v1024_v50, 0.0 }
 0x188   : > { %v990_v21 = vld [vmem:[#allocation2 + $0x38] sm:$0xff] (!%p1354_p5)  ;;  %v1046_v60 = vmax.f32 (!%p1354_p5), %v1025_v51, 0.0  ;;  %1065 = vst [vmem:[%s1953_s25 + $0x60] sm:$0xff] (!%p1354_p5), %v1044_v57 }
 0x189   : > { %967 = vst [vmem:[#allocation2 + $0x48] sm:$0xff] %v946_v61  ;;  %v1407_v62 = vpop.f32.mrb[20].mxu0  ;;  %v1018_v32 = vadd.f32 (!%p1354_p5), %v1999_v9, %v990_v21  ;;  %v1038_v37 = vmax.f32 (!%p1354_p5), %v1017_v25, 0.0  ;;  %v1002_v53 = vld [vmem:[#allocation2 + $0x98] sm:$0xff] (!%p1354_p5)  ;;  %v1027_v61 = vadd.f32 (!%p1354_p5), %v1999_v9, %v999_v46  ;;  %1066 = vst [vmem:[%s1953_s25 + $0x68] sm:$0xff] (!%p1354_p5), %v1045_v59 }
 0x18a   : > { %v1408_v0 = vpop.f32.mrb[21].mxu0  ;;  %1067 = vst [vmem:[%s1953_s25 + $0x70] sm:$0xff] (!%p1354_p5), %v1046_v60 }
 0x18b   : > { %v1409_v1 = vadd.f32 %v1408_v0, %v1407_v62  ;;  %v1410_v2 = vpop.f32.mrb[22].mxu0  ;;  %982 = sbr.rel (%p1354_p5) target bundleno = 414 (0x19e), region = 119  ;;  %v1039_v42 = vmax.f32 (!%p1354_p5), %v1018_v32, 0.0  ;;  %1059 = vst [vmem:[%s1953_s25 + $0x30] sm:$0xff] (!%p1354_p5), %v1038_v37  ;;  %v1028_v62 = vadd.f32 (!%p1354_p5), %v1999_v9, %v1000_v47  ;;  %v1029_v0 = vadd.f32 (!%p1354_p5), %v1999_v9, %v1001_v52 }
 0x18c   : > { %v1411_v4 = vpop.f32.mrb[23].mxu0 }
 0x18d   : > { %v947_v5 = vadd.f32 %v1409_v1, %v550_v63  ;;  %v1412_v6 = vadd.f32 %v1411_v4, %v1410_v2  ;;  %1060 = vst [vmem:[%s1953_s25 + $0x38] sm:$0xff] (!%p1354_p5), %v1039_v42  ;;  %v1047_v63 = vmax.f32 (!%p1354_p5), %v1026_v58, 0.0  ;;  %v1030_v1 = vadd.f32 (!%p1354_p5), %v1999_v9, %v1002_v53 }
 0x18e   : > { %v991_v26 = vld [vmem:[#allocation2 + $0x40] sm:$0xff] (!%p1354_p5)  ;;  %v1049_v4 = vmax.f32 (!%p1354_p5), %v1028_v62, 0.0 }
 0x18f   : > { %968 = vst [vmem:[#allocation2 + $0x50] sm:$0xff] %v947_v5  ;;  %v948_v7 = vadd.f32 %v1412_v6, %v551_v3  ;;  %v1019_v38 = vadd.f32 (!%p1354_p5), %v1999_v9, %v991_v26  ;;  %v1003_v54 = vld [vmem:[#allocation2 + $0xa0] sm:$0xff] (!%p1354_p5)  ;;  %v1048_v3 = vmax.f32 (!%p1354_p5), %v1027_v61, 0.0  ;;  %1068 = vst [vmem:[%s1953_s25 + $0x78] sm:$0xff] (!%p1354_p5), %v1047_v63  ;;  %v1050_v5 = vmax.f32 (!%p1354_p5), %v1029_v0, 0.0 }
 0x190   : > { %v992_v27 = vld [vmem:[#allocation2 + $0x48] sm:$0xff] (!%p1354_p5)  ;;  %v1031_v2 = vadd.f32 (!%p1354_p5), %v1999_v9, %v1003_v54  ;;  %v1051_v6 = vmax.f32 (!%p1354_p5), %v1030_v1, 0.0  ;;  %1070 = vst [vmem:[%s1953_s25 + $0x88] sm:$0xff] (!%p1354_p5), %v1049_v4 }
 0x191   : > { %969 = vst [vmem:[#allocation2 + $0x58] sm:$0xff] %v948_v7  ;;  %v1020_v39 = vadd.f32 (!%p1354_p5), %v1999_v9, %v992_v27  ;;  %v1040_v48 = vmax.f32 (!%p1354_p5), %v1019_v38, 0.0  ;;  %1069 = vst [vmem:[%s1953_s25 + $0x80] sm:$0xff] (!%p1354_p5), %v1048_v3 }
 0x192   : > { %v1052_v7 = vmax.f32 %v1031_v2, 0.0  ;;  %1071 = vst [vmem:[%s1953_s25 + $0x90] sm:$0xff] %v1050_v5  ;;  %1072 = vst [vmem:[%s1953_s25 + $0x98] sm:$0xff] %v1051_v6 }
 0x193   : > { %v1041_v49 = vmax.f32 %v1020_v39, 0.0  ;;  %1061 = vst [vmem:[%s1953_s25 + $0x40] sm:$0xff] %v1040_v48 }
 0x194   : > { %1073 = vst [vmem:[%s1953_s25 + $0xa0] sm:$0xff] %v1052_v7 }
 0x195   : > { %1062 = vst [vmem:[%s1953_s25 + $0x48] sm:$0xff] %v1041_v49 }
 0x196   : > { %v993_v28 = vld [vmem:[#allocation2 + $0x50] sm:$0xff] }
 0x197   : > { %v1021_v43 = vadd.f32 %v1999_v9, %v993_v28 }
 0x198   : > { %v994_v33 = vld [vmem:[#allocation2 + $0x58] sm:$0xff] }
 0x199   : > { %v1022_v44 = vadd.f32 %v1999_v9, %v994_v33  ;;  %v1042_v55 = vmax.f32 %v1021_v43, 0.0 }
 0x19b   : > { %v1043_v56 = vmax.f32 %v1022_v44, 0.0  ;;  %1063 = vst [vmem:[%s1953_s25 + $0x50] sm:$0xff] %v1042_v55 }
 0x19d   : > { %1064 = vst [vmem:[%s1953_s25 + $0x58] sm:$0xff] %v1043_v56 }
 0x19e PF: > { %1080 = sbr.rel (!%p1802_p12) target bundleno = 427 (0x1ab), region = 123  ;;  %s1356_s14 = sshll.u32 (%p1802_p12), %s1673_s19, 3  ;;  %v1153_v8 = vld [vmem:[%s1953_s25] sm:$0xff] (%p1802_p12)  ;;  %v1155_v9 = vld [vmem:[%s1953_s25 + $0x8] sm:$0xff] (%p1802_p12)  ;;  %v1157_v10 = vld [vmem:[%s1953_s25 + $0x10] sm:$0xff] (%p1802_p12) }
 0x19f   : > { %s2052_s5 = scalar_lea.vmem (%p1802_p12), %s2129_s3, %s1356_s14  ;;  %v1159_v11 = vld [vmem:[%s1953_s25 + $0x18] sm:$0xff] (%p1802_p12)  ;;  %v1161_v12 = vld [vmem:[%s1953_s25 + $0x20] sm:$0xff] (%p1802_p12)  ;;  %v1163_v13 = vld [vmem:[%s1953_s25 + $0x28] sm:$0xff] (%p1802_p12) }
 0x1a0   : > { %1154 = vst [vmem:[%s2052_s5] sm:$0xff] (%p1802_p12), %v1153_v8  ;;  %1156 = vst [vmem:[%s2052_s5 + $0x10] sm:$0xff] (%p1802_p12), %v1155_v9  ;;  %v1165_v14 = vld [vmem:[%s1953_s25 + $0x30] sm:$0xff] (%p1802_p12)  ;;  %v1167_v15 = vld [vmem:[%s1953_s25 + $0x38] sm:$0xff] (%p1802_p12) }
 0x1a1   : > { %1158 = vst [vmem:[%s2052_s5 + $0x20] sm:$0xff] (%p1802_p12), %v1157_v10  ;;  %1160 = vst [vmem:[%s2052_s5 + $0x30] sm:$0xff] (%p1802_p12), %v1159_v11  ;;  %v1169_v16 = vld [vmem:[%s1953_s25 + $0x40] sm:$0xff] (%p1802_p12)  ;;  %v1171_v17 = vld [vmem:[%s1953_s25 + $0x48] sm:$0xff] (%p1802_p12) }
 0x1a2   : > { %1162 = vst [vmem:[%s2052_s5 + $0x40] sm:$0xff] (%p1802_p12), %v1161_v12  ;;  %1164 = vst [vmem:[%s2052_s5 + $0x50] sm:$0xff] (%p1802_p12), %v1163_v13  ;;  %v1173_v18 = vld [vmem:[%s1953_s25 + $0x50] sm:$0xff] (%p1802_p12)  ;;  %v1177_v20 = vld [vmem:[%s1953_s25 + $0x60] sm:$0xff] (%p1802_p12) }
 0x1a3   : > { %1166 = vst [vmem:[%s2052_s5 + $0x60] sm:$0xff] (%p1802_p12), %v1165_v14  ;;  %1168 = vst [vmem:[%s2052_s5 + $0x70] sm:$0xff] (%p1802_p12), %v1167_v15  ;;  %v1179_v21 = vld [vmem:[%s1953_s25 + $0x68] sm:$0xff] (%p1802_p12)  ;;  %v1181_v22 = vld [vmem:[%s1953_s25 + $0x70] sm:$0xff] (%p1802_p12) }
 0x1a4   : > { %1170 = vst [vmem:[%s2052_s5 + $0x80] sm:$0xff] (%p1802_p12), %v1169_v16  ;;  %v1175_v19 = vld [vmem:[%s1953_s25 + $0x58] sm:$0xff] (%p1802_p12)  ;;  %1172 = vst [vmem:[%s2052_s5 + $0x90] sm:$0xff] (%p1802_p12), %v1171_v17  ;;  %v1185_v24 = vld [vmem:[%s1953_s25 + $0x80] sm:$0xff] (%p1802_p12) }
 0x1a5   : > { %1174 = vst [vmem:[%s2052_s5 + $0xa0] sm:$0xff] %v1173_v18  ;;  %1176 = vst [vmem:[%s2052_s5 + $0xb0] sm:$0xff] %v1175_v19  ;;  %v1183_v23 = vld [vmem:[%s1953_s25 + $0x78] sm:$0xff]  ;;  %v1187_v25 = vld [vmem:[%s1953_s25 + $0x88] sm:$0xff] }
 0x1a6   : > { %1178 = vst [vmem:[%s2052_s5 + $0xc0] sm:$0xff] %v1177_v20  ;;  %1180 = vst [vmem:[%s2052_s5 + $0xd0] sm:$0xff] %v1179_v21  ;;  %v1189_v26 = vld [vmem:[%s1953_s25 + $0x90] sm:$0xff]  ;;  %v1191_v27 = vld [vmem:[%s1953_s25 + $0x98] sm:$0xff] }
 0x1a7   : > { %1182 = vst [vmem:[%s2052_s5 + $0xe0] sm:$0xff] %v1181_v22  ;;  %1184 = vst [vmem:[%s2052_s5 + $0xf0] sm:$0xff] %v1183_v23  ;;  %v1193_v28 = vld [vmem:[%s1953_s25 + $0xa0] sm:$0xff] }
 0x1a8   : > { %1186 = vst [vmem:[%s2052_s5 + $0x100] sm:$0xff] %v1185_v24  ;;  %1188 = vst [vmem:[%s2052_s5 + $0x110] sm:$0xff] %v1187_v25 }
 0x1a9   : > { %1190 = vst [vmem:[%s2052_s5 + $0x120] sm:$0xff] %v1189_v26  ;;  %1192 = vst [vmem:[%s2052_s5 + $0x130] sm:$0xff] %v1191_v27 }
 0x1aa   : > { %1194 = vst [vmem:[%s2052_s5 + $0x140] sm:$0xff] %v1193_v28 }
 0x1ab PF: > { %s13_s22 = sadd.s32 1, %s1685_s22   ;;  %s2139_s10 = sld [smem:[#allocation6_spill]] }
 0x1ac   : > { %p10_p6 = scmp.ge.s32.totalorder %s13_s22, 16   ;;  %s2140_s12 = smov %s1649_s13 }
 0x1ad   : > { %s2141_s13 = smov %s1800_s9  ;;  %s2142_s14 = smov %s1657_s15 }
 0x1ae   : > { %s2143_s15 = smov %s1797_s8  ;;  %s2144_s16 = smov %s1665_s17 }
 0x1af   : > { %s2145_s17 = smov %s1783_s30  ;;  %s2146_s18 = smov %s1677_s20 }
 0x1b0   : > { %s2147_s19 = smov %s1681_s21  ;;  %s2148_s20 = smov %s2151_s24 }
 0x1b1   : > { %s2149_s21 = smov %s2139_s10  ;;  %12 = sbr.rel (!%p10_p6) target bundleno = 9 (0x9), region = 203 }

// kernel: mixed_6a_forward.5
= control target key start
LH: loop header
LB: loop body
LE: loop exit
PB: predicated region body
PF: predicated region fallthrough
CT: control target
= control target key end

     0   :  { %s1445_s0 = inlined_call_operand.vmem [shape: bf16[32,2304], index: 0, kind: input, shape index: {}]   ;;  %s1446_s1 = inlined_call_operand.vmem [shape: bf16[2304,384], index: 1, kind: input, shape index: {}]   ;;  %s1447_s2 = inlined_call_operand.vmem [shape: f32[1,384], index: 2, kind: input, shape index: {}]   ;;  %s1448_s3 = inlined_call_operand.vmem [shape: f32[32,896], index: 3, kind: input, shape index: {}, may-alias: {3,4}]   ;;  %s1449_s4 = inlined_call_operand.vmem [shape: f32[32,896], index: 4, kind: output, shape index: {}, may-alias: {3,4}]  }
   0x1   :  { %1451 = sst [smem:[#allocation7_spill]] %s1445_s0 }
   0x2   :  { %1452 = sst [smem:[#allocation8_spill]] %s1446_s1 }
   0x3   :  { %s1170_s15 = smov 0   ;;  %s1172_s16 = smov 0  }
   0x4   :  { %s1174_s17 = smov 0   ;;  %s1176_s18 = smov 0  }
   0x5   :  { %s1178_s19 = smov 0   ;;  %s1180_s20 = smov 0  }
   0x6   :  { %s1182_s21 = smov 0   ;;  %s1184_s22 = smov 0  }
   0x7   :  { %s1186_s3 = smov 0   ;;  %s1188_s23 = smov 0  }
   0x8   :  { %s1190_s24 = smov 0  }
   0x9 LB: > { %s857_s25 = sadd.s32 4294967295, %s1142_s24   ;;  %s26_s26 = sadd.s32 1, %s1134_s3  ;;  %s1142_s24 = sphi %s1190_s24, %s14_s24   ;;  %s1138_s23 = sphi %s1188_s23, %s1469_s23   ;;  %s1134_s3 = sphi %s1186_s3, %s1468_s3   ;;  %s1130_s22 = sphi %s1184_s22, %s1467_s22   ;;  %s1126_s21 = sphi %s1182_s21, %s1466_s21   ;;  %s1122_s20 = sphi %s1180_s20, %s1465_s20   ;;  %s1118_s19 = sphi %s1178_s19, %s1464_s19   ;;  %s1114_s18 = sphi %s1176_s18, %s1463_s18   ;;  %s1110_s17 = sphi %s1174_s17, %s1462_s17   ;;  %s1106_s16 = sphi %s1172_s16, %s1461_s16   ;;  %s1102_s15 = sphi %s1170_s15, %s1460_s15  }
   0xa   : > { %p27_p0 = scmp.ge.s32.totalorder %s26_s26, 9  ;;  %s29_s27 = sadd.s32 1, %s1138_s23 }
   0xb   : > { %s42_s28 = sadd.s32 1, %s1122_s20  ;;  %p49_p1 = scmp.ne.s32.totalorder %s1122_s20, %s1118_s19 }
   0xc   : > { %s1471_s26 = smov (%p27_p0, %s26_s26), 0  ;;  %s1473_s27 = smov (!%p27_p0, %s29_s27), %s1138_s23 }
   0xd   : > { %s38_s29 = ssub.s32 %s1134_s3, %s1471_s26  ;;  %p50_p2 = scmp.eq.s32.totalorder %s1142_s24, 0 }
   0xe   : > { %p31_p3 = scmp.ge.s32.totalorder %s1473_s27, 3  ;;  %p40_p4 = scmp.eq.s32.totalorder %s38_s29, 0 }
   0xf   : > { %p1237_p5 = por %p50_p2, %p49_p1  ;;  %s70_s5 = sadd.s32 1, %s1114_s18 }
  0x10   : > { %s1475_s27 = smov (%p31_p3, %s1473_s27), 0  ;;  %p77_p6 = scmp.ne.s32.totalorder %s1114_s18, %s1110_s17 }
  0x11   : > { %1454 = sst [smem:[#allocation6_spill]] %s1475_s27  ;;  %s66_s7 = ssub.s32 %s1138_s23, %s1475_s27 }
  0x12   : > { %s1245_s6 = scalar_select %p40_p4, %s1122_s20, %s42_s28  }
  0x13   : > { %s67_s8 = sor.u32 %s66_s7, %s38_s29  ;;  %p122_p7 = scmp.eq.s32.totalorder %s66_s7, 0 }
  0x14   : > { %p68_p8 = scmp.eq.s32.totalorder %s67_s8, 0  ;;  %p1251_p9 = por %p77_p6, %p50_p2 }
  0x15   : > { %s124_s10 = sadd.s32 1, %s1106_s16  ;;  %p134_p10 = scmp.ne.s32.totalorder %s1106_s16, %s1102_s15 }
  0x16   : > { %s1259_s11 = scalar_select %p68_p8, %s1114_s18, %s70_s5  }
  0x17   : > { %s1262_s12 = scalar_select %p122_p7, %s1106_s16, %s124_s10  }
  0x18   : > { %p135_p11 = scmp.eq.s32.totalorder %s857_s25, 26  ;;  %p860_p13 = scmp.ge.s32.totalorder %s1142_s24, 27 }
  0x1a   : > { %p1264_p12 = por %p135_p11, %p134_p10  ;;  %157 = sbr.rel (%p860_p13) target bundleno = 76 (0x4c), region = 16 }
  0x21   : > { %160 = sbr.rel (!%p1237_p5) target bundleno = 45 (0x2d), region = 20  ;;  %s162_s14 = sand.u32 (%p1237_p5), 1, %s1122_s20  }
  0x22   : > { %s899_s28 = sshll.u32 (%p1237_p5), %s1134_s3, 3  ;;  %s861_s29 = sshll.u32 (%p1237_p5), %s162_s14, 5 }
  0x23   : > { %s1457_s0 = sld [smem:[#allocation7_spill]] (%p1237_p5)  ;;  %s164_s25 = scalar_lea.vmem (%p1237_p5), [#allocation3], %s861_s29 }
  0x29   : > { %s170_s8 = scalar_lea.vmem %s1457_s0, %s899_s28 }
  0x2a   : > { %v204_v0 = vld [vmem:[%s170_s8] sm:$0xff]  ;;  %v206_v1 = vld [vmem:[%s170_s8 + $0x48] sm:$0xff]  ;;  %v208_v2 = vld [vmem:[%s170_s8 + $0x90] sm:$0xff] }
  0x2b   : > { %205 = vst [vmem:[%s164_s25] sm:$0xff] %v204_v0  ;;  %207 = vst [vmem:[%s164_s25 + $0x8] sm:$0xff] %v206_v1  ;;  %v210_v3 = vld [vmem:[%s170_s8 + $0xd8] sm:$0xff] }
  0x2c   : > { %209 = vst [vmem:[%s164_s25 + $0x10] sm:$0xff] %v208_v2  ;;  %211 = vst [vmem:[%s164_s25 + $0x18] sm:$0xff] %v210_v3 }
  0x2d PF: > { %217 = sbr.rel (!%p1251_p9) target bundleno = 76 (0x4c), region = 58  ;;  %s219_s30 = sand.u32 (%p1251_p9), 1, %s1114_s18  }
  0x2e   : > { %s944_s10 = smul.u32 (%p1251_p9), 96, %s1134_s3  ;;  %s864_s14 = sshll.u32 (%p1251_p9), %s219_s30, 7 }
  0x2f   : > { %s1458_s1 = sld [smem:[#allocation8_spill]] (%p1251_p9)  ;;  %s1289_s9 = scalar_lea.vmem (%p1251_p9), [#allocation4], %s864_s14 }
  0x30   : > { %s224_s28 = sadd.s32 (%p1251_p9), %s1138_s23, %s944_s10 }
  0x31   : > { %s867_s5 = sshll.u32 (%p1251_p9), %s224_s28, 2 }
  0x35   : > { %s1284_s29 = scalar_lea.vmem %s1458_s1, %s867_s5 }
  0x36   : > { %v242_v4 = vld [vmem:[%s1284_s29] sm:$0xf]  ;;  %v244_v5 = vld [vmem:[%s1284_s29 + $0xc] sm:$0xf]  ;;  %v246_v6 = vld [vmem:[%s1284_s29 + $0x18] sm:$0xf] }
  0x37   : > { %243 = vst [vmem:[%s1289_s9] sm:$0xf] %v242_v4  ;;  %245 = vst [vmem:[%s1289_s9 + $0x4] sm:$0xf] %v244_v5  ;;  %v248_v7 = vld [vmem:[%s1284_s29 + $0x24] sm:$0xf] }
  0x38   : > { %247 = vst [vmem:[%s1289_s9 + $0x8] sm:$0xf] %v246_v6  ;;  %v250_v8 = vld [vmem:[%s1284_s29 + $0x30] sm:$0xf]  ;;  %v252_v9 = vld [vmem:[%s1284_s29 + $0x3c] sm:$0xf] }
  0x39   : > { %249 = vst [vmem:[%s1289_s9 + $0xc] sm:$0xf] %v248_v7  ;;  %251 = vst [vmem:[%s1289_s9 + $0x10] sm:$0xf] %v250_v8  ;;  %v254_v10 = vld [vmem:[%s1284_s29 + $0x48] sm:$0xf] }
  0x3a   : > { %253 = vst [vmem:[%s1289_s9 + $0x14] sm:$0xf] %v252_v9  ;;  %v256_v11 = vld [vmem:[%s1284_s29 + $0x54] sm:$0xf]  ;;  %v258_v12 = vld [vmem:[%s1284_s29 + $0x60] sm:$0xf] }
  0x3b   : > { %255 = vst [vmem:[%s1289_s9 + $0x18] sm:$0xf] %v254_v10  ;;  %257 = vst [vmem:[%s1289_s9 + $0x1c] sm:$0xf] %v256_v11  ;;  %v260_v13 = vld [vmem:[%s1284_s29 + $0x6c] sm:$0xf] }
  0x3c   : > { %259 = vst [vmem:[%s1289_s9 + $0x20] sm:$0xf] %v258_v12  ;;  %v262_v14 = vld [vmem:[%s1284_s29 + $0x78] sm:$0xf]  ;;  %v264_v15 = vld [vmem:[%s1284_s29 + $0x84] sm:$0xf] }
  0x3d   : > { %261 = vst [vmem:[%s1289_s9 + $0x24] sm:$0xf] %v260_v13  ;;  %263 = vst [vmem:[%s1289_s9 + $0x28] sm:$0xf] %v262_v14  ;;  %v266_v16 = vld [vmem:[%s1284_s29 + $0x90] sm:$0xf] }
  0x3e   : > { %265 = vst [vmem:[%s1289_s9 + $0x2c] sm:$0xf] %v264_v15  ;;  %v268_v17 = vld [vmem:[%s1284_s29 + $0x9c] sm:$0xf]  ;;  %v270_v18 = vld [vmem:[%s1284_s29 + $0xa8] sm:$0xf] }
  0x3f   : > { %267 = vst [vmem:[%s1289_s9 + $0x30] sm:$0xf] %v266_v16  ;;  %269 = vst [vmem:[%s1289_s9 + $0x34] sm:$0xf] %v268_v17  ;;  %v272_v19 = vld [vmem:[%s1284_s29 + $0xb4] sm:$0xf] }
  0x40   : > { %271 = vst [vmem:[%s1289_s9 + $0x38] sm:$0xf] %v270_v18  ;;  %v274_v20 = vld [vmem:[%s1284_s29 + $0xc0] sm:$0xf]  ;;  %v276_v21 = vld [vmem:[%s1284_s29 + $0xcc] sm:$0xf] }
  0x41   : > { %273 = vst [vmem:[%s1289_s9 + $0x3c] sm:$0xf] %v272_v19  ;;  %275 = vst [vmem:[%s1289_s9 + $0x40] sm:$0xf] %v274_v20  ;;  %v278_v22 = vld [vmem:[%s1284_s29 + $0xd8] sm:$0xf] }
  0x42   : > { %277 = vst [vmem:[%s1289_s9 + $0x44] sm:$0xf] %v276_v21  ;;  %v280_v23 = vld [vmem:[%s1284_s29 + $0xe4] sm:$0xf]  ;;  %v282_v24 = vld [vmem:[%s1284_s29 + $0xf0] sm:$0xf] }
  0x43   : > { %279 = vst [vmem:[%s1289_s9 + $0x48] sm:$0xf] %v278_v22  ;;  %281 = vst [vmem:[%s1289_s9 + $0x4c] sm:$0xf] %v280_v23  ;;  %v284_v25 = vld [vmem:[%s1284_s29 + $0xfc] sm:$0xf] }
  0x44   : > { %283 = vst [vmem:[%s1289_s9 + $0x50] sm:$0xf] %v282_v24  ;;  %v286_v26 = vld [vmem:[%s1284_s29 + $0x108] sm:$0xf]  ;;  %v288_v27 = vld [vmem:[%s1284_s29 + $0x114] sm:$0xf] }
  0x45   : > { %285 = vst [vmem:[%s1289_s9 + $0x54] sm:$0xf] %v284_v25  ;;  %287 = vst [vmem:[%s1289_s9 + $0x58] sm:$0xf] %v286_v26  ;;  %v290_v28 = vld [vmem:[%s1284_s29 + $0x120] sm:$0xf] }
  0x46   : > { %289 = vst [vmem:[%s1289_s9 + $0x5c] sm:$0xf] %v288_v27  ;;  %v292_v29 = vld [vmem:[%s1284_s29 + $0x12c] sm:$0xf]  ;;  %v294_v30 = vld [vmem:[%s1284_s29 + $0x138] sm:$0xf] }
  0x47   : > { %291 = vst [vmem:[%s1289_s9 + $0x60] sm:$0xf] %v290_v28  ;;  %293 = vst [vmem:[%s1289_s9 + $0x64] sm:$0xf] %v292_v29  ;;  %v296_v31 = vld [vmem:[%s1284_s29 + $0x144] sm:$0xf] }
  0x48   : > { %295 = vst [vmem:[%s1289_s9 + $0x68] sm:$0xf] %v294_v30  ;;  %v298_v32 = vld [vmem:[%s1284_s29 + $0x150] sm:$0xf]  ;;  %v300_v33 = vld [vmem:[%s1284_s29 + $0x15c] sm:$0xf] }
  0x49   : > { %297 = vst [vmem:[%s1289_s9 + $0x6c] sm:$0xf] %v296_v31  ;;  %299 = vst [vmem:[%s1289_s9 + $0x70] sm:$0xf] %v298_v32  ;;  %v302_v34 = vld [vmem:[%s1284_s29 + $0x168] sm:$0xf] }
  0x4a   : > { %301 = vst [vmem:[%s1289_s9 + $0x74] sm:$0xf] %v300_v33  ;;  %v304_v35 = vld [vmem:[%s1284_s29 + $0x174] sm:$0xf]  ;;  %303 = vst [vmem:[%s1289_s9 + $0x78] sm:$0xf] %v302_v34 }
  0x4b   : > { %305 = vst [vmem:[%s1289_s9 + $0x7c] sm:$0xf] %v304_v35 }
  0x4c PF: > { %p868_p0 = scmp.ge.s32.totalorder %s1142_s24, 1  ;;  %p397_p1 = scmp.lt.s32.totalorder %s1142_s24, 28 }
  0x4e   : > { %p398_p2 = pnand %p868_p0, %p397_p1 }
  0x4f   : > { %s404_s0 = sand.u32 (!%p398_p2), 1, %s1118_s19   ;;  %s411_s8 = sand.u32 (!%p398_p2), 1, %s1110_s17  }
  0x50   : > { %401 = sbr.rel (%p398_p2) target bundleno = 368 (0x170), region = 103  ;;  %s869_s25 = sshll.u32 (!%p398_p2), %s404_s0, 5 }
  0x51   : > { %s870_s30 = sshll.u32 (!%p398_p2), %s411_s8, 7  ;;  %s437_s10 = sand.u32 (!%p398_p2), 1, %s1102_s15  }
  0x52   : > { %p443_p3 = scmp.lt.s32.totalorder (!%p398_p2), %s1130_s22, 2  ;;  %s871_s14 = sshll.u32 (!%p398_p2), %s437_s10, 5 }
  0x53   : > { %s1365_s9 = scalar_lea.vmem (!%p398_p2), [#allocation3], %s869_s25  ;;  %s1367_s1 = scalar_lea.vmem (!%p398_p2), [#allocation4], %s870_s30 }
  0x54   : > { %s1369_s27 = scalar_lea.vmem (!%p398_p2), [#allocation5], %s871_s14  ;;  %p872_p4 = scmp.ne.s32.totalorder (!%p398_p2), %s1126_s21, 0 }
  0x57   : > { %s1359_s28 = scalar_select %p443_p3, %s1130_s22, 2 }
  0x58   : > { %451 = sbr.rel (%p872_p4) target bundleno = 95 (0x5f), region = 115  ;;  %v1144_v36 = vmov (!%p872_p4), 0.0  }
  0x59   : > { %s445_s29 = scalar_lea.vmem %s1447_s2, %s1359_s28  ;;  %452 = vst [vmem:[#allocation2] sm:$0xff] (!%p872_p4), %v1144_v36  ;;  %453 = vst [vmem:[#allocation2 + $0x8] sm:$0xff] (!%p872_p4), %v1144_v36 }
  0x5a   : > { %454 = vst [vmem:[#allocation2 + $0x10] sm:$0xff] (!%p872_p4), %v1144_v36  ;;  %455 = vst [vmem:[#allocation2 + $0x18] sm:$0xff] (!%p872_p4), %v1144_v36 }
  0x5f PF: > { %v1034_v37 = vld [vmem:[%s1367_s1 + $0x40] sm:$0xff]   ;;  %v1036_v39 = vld [vmem:[%s1367_s1 + $0x48] sm:$0xff]   ;;  %v1038_v41 = vld [vmem:[%s1367_s1 + $0x50] sm:$0xff]   ;;  %p893_p5 = scmp.ne.s32.totalorder %s1126_s21, 8 }
  0x60   : > { %v1035_v38 = vld [vmem:[%s1367_s1] sm:$0xff]   ;;  %900 = vmatprep.subr.bf16.mxu0 %v1034_v37  ;;  %928 = vmatprep.subr.bf16.mxu1 %v1034_v37  ;;  %v1037_v40 = vld [vmem:[%s1367_s1 + $0x8] sm:$0xff]   ;;  %v1039_v42 = vld [vmem:[%s1367_s1 + $0x10] sm:$0xff]  }
  0x61   : > { %901 = vmatpush3.bf16.msra.mxu0 %v1035_v38  ;;  %936 = vmatpush3.bf16.msra.mxu1 %v1035_v38  ;;  %v1040_v43 = vld [vmem:[%s1367_s1 + $0x58] sm:$0xff]   ;;  %v1042_v45 = vld [vmem:[%s1367_s1 + $0x60] sm:$0xff]   ;;  %v1044_v47 = vld [vmem:[%s1367_s1 + $0x68] sm:$0xff]  }
  0x62   : > { %902 = vmatprep.subr.bf16.mxu0 %v1036_v39  ;;  %929 = vmatprep.subr.bf16.mxu1 %v1036_v39  ;;  %v1041_v44 = vld [vmem:[%s1367_s1 + $0x18] sm:$0xff]   ;;  %v1043_v46 = vld [vmem:[%s1367_s1 + $0x20] sm:$0xff]   ;;  %v1045_v50 = vld [vmem:[%s1367_s1 + $0x28] sm:$0xff]  }
  0x63   : > { %v1052_v48 = vld [vmem:[%s1365_s9 + $0x4] ss:$8 sps:$4 sm:$0xff]   ;;  %v1055_v49 = vld [vmem:[%s1365_s9 + $0x14] ss:$8 sps:$4 sm:$0xff]   ;;  %v1050_v55 = vld [vmem:[%s1365_s9] ss:$8 sps:$4 sm:$0xff]  }
  0x64   : > { %v1046_v51 = vld [vmem:[%s1367_s1 + $0x70] sm:$0xff]   ;;  %644 = vmatprep.mubr.bf16.mxu0 %v1052_v48  ;;  %652 = vmatprep.mubr.bf16.mxu1 %v1055_v49  ;;  %v1048_v53 = vld [vmem:[%s1367_s1 + $0x78] sm:$0xff]   ;;  %v456_v59 = vld [vmem:[#allocation2] sm:$0xff] }
  0x65   : > { %903 = vmatpush3.bf16.msra.mxu0 %v1037_v40  ;;  %937 = vmatpush3.bf16.msra.mxu1 %v1037_v40  ;;  %v1047_v52 = vld [vmem:[%s1367_s1 + $0x30] sm:$0xff]   ;;  %v1049_v54 = vld [vmem:[%s1367_s1 + $0x38] sm:$0xff]   ;;  %v457_v3 = vld [vmem:[#allocation2 + $0x8] sm:$0xff] }
  0x66   : > { %904 = vmatprep.subr.bf16.mxu0 %v1038_v41  ;;  %930 = vmatprep.subr.bf16.mxu1 %v1038_v41  ;;  %v1053_v56 = vld [vmem:[%s1365_s9 + $0x10] ss:$8 sps:$4 sm:$0xff]   ;;  %v894_v14 = vld [vmem:[%s445_s29] ss:$0 sm:$0xff] (!%p893_p5) }
  0x67   : > { %v458_v61 = vld [vmem:[#allocation2 + $0x10] sm:$0xff]  ;;  %v459_v5 = vld [vmem:[#allocation2 + $0x18] sm:$0xff] }
  0x69   : > { %905 = vmatpush3.bf16.msra.mxu0 %v1039_v42  ;;  %938 = vmatpush3.bf16.msra.mxu1 %v1039_v42 }
  0x6a   : > { %906 = vmatprep.subr.bf16.mxu0 %v1040_v43  ;;  %931 = vmatprep.subr.bf16.mxu1 %v1040_v43 }
  0x6d   : > { %907 = vmatpush3.bf16.msra.mxu0 %v1041_v44  ;;  %939 = vmatpush3.bf16.msra.mxu1 %v1041_v44 }
  0x6e   : > { %908 = vmatprep.subr.bf16.mxu0 %v1042_v45  ;;  %932 = vmatprep.subr.bf16.mxu1 %v1042_v45 }
  0x71   : > { %909 = vmatpush3.bf16.msra.mxu0 %v1043_v46  ;;  %940 = vmatpush3.bf16.msra.mxu1 %v1043_v46 }
  0x72   : > { %910 = vmatprep.subr.bf16.mxu0 %v1044_v47  ;;  %933 = vmatprep.subr.bf16.mxu1 %v1044_v47 }
  0x75   : > { %911 = vmatpush3.bf16.msra.mxu0 %v1045_v50  ;;  %941 = vmatpush3.bf16.msra.mxu1 %v1045_v50 }
  0x76   : > { %912 = vmatprep.subr.bf16.mxu0 %v1046_v51  ;;  %934 = vmatprep.subr.bf16.mxu1 %v1046_v51 }
  0x79   : > { %913 = vmatpush3.bf16.msra.mxu0 %v1047_v52  ;;  %942 = vmatpush3.bf16.msra.mxu1 %v1047_v52 }
  0x7a   : > { %914 = vmatprep.subr.bf16.mxu0 %v1048_v53  ;;  %935 = vmatprep.subr.bf16.mxu1 %v1048_v53 }
  0x7d   : > { %915 = vmatpush3.bf16.msra.mxu0 %v1049_v54  ;;  %943 = vmatpush3.bf16.msra.mxu1 %v1049_v54 }
  0x80   : > { %645 = vmatmul.mubr.bf16.vlgmr.msra.gmra.mrb[0].mxu0 %v1050_v55  ;;  %653 = vmatmul.mubr.bf16.vlgmr.msra.gmra.mrb[0].mxu1 %v1053_v56 }
 0x153   : > { %v916_v57 = vpop.f32.mrb[0].mxu0  ;;  %v922_v58 = vpop.f32.mrb[0].mxu1 }
 0x154   : > { %v917_v60 = vpop.f32.mrb[1].mxu0  ;;  %v923_v62 = vpop.f32.mrb[1].mxu1 }
 0x155   : > { %v918_v63 = vadd.f32 %v917_v60, %v916_v57  ;;  %v924_v0 = vadd.f32 %v923_v62, %v922_v58  ;;  %v919_v1 = vpop.f32.mrb[2].mxu0  ;;  %v925_v2 = vpop.f32.mrb[2].mxu1  ;;  %672 = sbr.rel (%p893_p5) target bundleno = 360 (0x168), region = 119 }
 0x156   : > { %v920_v4 = vpop.f32.mrb[3].mxu0  ;;  %v926_v6 = vpop.f32.mrb[3].mxu1 }
 0x157   : > { %v661_v7 = vadd.f32 %v918_v63, %v456_v59  ;;  %v663_v8 = vadd.f32 %v924_v0, %v458_v61  ;;  %v921_v9 = vadd.f32 %v920_v4, %v919_v1  ;;  %v927_v10 = vadd.f32 %v926_v6, %v925_v2 }
 0x159   : > { %665 = vst [vmem:[#allocation2] sm:$0xff] %v661_v7  ;;  %667 = vst [vmem:[#allocation2 + $0x10] sm:$0xff] %v663_v8  ;;  %v662_v11 = vadd.f32 %v921_v9, %v457_v3  ;;  %v664_v12 = vadd.f32 %v927_v10, %v459_v5 }
 0x15b   : > { %666 = vst [vmem:[#allocation2 + $0x8] sm:$0xff] %v662_v11  ;;  %668 = vst [vmem:[#allocation2 + $0x18] sm:$0xff] %v664_v12 }
 0x160   : > { %v673_v13 = vld [vmem:[#allocation2] sm:$0xff]  ;;  %v675_v18 = vld [vmem:[#allocation2 + $0x10] sm:$0xff] }
 0x161   : > { %v684_v16 = vadd.f32 %v894_v14, %v673_v13  ;;  %v686_v20 = vadd.f32 %v894_v14, %v675_v18 }
 0x162   : > { %v674_v15 = vld [vmem:[#allocation2 + $0x8] sm:$0xff]  ;;  %v676_v19 = vld [vmem:[#allocation2 + $0x18] sm:$0xff] }
 0x163   : > { %v685_v17 = vadd.f32 %v894_v14, %v674_v15  ;;  %v687_v21 = vadd.f32 %v894_v14, %v676_v19  ;;  %v688_v22 = vmax.f32 %v684_v16, 0.0  ;;  %v690_v24 = vmax.f32 %v686_v20, 0.0 }
 0x165   : > { %v689_v23 = vmax.f32 %v685_v17, 0.0  ;;  %v691_v25 = vmax.f32 %v687_v21, 0.0  ;;  %692 = vst [vmem:[%s1369_s27] sm:$0xff] %v688_v22  ;;  %694 = vst [vmem:[%s1369_s27 + $0x10] sm:$0xff] %v690_v24 }
 0x167   : > { %693 = vst [vmem:[%s1369_s27 + $0x8] sm:$0xff] %v689_v23  ;;  %695 = vst [vmem:[%s1369_s27 + $0x18] sm:$0xff] %v691_v25 }
 0x168 PF: > { %702 = sbr.rel (!%p1264_p12) target bundleno = 368 (0x170), region = 123  ;;  %s896_s17 = sshll.u32 (%p1264_p12), %s1130_s22, 3 }
 0x169   : > { %s707_s0 = scalar_lea.vmem (%p1264_p12), %s1449_s4, %s896_s17 }
 0x16c   : > { %v741_v26 = vld [vmem:[%s1369_s27] sm:$0xff] (%p1264_p12)  ;;  %v745_v28 = vld [vmem:[%s1369_s27 + $0x10] sm:$0xff] (%p1264_p12) }
 0x16d   : > { %742 = vst [vmem:[%s707_s0] sm:$0xff] (%p1264_p12), %v741_v26  ;;  %746 = vst [vmem:[%s707_s0 + $0x70] sm:$0xff] (%p1264_p12), %v745_v28 }
 0x16e   : > { %v743_v27 = vld [vmem:[%s1369_s27 + $0x8] sm:$0xff] (%p1264_p12)  ;;  %v747_v29 = vld [vmem:[%s1369_s27 + $0x18] sm:$0xff] (%p1264_p12) }
 0x16f   : > { %744 = vst [vmem:[%s707_s0 + $0x38] sm:$0xff] %v743_v27  ;;  %748 = vst [vmem:[%s707_s0 + $0xa8] sm:$0xff] %v747_v29 }
 0x170 PF: > { %s14_s24 = sadd.s32 1, %s1142_s24   ;;  %s1459_s13 = sld [smem:[#allocation6_spill]] }
 0x171   : > { %p11_p6 = scmp.ge.s32.totalorder %s14_s24, 29   ;;  %s1460_s15 = smov %s1106_s16 }
 0x172   : > { %s1461_s16 = smov %s1262_s12  ;;  %s1462_s17 = smov %s1114_s18 }
 0x173   : > { %s1463_s18 = smov %s1259_s11  ;;  %s1464_s19 = smov %s1122_s20 }
 0x174   : > { %s1465_s20 = smov %s1245_s6  ;;  %s1466_s21 = smov %s1134_s3 }
 0x175   : > { %s1467_s22 = smov %s1138_s23  ;;  %s1468_s3 = smov %s1471_s26 }
 0x176   : > { %s1469_s23 = smov %s1459_s13  ;;  %13 = sbr.rel (!%p11_p6) target bundleno = 9 (0x9), region = 203 }

// kernel: mixed_6a_forward.8
= control target key start
LH: loop header
LB: loop body
LE: loop exit
PB: predicated region body
PF: predicated region fallthrough
CT: control target
= control target key end

     0   :  { %s1456_s0 = inlined_call_operand.vmem [shape: bf16[32,1792], index: 0, kind: input, shape index: {}]   ;;  %s1457_s1 = inlined_call_operand.vmem [shape: bf16[1792,256], index: 1, kind: input, shape index: {}]   ;;  %s1458_s2 = inlined_call_operand.vmem [shape: f32[1,256], index: 2, kind: input, shape index: {}]   ;;  %s1459_s3 = inlined_call_operand.vmem [shape: f32[32,896], index: 3, kind: input, shape index: {}, may-alias: {3,4}]   ;;  %s1460_s4 = inlined_call_operand.vmem [shape: f32[32,896], index: 4, kind: output, shape index: {}, may-alias: {3,4}]  }
   0x1   :  { %1462 = sst [smem:[#allocation7_spill]] %s1456_s0 }
   0x2   :  { %1463 = sst [smem:[#allocation8_spill]] %s1457_s1 }
   0x3   :  { %s1179_s15 = smov 0   ;;  %s1181_s16 = smov 0  }
   0x4   :  { %s1183_s17 = smov 0   ;;  %s1185_s18 = smov 0  }
   0x5   :  { %s1187_s19 = smov 0   ;;  %s1189_s20 = smov 0  }
   0x6   :  { %s1191_s21 = smov 0   ;;  %s1193_s22 = smov 0  }
   0x7   :  { %s1195_s3 = smov 0   ;;  %s1197_s23 = smov 0  }
   0x8   :  { %s1199_s24 = smov 0  }
   0x9 LB: > { %s862_s25 = sadd.s32 4294967295, %s1151_s24   ;;  %s26_s26 = sadd.s32 1, %s1143_s3  ;;  %s1151_s24 = sphi %s1199_s24, %s14_s24   ;;  %s1147_s23 = sphi %s1197_s23, %s1480_s23   ;;  %s1143_s3 = sphi %s1195_s3, %s1479_s3   ;;  %s1139_s22 = sphi %s1193_s22, %s1478_s22   ;;  %s1135_s21 = sphi %s1191_s21, %s1477_s21   ;;  %s1131_s20 = sphi %s1189_s20, %s1476_s20   ;;  %s1127_s19 = sphi %s1187_s19, %s1475_s19   ;;  %s1123_s18 = sphi %s1185_s18, %s1474_s18   ;;  %s1119_s17 = sphi %s1183_s17, %s1473_s17   ;;  %s1115_s16 = sphi %s1181_s16, %s1472_s16   ;;  %s1111_s15 = sphi %s1179_s15, %s1471_s15  }
   0xa   : > { %p27_p0 = scmp.ge.s32.totalorder %s26_s26, 7  ;;  %s29_s27 = sadd.s32 1, %s1147_s23 }
   0xb   : > { %s42_s28 = sadd.s32 1, %s1131_s20  ;;  %p49_p1 = scmp.ne.s32.totalorder %s1131_s20, %s1127_s19 }
   0xc   : > { %s1482_s26 = smov (%p27_p0, %s26_s26), 0  ;;  %s1484_s27 = smov (!%p27_p0, %s29_s27), %s1147_s23 }
   0xd   : > { %1464 = sst [smem:[#allocation6_spill]] %s1482_s26  ;;  %s38_s29 = ssub.s32 %s1143_s3, %s1482_s26 }
   0xe   : > { %p50_p2 = scmp.eq.s32.totalorder %s1151_s24, 0  ;;  %p31_p3 = scmp.ge.s32.totalorder %s1484_s27, 2 }
   0xf   : > { %p40_p4 = scmp.eq.s32.totalorder %s38_s29, 0  ;;  %s70_s5 = sadd.s32 1, %s1123_s18 }
  0x10   : > { %p1246_p5 = por %p50_p2, %p49_p1  ;;  %s1486_s27 = smov (%p31_p3, %s1484_s27), 0 }
  0x11   : > { %s1254_s6 = scalar_select %p40_p4, %s1131_s20, %s42_s28  }
  0x12   : > { %s66_s7 = ssub.s32 %s1147_s23, %s1486_s27  ;;  %p77_p6 = scmp.ne.s32.totalorder %s1123_s18, %s1119_s17 }
  0x13   : > { %s67_s8 = sor.u32 %s66_s7, %s38_s29  ;;  %s119_s9 = sadd.s32 3, %s1147_s23 }
  0x14   : > { %p68_p7 = scmp.eq.s32.totalorder %s67_s8, 0  ;;  %p1261_p8 = por %p77_p6, %p50_p2 }
  0x15   : > { %s120_s11 = sadd.s32 3, %s1486_s27  ;;  %s126_s12 = sadd.s32 1, %s1115_s16 }
  0x16   : > { %s1268_s13 = scalar_select %p68_p7, %s1123_s18, %s70_s5  }
  0x17   : > { %s122_s14 = ssub.s32 %s119_s9, %s120_s11  ;;  %p136_p9 = scmp.ne.s32.totalorder %s1115_s16, %s1111_s15 }
  0x18   : > { %p124_p10 = scmp.eq.s32.totalorder %s122_s14, 0  ;;  %p137_p11 = scmp.eq.s32.totalorder %s862_s25, 13 }
  0x19   : > { %p865_p13 = scmp.ge.s32.totalorder %s1151_s24, 14 }
  0x1a   : > { %s1273_s26 = scalar_select %p124_p10, %s1115_s16, %s126_s12  }
  0x1b   : > { %p1275_p12 = por %p137_p11, %p136_p9  ;;  %159 = sbr.rel (%p865_p13) target bundleno = 77 (0x4d), region = 16 }
  0x22   : > { %162 = sbr.rel (!%p1246_p5) target bundleno = 46 (0x2e), region = 20  ;;  %s164_s29 = sand.u32 (%p1246_p5), 1, %s1131_s20  }
  0x23   : > { %s908_s5 = sshll.u32 (%p1246_p5), %s1143_s3, 3  ;;  %s866_s7 = sshll.u32 (%p1246_p5), %s164_s29, 5 }
  0x24   : > { %s1468_s0 = sld [smem:[#allocation7_spill]] (%p1246_p5)  ;;  %s166_s11 = scalar_lea.vmem (%p1246_p5), [#allocation3], %s866_s7 }
  0x2a   : > { %s172_s25 = scalar_lea.vmem %s1468_s0, %s908_s5 }
  0x2b   : > { %v206_v0 = vld [vmem:[%s172_s25] sm:$0xff]  ;;  %v208_v1 = vld [vmem:[%s172_s25 + $0x38] sm:$0xff]  ;;  %v210_v2 = vld [vmem:[%s172_s25 + $0x70] sm:$0xff] }
  0x2c   : > { %207 = vst [vmem:[%s166_s11] sm:$0xff] %v206_v0  ;;  %209 = vst [vmem:[%s166_s11 + $0x8] sm:$0xff] %v208_v1  ;;  %v212_v3 = vld [vmem:[%s172_s25 + $0xa8] sm:$0xff] }
  0x2d   : > { %211 = vst [vmem:[%s166_s11 + $0x10] sm:$0xff] %v210_v2  ;;  %213 = vst [vmem:[%s166_s11 + $0x18] sm:$0xff] %v212_v3 }
  0x2e PF: > { %219 = sbr.rel (!%p1261_p8) target bundleno = 77 (0x4d), region = 58  ;;  %s221_s30 = sand.u32 (%p1261_p8), 1, %s1123_s18  }
  0x2f   : > { %s909_s12 = sshll.u32 (%p1261_p8), %s1143_s3, 6  ;;  %s869_s14 = sshll.u32 (%p1261_p8), %s221_s30, 7 }
  0x30   : > { %s226_s29 = sadd.s32 (%p1261_p8), %s1147_s23, %s909_s12  ;;  %s1469_s1 = sld [smem:[#allocation8_spill]] (%p1261_p8) }
  0x31   : > { %s872_s5 = sshll.u32 (%p1261_p8), %s226_s29, 2  ;;  %s1300_s10 = scalar_lea.vmem (%p1261_p8), [#allocation4], %s869_s14 }
  0x36   : > { %s1295_s7 = scalar_lea.vmem %s1469_s1, %s872_s5 }
  0x37   : > { %v244_v4 = vld [vmem:[%s1295_s7] sm:$0xf]  ;;  %v246_v5 = vld [vmem:[%s1295_s7 + $0x8] sm:$0xf]  ;;  %v248_v6 = vld [vmem:[%s1295_s7 + $0x10] sm:$0xf] }
  0x38   : > { %245 = vst [vmem:[%s1300_s10] sm:$0xf] %v244_v4  ;;  %247 = vst [vmem:[%s1300_s10 + $0x4] sm:$0xf] %v246_v5  ;;  %v250_v7 = vld [vmem:[%s1295_s7 + $0x18] sm:$0xf] }
  0x39   : > { %249 = vst [vmem:[%s1300_s10 + $0x8] sm:$0xf] %v248_v6  ;;  %v252_v8 = vld [vmem:[%s1295_s7 + $0x20] sm:$0xf]  ;;  %v254_v9 = vld [vmem:[%s1295_s7 + $0x28] sm:$0xf] }
  0x3a   : > { %251 = vst [vmem:[%s1300_s10 + $0xc] sm:$0xf] %v250_v7  ;;  %253 = vst [vmem:[%s1300_s10 + $0x10] sm:$0xf] %v252_v8  ;;  %v256_v10 = vld [vmem:[%s1295_s7 + $0x30] sm:$0xf] }
  0x3b   : > { %255 = vst [vmem:[%s1300_s10 + $0x14] sm:$0xf] %v254_v9  ;;  %v258_v11 = vld [vmem:[%s1295_s7 + $0x38] sm:$0xf]  ;;  %v260_v12 = vld [vmem:[%s1295_s7 + $0x40] sm:$0xf] }
  0x3c   : > { %257 = vst [vmem:[%s1300_s10 + $0x18] sm:$0xf] %v256_v10  ;;  %259 = vst [vmem:[%s1300_s10 + $0x1c] sm:$0xf] %v258_v11  ;;  %v262_v13 = vld [vmem:[%s1295_s7 + $0x48] sm:$0xf] }
  0x3d   : > { %261 = vst [vmem:[%s1300_s10 + $0x20] sm:$0xf] %v260_v12  ;;  %v264_v14 = vld [vmem:[%s1295_s7 + $0x50] sm:$0xf]  ;;  %v266_v15 = vld [vmem:[%s1295_s7 + $0x58] sm:$0xf] }
  0x3e   : > { %263 = vst [vmem:[%s1300_s10 + $0x24] sm:$0xf] %v262_v13  ;;  %265 = vst [vmem:[%s1300_s10 + $0x28] sm:$0xf] %v264_v14  ;;  %v268_v16 = vld [vmem:[%s1295_s7 + $0x60] sm:$0xf] }
  0x3f   : > { %267 = vst [vmem:[%s1300_s10 + $0x2c] sm:$0xf] %v266_v15  ;;  %v270_v17 = vld [vmem:[%s1295_s7 + $0x68] sm:$0xf]  ;;  %v272_v18 = vld [vmem:[%s1295_s7 + $0x70] sm:$0xf] }
  0x40   : > { %269 = vst [vmem:[%s1300_s10 + $0x30] sm:$0xf] %v268_v16  ;;  %271 = vst [vmem:[%s1300_s10 + $0x34] sm:$0xf] %v270_v17  ;;  %v274_v19 = vld [vmem:[%s1295_s7 + $0x78] sm:$0xf] }
  0x41   : > { %273 = vst [vmem:[%s1300_s10 + $0x38] sm:$0xf] %v272_v18  ;;  %v276_v20 = vld [vmem:[%s1295_s7 + $0x80] sm:$0xf]  ;;  %v278_v21 = vld [vmem:[%s1295_s7 + $0x88] sm:$0xf] }
  0x42   : > { %275 = vst [vmem:[%s1300_s10 + $0x3c] sm:$0xf] %v274_v19  ;;  %277 = vst [vmem:[%s1300_s10 + $0x40] sm:$0xf] %v276_v20  ;;  %v280_v22 = vld [vmem:[%s1295_s7 + $0x90] sm:$0xf] }
  0x43   : > { %279 = vst [vmem:[%s1300_s10 + $0x44] sm:$0xf] %v278_v21  ;;  %v282_v23 = vld [vmem:[%s1295_s7 + $0x98] sm:$0xf]  ;;  %v284_v24 = vld [vmem:[%s1295_s7 + $0xa0] sm:$0xf] }
  0x44   : > { %281 = vst [vmem:[%s1300_s10 + $0x48] sm:$0xf] %v280_v22  ;;  %283 = vst [vmem:[%s1300_s10 + $0x4c] sm:$0xf] %v282_v23  ;;  %v286_v25 = vld [vmem:[%s1295_s7 + $0xa8] sm:$0xf] }
  0x45   : > { %285 = vst [vmem:[%s1300_s10 + $0x50] sm:$0xf] %v284_v24  ;;  %v288_v26 = vld [vmem:[%s1295_s7 + $0xb0] sm:$0xf]  ;;  %v290_v27 = vld [vmem:[%s1295_s7 + $0xb8] sm:$0xf] }
  0x46   : > { %287 = vst [vmem:[%s1300_s10 + $0x54] sm:$0xf] %v286_v25  ;;  %289 = vst [vmem:[%s1300_s10 + $0x58] sm:$0xf] %v288_v26  ;;  %v292_v28 = vld [vmem:[%s1295_s7 + $0xc0] sm:$0xf] }
  0x47   : > { %291 = vst [vmem:[%s1300_s10 + $0x5c] sm:$0xf] %v290_v27  ;;  %v294_v29 = vld [vmem:[%s1295_s7 + $0xc8] sm:$0xf]  ;;  %v296_v30 = vld [vmem:[%s1295_s7 + $0xd0] sm:$0xf] }
  0x48   : > { %293 = vst [vmem:[%s1300_s10 + $0x60] sm:$0xf] %v292_v28  ;;  %295 = vst [vmem:[%s1300_s10 + $0x64] sm:$0xf] %v294_v29  ;;  %v298_v31 = vld [vmem:[%s1295_s7 + $0xd8] sm:$0xf] }
  0x49   : > { %297 = vst [vmem:[%s1300_s10 + $0x68] sm:$0xf] %v296_v30  ;;  %v300_v32 = vld [vmem:[%s1295_s7 + $0xe0] sm:$0xf]  ;;  %v302_v33 = vld [vmem:[%s1295_s7 + $0xe8] sm:$0xf] }
  0x4a   : > { %299 = vst [vmem:[%s1300_s10 + $0x6c] sm:$0xf] %v298_v31  ;;  %301 = vst [vmem:[%s1300_s10 + $0x70] sm:$0xf] %v300_v32  ;;  %v304_v34 = vld [vmem:[%s1295_s7 + $0xf0] sm:$0xf] }
  0x4b   : > { %303 = vst [vmem:[%s1300_s10 + $0x74] sm:$0xf] %v302_v33  ;;  %v306_v35 = vld [vmem:[%s1295_s7 + $0xf8] sm:$0xf]  ;;  %305 = vst [vmem:[%s1300_s10 + $0x78] sm:$0xf] %v304_v34 }
  0x4c   : > { %307 = vst [vmem:[%s1300_s10 + $0x7c] sm:$0xf] %v306_v35 }
  0x4d PF: > { %p873_p0 = scmp.ge.s32.totalorder %s1151_s24, 1  ;;  %p399_p1 = scmp.lt.s32.totalorder %s1151_s24, 15 }
  0x4f   : > { %p400_p2 = pnand %p873_p0, %p399_p1 }
  0x50   : > { %s406_s25 = sand.u32 (!%p400_p2), 1, %s1127_s19   ;;  %s413_s11 = sand.u32 (!%p400_p2), 1, %s1119_s17  }
  0x51   : > { %403 = sbr.rel (%p400_p2) target bundleno = 369 (0x171), region = 103  ;;  %s874_s30 = sshll.u32 (!%p400_p2), %s406_s25, 5 }
  0x52   : > { %s875_s12 = sshll.u32 (!%p400_p2), %s413_s11, 7  ;;  %s439_s14 = sand.u32 (!%p400_p2), 1, %s1111_s15  }
  0x53   : > { %p445_p3 = scmp.lt.s32.totalorder (!%p400_p2), %s1139_s22, 1  ;;  %s876_s29 = sshll.u32 (!%p400_p2), %s439_s14, 5 }
  0x54   : > { %s1376_s10 = scalar_lea.vmem (!%p400_p2), [#allocation3], %s874_s30  ;;  %s1378_s0 = scalar_lea.vmem (!%p400_p2), [#allocation4], %s875_s12 }
  0x55   : > { %s1380_s1 = scalar_lea.vmem (!%p400_p2), [#allocation5], %s876_s29  ;;  %p877_p4 = scmp.ne.s32.totalorder (!%p400_p2), %s1135_s21, 0 }
  0x58   : > { %s1370_s5 = scalar_select %p445_p3, %s1139_s22, 1 }
  0x59   : > { %454 = sbr.rel (%p877_p4) target bundleno = 96 (0x60), region = 115  ;;  %v1153_v36 = vmov (!%p877_p4), 0.0  }
  0x5a   : > { %s447_s7 = scalar_lea.vmem %s1458_s2, %s1370_s5  ;;  %455 = vst [vmem:[#allocation2] sm:$0xff] (!%p877_p4), %v1153_v36  ;;  %456 = vst [vmem:[#allocation2 + $0x8] sm:$0xff] (!%p877_p4), %v1153_v36 }
  0x5b   : > { %457 = vst [vmem:[#allocation2 + $0x10] sm:$0xff] (!%p877_p4), %v1153_v36  ;;  %458 = vst [vmem:[#allocation2 + $0x18] sm:$0xff] (!%p877_p4), %v1153_v36 }
  0x60 PF: > { %v1043_v37 = vld [vmem:[%s1378_s0 + $0x40] sm:$0xff]   ;;  %v1045_v39 = vld [vmem:[%s1378_s0 + $0x48] sm:$0xff]   ;;  %v1047_v41 = vld [vmem:[%s1378_s0 + $0x50] sm:$0xff]   ;;  %p898_p5 = scmp.ne.s32.totalorder %s1135_s21, 6 }
  0x61   : > { %v1044_v38 = vld [vmem:[%s1378_s0] sm:$0xff]   ;;  %910 = vmatprep.subr.bf16.mxu0 %v1043_v37  ;;  %938 = vmatprep.subr.bf16.mxu1 %v1043_v37  ;;  %v1046_v40 = vld [vmem:[%s1378_s0 + $0x8] sm:$0xff]   ;;  %v1048_v42 = vld [vmem:[%s1378_s0 + $0x10] sm:$0xff]  }
  0x62   : > { %911 = vmatpush3.bf16.msra.mxu0 %v1044_v38  ;;  %946 = vmatpush3.bf16.msra.mxu1 %v1044_v38  ;;  %v1049_v43 = vld [vmem:[%s1378_s0 + $0x58] sm:$0xff]   ;;  %v1051_v45 = vld [vmem:[%s1378_s0 + $0x60] sm:$0xff]   ;;  %v1053_v47 = vld [vmem:[%s1378_s0 + $0x68] sm:$0xff]  }
  0x63   : > { %912 = vmatprep.subr.bf16.mxu0 %v1045_v39  ;;  %939 = vmatprep.subr.bf16.mxu1 %v1045_v39  ;;  %v1050_v44 = vld [vmem:[%s1378_s0 + $0x18] sm:$0xff]   ;;  %v1052_v46 = vld [vmem:[%s1378_s0 + $0x20] sm:$0xff]   ;;  %v1054_v50 = vld [vmem:[%s1378_s0 + $0x28] sm:$0xff]  }
  0x64   : > { %v1061_v48 = vld [vmem:[%s1376_s10 + $0x4] ss:$8 sps:$4 sm:$0xff]   ;;  %v1064_v49 = vld [vmem:[%s1376_s10 + $0x14] ss:$8 sps:$4 sm:$0xff]   ;;  %v1059_v55 = vld [vmem:[%s1376_s10] ss:$8 sps:$4 sm:$0xff]  }
  0x65   : > { %v1055_v51 = vld [vmem:[%s1378_s0 + $0x70] sm:$0xff]   ;;  %647 = vmatprep.mubr.bf16.mxu0 %v1061_v48  ;;  %655 = vmatprep.mubr.bf16.mxu1 %v1064_v49  ;;  %v1057_v53 = vld [vmem:[%s1378_s0 + $0x78] sm:$0xff]   ;;  %v459_v59 = vld [vmem:[#allocation2] sm:$0xff] }
  0x66   : > { %913 = vmatpush3.bf16.msra.mxu0 %v1046_v40  ;;  %947 = vmatpush3.bf16.msra.mxu1 %v1046_v40  ;;  %v1056_v52 = vld [vmem:[%s1378_s0 + $0x30] sm:$0xff]   ;;  %v1058_v54 = vld [vmem:[%s1378_s0 + $0x38] sm:$0xff]   ;;  %v460_v3 = vld [vmem:[#allocation2 + $0x8] sm:$0xff] }
  0x67   : > { %914 = vmatprep.subr.bf16.mxu0 %v1047_v41  ;;  %940 = vmatprep.subr.bf16.mxu1 %v1047_v41  ;;  %v1062_v56 = vld [vmem:[%s1376_s10 + $0x10] ss:$8 sps:$4 sm:$0xff]   ;;  %v899_v14 = vld [vmem:[%s447_s7] ss:$0 sm:$0xff] (!%p898_p5) }
  0x68   : > { %v461_v61 = vld [vmem:[#allocation2 + $0x10] sm:$0xff]  ;;  %v462_v5 = vld [vmem:[#allocation2 + $0x18] sm:$0xff] }
  0x6a   : > { %915 = vmatpush3.bf16.msra.mxu0 %v1048_v42  ;;  %948 = vmatpush3.bf16.msra.mxu1 %v1048_v42 }
  0x6b   : > { %916 = vmatprep.subr.bf16.mxu0 %v1049_v43  ;;  %941 = vmatprep.subr.bf16.mxu1 %v1049_v43 }
  0x6e   : > { %917 = vmatpush3.bf16.msra.mxu0 %v1050_v44  ;;  %949 = vmatpush3.bf16.msra.mxu1 %v1050_v44 }
  0x6f   : > { %918 = vmatprep.subr.bf16.mxu0 %v1051_v45  ;;  %942 = vmatprep.subr.bf16.mxu1 %v1051_v45 }
  0x72   : > { %919 = vmatpush3.bf16.msra.mxu0 %v1052_v46  ;;  %950 = vmatpush3.bf16.msra.mxu1 %v1052_v46 }
  0x73   : > { %920 = vmatprep.subr.bf16.mxu0 %v1053_v47  ;;  %943 = vmatprep.subr.bf16.mxu1 %v1053_v47 }
  0x76   : > { %921 = vmatpush3.bf16.msra.mxu0 %v1054_v50  ;;  %951 = vmatpush3.bf16.msra.mxu1 %v1054_v50 }
  0x77   : > { %922 = vmatprep.subr.bf16.mxu0 %v1055_v51  ;;  %944 = vmatprep.subr.bf16.mxu1 %v1055_v51 }
  0x7a   : > { %923 = vmatpush3.bf16.msra.mxu0 %v1056_v52  ;;  %952 = vmatpush3.bf16.msra.mxu1 %v1056_v52 }
  0x7b   : > { %924 = vmatprep.subr.bf16.mxu0 %v1057_v53  ;;  %945 = vmatprep.subr.bf16.mxu1 %v1057_v53 }
  0x7e   : > { %925 = vmatpush3.bf16.msra.mxu0 %v1058_v54  ;;  %953 = vmatpush3.bf16.msra.mxu1 %v1058_v54 }
  0x81   : > { %648 = vmatmul.mubr.bf16.vlgmr.msra.gmra.mrb[0].mxu0 %v1059_v55  ;;  %656 = vmatmul.mubr.bf16.vlgmr.msra.gmra.mrb[0].mxu1 %v1062_v56 }
 0x154   : > { %v926_v57 = vpop.f32.mrb[0].mxu0  ;;  %v932_v58 = vpop.f32.mrb[0].mxu1 }
 0x155   : > { %v927_v60 = vpop.f32.mrb[1].mxu0  ;;  %v933_v62 = vpop.f32.mrb[1].mxu1 }
 0x156   : > { %v928_v63 = vadd.f32 %v927_v60, %v926_v57  ;;  %v934_v0 = vadd.f32 %v933_v62, %v932_v58  ;;  %v929_v1 = vpop.f32.mrb[2].mxu0  ;;  %v935_v2 = vpop.f32.mrb[2].mxu1  ;;  %675 = sbr.rel (%p898_p5) target bundleno = 361 (0x169), region = 119 }
 0x157   : > { %v930_v4 = vpop.f32.mrb[3].mxu0  ;;  %v936_v6 = vpop.f32.mrb[3].mxu1 }
 0x158   : > { %v664_v7 = vadd.f32 %v928_v63, %v459_v59  ;;  %v666_v8 = vadd.f32 %v934_v0, %v461_v61  ;;  %v931_v9 = vadd.f32 %v930_v4, %v929_v1  ;;  %v937_v10 = vadd.f32 %v936_v6, %v935_v2 }
 0x15a   : > { %668 = vst [vmem:[#allocation2] sm:$0xff] %v664_v7  ;;  %670 = vst [vmem:[#allocation2 + $0x10] sm:$0xff] %v666_v8  ;;  %v665_v11 = vadd.f32 %v931_v9, %v460_v3  ;;  %v667_v12 = vadd.f32 %v937_v10, %v462_v5 }
 0x15c   : > { %669 = vst [vmem:[#allocation2 + $0x8] sm:$0xff] %v665_v11  ;;  %671 = vst [vmem:[#allocation2 + $0x18] sm:$0xff] %v667_v12 }
 0x161   : > { %v676_v13 = vld [vmem:[#allocation2] sm:$0xff]  ;;  %v678_v18 = vld [vmem:[#allocation2 + $0x10] sm:$0xff] }
 0x162   : > { %v687_v16 = vadd.f32 %v899_v14, %v676_v13  ;;  %v689_v20 = vadd.f32 %v899_v14, %v678_v18 }
 0x163   : > { %v677_v15 = vld [vmem:[#allocation2 + $0x8] sm:$0xff]  ;;  %v679_v19 = vld [vmem:[#allocation2 + $0x18] sm:$0xff] }
 0x164   : > { %v688_v17 = vadd.f32 %v899_v14, %v677_v15  ;;  %v690_v21 = vadd.f32 %v899_v14, %v679_v19  ;;  %v691_v22 = vmax.f32 %v687_v16, 0.0  ;;  %v693_v24 = vmax.f32 %v689_v20, 0.0 }
 0x166   : > { %v692_v23 = vmax.f32 %v688_v17, 0.0  ;;  %v694_v25 = vmax.f32 %v690_v21, 0.0  ;;  %695 = vst [vmem:[%s1380_s1] sm:$0xff] %v691_v22  ;;  %697 = vst [vmem:[%s1380_s1 + $0x10] sm:$0xff] %v693_v24 }
 0x168   : > { %696 = vst [vmem:[%s1380_s1 + $0x8] sm:$0xff] %v692_v23  ;;  %698 = vst [vmem:[%s1380_s1 + $0x18] sm:$0xff] %v694_v25 }
 0x169 PF: > { %705 = sbr.rel (!%p1275_p12) target bundleno = 369 (0x171), region = 123  ;;  %s901_s17 = sshll.u32 (%p1275_p12), %s1139_s22, 3 }
 0x16a   : > { %s799_s25 = scalar_lea.vmem (%p1275_p12), %s1460_s4, %s901_s17 }
 0x16d   : > { %v745_v26 = vld [vmem:[%s1380_s1] sm:$0xff] (%p1275_p12)  ;;  %v749_v28 = vld [vmem:[%s1380_s1 + $0x10] sm:$0xff] (%p1275_p12) }
 0x16e   : > { %902 = vst [vmem:[%s799_s25 + $0x18] sm:$0xff] (%p1275_p12), %v745_v26  ;;  %904 = vst [vmem:[%s799_s25 + $0x88] sm:$0xff] (%p1275_p12), %v749_v28 }
 0x16f   : > { %v747_v27 = vld [vmem:[%s1380_s1 + $0x8] sm:$0xff] (%p1275_p12)  ;;  %v751_v29 = vld [vmem:[%s1380_s1 + $0x18] sm:$0xff] (%p1275_p12) }
 0x170   : > { %903 = vst [vmem:[%s799_s25 + $0x50] sm:$0xff] %v747_v27  ;;  %905 = vst [vmem:[%s799_s25 + $0xc0] sm:$0xff] %v751_v29 }
 0x171 PF: > { %s14_s24 = sadd.s32 1, %s1151_s24   ;;  %s1470_s28 = sld [smem:[#allocation6_spill]] }
 0x172   : > { %p11_p6 = scmp.ge.s32.totalorder %s14_s24, 16   ;;  %s1471_s15 = smov %s1115_s16 }
 0x173   : > { %s1472_s16 = smov %s1273_s26  ;;  %s1473_s17 = smov %s1123_s18 }
 0x174   : > { %s1474_s18 = smov %s1268_s13  ;;  %s1475_s19 = smov %s1131_s20 }
 0x175   : > { %s1476_s20 = smov %s1254_s6  ;;  %s1477_s21 = smov %s1143_s3 }
 0x176   : > { %s1478_s22 = smov %s1147_s23  ;;  %s1480_s23 = smov %s1486_s27 }
 0x177   : > { %s1479_s3 = smov %s1470_s28  ;;  %13 = sbr.rel (!%p11_p6) target bundleno = 9 (0x9), region = 203 }

// kernel: mixed_6a_forward.9
= control target key start
LH: loop header
LB: loop body
LE: loop exit
PB: predicated region body
PF: predicated region fallthrough
CT: control target
= control target key end

     0   :  { %s731_s15 = smov 0   ;;  %s733_s16 = smov 0   ;;  %s848_s0 = inlined_call_operand.vmem [shape: f32[32,256], index: 0, kind: input, shape index: {}]   ;;  %s849_s1 = inlined_call_operand.vmem [shape: f32[32,256], index: 1, kind: input, shape index: {}]   ;;  %s850_s2 = inlined_call_operand.vmem [shape: f32[32,256], index: 2, kind: input, shape index: {}]   ;;  %s851_s3 = inlined_call_operand.vmem [shape: f32[32,896], index: 3, kind: input, shape index: {}, may-alias: {3,4}]   ;;  %s852_s4 = inlined_call_operand.vmem [shape: f32[32,896], index: 4, kind: output, shape index: {}, may-alias: {3,4}]  }
   0x1   :  { %s735_s17 = smov 0   ;;  %s737_s18 = smov 0  }
   0x2   :  { %s739_s19 = smov 0   ;;  %s741_s20 = smov 0  }
   0x3   :  { %s743_s21 = smov 0  }
   0x4 LB: > { %s571_s3 = sadd.s32 4294967295, %s704_s21   ;;  %s23_s22 = sadd.s32 1, %s700_s20  ;;  %s704_s21 = sphi %s743_s21, %s14_s21   ;;  %s700_s20 = sphi %s741_s20, %s860_s20   ;;  %s696_s19 = sphi %s739_s19, %s859_s19   ;;  %s692_s18 = sphi %s737_s18, %s858_s18   ;;  %s688_s17 = sphi %s735_s17, %s857_s17   ;;  %s684_s16 = sphi %s733_s16, %s856_s16   ;;  %s680_s15 = sphi %s731_s15, %s855_s15  }
   0x5   : > { %p24_p0 = scmp.ge.s32.totalorder %s23_s22, 2  ;;  %s35_s23 = sadd.s32 1, %s692_s18 }
   0x6   : > { %p42_p1 = scmp.ne.s32.totalorder %s692_s18, %s688_s17  ;;  %p43_p2 = scmp.eq.s32.totalorder %s704_s21, 0 }
   0x7   : > { %s862_s22 = smov (%p24_p0, %s23_s22), 0  ;;  %s114_s25 = sadd.s32 5, %s700_s20 }
   0x8   : > { %p774_p3 = por %p43_p2, %p42_p1  ;;  %s31_s26 = ssub.s32 %s700_s20, %s862_s22 }
   0x9   : > { %s115_s27 = sadd.s32 5, %s862_s22  ;;  %p33_p4 = scmp.eq.s32.totalorder %s31_s26, 0 }
   0xa   : > { %s117_s28 = ssub.s32 %s114_s25, %s115_s27  ;;  %s121_s29 = sadd.s32 1, %s684_s16 }
   0xb   : > { %p119_p5 = scmp.eq.s32.totalorder %s117_s28, 0  ;;  %p131_p6 = scmp.ne.s32.totalorder %s684_s16, %s680_s15 }
   0xc   : > { %s784_s30 = scalar_select %p33_p4, %s692_s18, %s35_s23  }
   0xd   : > { %s787_s5 = scalar_select %p119_p5, %s684_s16, %s121_s29  }
   0xe   : > { %p132_p7 = scmp.eq.s32.totalorder %s571_s3, 1  ;;  %p574_p9 = scmp.ge.s32.totalorder %s704_s21, 2 }
  0x10   : > { %p791_p8 = por %p132_p7, %p131_p6  ;;  %154 = sbr.rel (%p574_p9) target bundleno = 44 (0x2c), region = 16 }
  0x17   : > { %157 = sbr.rel (!%p774_p3) target bundleno = 30 (0x1e), region = 20  ;;  %s159_s7 = sand.u32 (%p774_p3), 1, %s692_s18  }
  0x18   : > { %s576_s8 = sshll.u32 (%p774_p3), %s700_s20, 3  ;;  %s575_s9 = sshll.u32 (%p774_p3), %s159_s7, 5 }
  0x19   : > { %s166_s12 = scalar_lea.vmem (%p774_p3), %s848_s0, %s576_s8  ;;  %s161_s13 = scalar_lea.vmem (%p774_p3), [#allocation2], %s575_s9 }
  0x1a   : > { %v200_v0 = vld [vmem:[%s166_s12] sm:$0xff] (%p774_p3)  ;;  %v202_v1 = vld [vmem:[%s166_s12 + $0x10] sm:$0xff] (%p774_p3) }
  0x1b   : > { %v204_v2 = vld [vmem:[%s166_s12 + $0x20] sm:$0xff] (%p774_p3)  ;;  %201 = vst [vmem:[%s161_s13] sm:$0xff] (%p774_p3), %v200_v0  ;;  %203 = vst [vmem:[%s161_s13 + $0x8] sm:$0xff] (%p774_p3), %v202_v1  ;;  %v206_v3 = vld [vmem:[%s166_s12 + $0x30] sm:$0xff] (%p774_p3) }
  0x1c   : > { %205 = vst [vmem:[%s161_s13 + $0x10] sm:$0xff] (%p774_p3), %v204_v2  ;;  %207 = vst [vmem:[%s161_s13 + $0x18] sm:$0xff] (%p774_p3), %v206_v3 }
  0x1e PF: > { %213 = sbr.rel (!%p774_p3) target bundleno = 37 (0x25), region = 58  ;;  %s215_s14 = sand.u32 (%p774_p3), 1, %s692_s18  }
  0x1f   : > { %s578_s3 = sshll.u32 (%p774_p3), %s700_s20, 3  ;;  %s577_s23 = sshll.u32 (%p774_p3), %s215_s14, 5 }
  0x20   : > { %s222_s27 = scalar_lea.vmem (%p774_p3), %s849_s1, %s578_s3  ;;  %s217_s28 = scalar_lea.vmem (%p774_p3), [#allocation3], %s577_s23 }
  0x21   : > { %v256_v4 = vld [vmem:[%s222_s27] sm:$0xff] (%p774_p3)  ;;  %v258_v5 = vld [vmem:[%s222_s27 + $0x10] sm:$0xff] (%p774_p3) }
  0x22   : > { %v260_v6 = vld [vmem:[%s222_s27 + $0x20] sm:$0xff] (%p774_p3)  ;;  %257 = vst [vmem:[%s217_s28] sm:$0xff] (%p774_p3), %v256_v4  ;;  %259 = vst [vmem:[%s217_s28 + $0x8] sm:$0xff] (%p774_p3), %v258_v5  ;;  %v262_v7 = vld [vmem:[%s222_s27 + $0x30] sm:$0xff] (%p774_p3) }
  0x23   : > { %261 = vst [vmem:[%s217_s28 + $0x10] sm:$0xff] (%p774_p3), %v260_v6  ;;  %263 = vst [vmem:[%s217_s28 + $0x18] sm:$0xff] (%p774_p3), %v262_v7 }
  0x25 PF: > { %269 = sbr.rel (!%p774_p3) target bundleno = 44 (0x2c), region = 96  ;;  %s271_s29 = sand.u32 (%p774_p3), 1, %s692_s18  }
  0x26   : > { %s580_s7 = sshll.u32 (%p774_p3), %s700_s20, 3  ;;  %s579_s8 = sshll.u32 (%p774_p3), %s271_s29, 5 }
  0x27   : > { %s278_s11 = scalar_lea.vmem (%p774_p3), %s850_s2, %s580_s7  ;;  %s273_s12 = scalar_lea.vmem (%p774_p3), [#allocation4], %s579_s8 }
  0x28   : > { %v312_v8 = vld [vmem:[%s278_s11] sm:$0xff] (%p774_p3)  ;;  %v314_v9 = vld [vmem:[%s278_s11 + $0x10] sm:$0xff] (%p774_p3) }
  0x29   : > { %v316_v10 = vld [vmem:[%s278_s11 + $0x20] sm:$0xff] (%p774_p3)  ;;  %313 = vst [vmem:[%s273_s12] sm:$0xff] (%p774_p3), %v312_v8  ;;  %315 = vst [vmem:[%s273_s12 + $0x8] sm:$0xff] (%p774_p3), %v314_v9  ;;  %v318_v11 = vld [vmem:[%s278_s11 + $0x30] sm:$0xff] (%p774_p3) }
  0x2a   : > { %317 = vst [vmem:[%s273_s12 + $0x10] sm:$0xff] (%p774_p3), %v316_v10  ;;  %319 = vst [vmem:[%s273_s12 + $0x18] sm:$0xff] (%p774_p3), %v318_v11 }
  0x2c PF: > { %p581_p10 = scmp.ge.s32.totalorder %s704_s21, 1  ;;  %p324_p11 = scmp.lt.s32.totalorder %s704_s21, 3 }
  0x2e   : > { %p325_p12 = pnand %p581_p10, %p324_p11 }
  0x2f   : > { %s331_s24 = sand.u32 (!%p325_p12), 1, %s688_s17   ;;  %s372_s13 = sand.u32 (!%p325_p12), 1, %s680_s15  }
  0x30   : > { %328 = sbr.rel (%p325_p12) target bundleno = 68 (0x44), region = 134  ;;  %s582_s14 = sshll.u32 (!%p325_p12), %s331_s24, 5 }
  0x31   : > { %s585_s3 = sshll.u32 (!%p325_p12), %s372_s13, 5  ;;  %s333_s23 = scalar_lea.vmem (!%p325_p12), [#allocation2], %s582_s14 }
  0x32   : > { %v380_v12 = vld [vmem:[%s333_s23] sm:$0xff] (!%p325_p12)  ;;  %s340_s25 = scalar_lea.vmem (!%p325_p12), [#allocation3], %s582_s14  ;;  %v381_v14 = vld [vmem:[%s333_s23 + $0x8] sm:$0xff] (!%p325_p12)  ;;  %s347_s26 = scalar_lea.vmem (!%p325_p12), [#allocation4], %s582_s14  ;;  %v382_v20 = vld [vmem:[%s333_s23 + $0x10] sm:$0xff] (!%p325_p12) }
  0x33   : > { %v384_v13 = vld [vmem:[%s340_s25] sm:$0xff] (!%p325_p12)  ;;  %v385_v17 = vld [vmem:[%s340_s25 + $0x8] sm:$0xff] (!%p325_p12)  ;;  %v386_v21 = vld [vmem:[%s340_s25 + $0x10] sm:$0xff] (!%p325_p12)  ;;  %s374_s15 = scalar_lea.vmem (!%p325_p12), [#allocation5], %s585_s3 }
  0x34   : > { %v388_v15 = vmax.f32 (!%p325_p12), %v380_v12, %v384_v13  ;;  %v392_v16 = vld [vmem:[%s347_s26] sm:$0xff] (!%p325_p12)  ;;  %v393_v18 = vld [vmem:[%s347_s26 + $0x8] sm:$0xff] (!%p325_p12)  ;;  %v389_v19 = vmax.f32 (!%p325_p12), %v381_v14, %v385_v17  ;;  %v394_v22 = vld [vmem:[%s347_s26 + $0x10] sm:$0xff] (!%p325_p12)  ;;  %v390_v24 = vmax.f32 (!%p325_p12), %v382_v20, %v386_v21 }
  0x35   : > { %v383_v25 = vld [vmem:[%s333_s23 + $0x18] sm:$0xff] (!%p325_p12) }
  0x36   : > { %v396_v23 = vmax.f32 (!%p325_p12), %v388_v15, %v392_v16  ;;  %v387_v26 = vld [vmem:[%s340_s25 + $0x18] sm:$0xff] (!%p325_p12)  ;;  %v397_v28 = vmax.f32 (!%p325_p12), %v389_v19, %v393_v18  ;;  %v398_v30 = vmax.f32 (!%p325_p12), %v390_v24, %v394_v22 }
  0x37   : > { %v395_v27 = vld [vmem:[%s347_s26 + $0x18] sm:$0xff]  ;;  %v391_v29 = vmax.f32 %v383_v25, %v387_v26  ;;  %410 = sbr.rel (!%p791_p8) target bundleno = 68 (0x44), region = 150  ;;  %s587_s17 = sshll.u32 (%p791_p8), %s696_s19, 3 }
  0x38   : > { %400 = vst [vmem:[%s374_s15] sm:$0xff] %v396_v23  ;;  %401 = vst [vmem:[%s374_s15 + $0x8] sm:$0xff] %v397_v28  ;;  %s510_s29 = scalar_lea.vmem (%p791_p8), %s852_s4, %s587_s17 }
  0x39   : > { %v399_v31 = vmax.f32 %v391_v29, %v395_v27  ;;  %402 = vst [vmem:[%s374_s15 + $0x10] sm:$0xff] %v398_v30 }
  0x3b   : > { %403 = vst [vmem:[%s374_s15 + $0x18] sm:$0xff] %v399_v31 }
  0x3f   : > { %v450_v32 = vld [vmem:[%s374_s15] sm:$0xff]  ;;  %v452_v33 = vld [vmem:[%s374_s15 + $0x8] sm:$0xff] }
  0x40   : > { %v454_v34 = vld [vmem:[%s374_s15 + $0x10] sm:$0xff]  ;;  %588 = vst [vmem:[%s510_s29 + $0x28] sm:$0xff] %v450_v32  ;;  %589 = vst [vmem:[%s510_s29 + $0x60] sm:$0xff] %v452_v33 }
  0x41   : > { %590 = vst [vmem:[%s510_s29 + $0x98] sm:$0xff] %v454_v34 }
  0x42   : > { %v456_v35 = vld [vmem:[%s374_s15 + $0x18] sm:$0xff] }
  0x43   : > { %591 = vst [vmem:[%s510_s29 + $0xd0] sm:$0xff] %v456_v35 }
  0x44 PF: > { %s14_s21 = sadd.s32 1, %s704_s21   ;;  %s855_s15 = smov %s684_s16 }
  0x45   : > { %p11_p13 = scmp.ge.s32.totalorder %s14_s21, 4   ;;  %s856_s16 = smov %s787_s5 }
  0x46   : > { %s857_s17 = smov %s692_s18  ;;  %s858_s18 = smov %s784_s30 }
  0x47   : > { %s859_s19 = smov %s700_s20  ;;  %s860_s20 = smov %s862_s22 }
  0x48   :  { %13 = sbr.rel (!%p11_p13) target bundleno = 4 (0x4), region = 235 }

</bundles_post_ra>
